<compile_context>
chip_gen: v7x
topology: tpu7x:2x2x1
jax: 0.10.0
libtpu: 0.0.40
codegen_flags: <defaults>
</compile_context>

<pallas_src>
import math
import functools

import jax
import jax.numpy as jnp
from jax import lax
from jax.experimental import pallas as pl
from jax.experimental.pallas import tpu as pltpu


# ----------------------------- fused Pallas kernel -----------------------------

def _fused_transformer_kernel(x_ref, bias_ref,
                              wqkv_ref, bqkv_ref, wo_ref, bo_ref,
                              g1_ref, be1_ref, w1_ref, b1_ref,
                              w2_ref, b2_ref, g2_ref, be2_ref,
                              cw_ref, cb_ref, out_ref,
                              *, num_layers, nhead, B, S):
    """All encoder layers + classifier, fully resident in VMEM.

    x_ref:    (B*S, D) f32 activations (embedding + positional encoding already applied)
    bias_ref: (B, 1, S) f32 additive key-padding bias
    per-layer weights carry a leading layer axis; matmul weights are bf16 (K, N);
    wqkv's Q columns are pre-scaled by 1/sqrt(head_dim).
    out_ref:  (B*S, Npad=128) f32 lane-dense classifier logits.
    """
    f32, bf16 = jnp.float32, jnp.bfloat16

    x = x_ref[...]                                   # (B*S, D) f32
    BS, D = x.shape
    hd = D // nhead
    bias = bias_ref[...]                             # (B, 1, S)

    for l in range(num_layers):                      # static unroll (weights: leading-axis views)
        # ---- QKV projection on all batch*seq rows at once (fills MXU rows) ----
        qkv = jnp.dot(x.astype(bf16), wqkv_ref[l],
                      preferred_element_type=f32) + bqkv_ref[l]            # (B*S, 3D)

        # ---- per-head attention, batched over the batch dim (3-D einsums) ----
        heads = []
        for h in range(nhead):
            q = qkv[:, h * hd:(h + 1) * hd].reshape(B, S, hd)              # pre-scaled Q
            k = qkv[:, D + h * hd:D + (h + 1) * hd].reshape(B, S, hd)
            v = qkv[:, 2 * D + h * hd:2 * D + (h + 1) * hd].reshape(B, S, hd)
            s = jnp.einsum('bqd,bkd->bqk', q.astype(bf16), k.astype(bf16),
                           preferred_element_type=f32) + bias              # (B, S, S)
            s = s - jnp.max(s, axis=-1, keepdims=True)
            p = jnp.exp(s)
            p = p / jnp.sum(p, axis=-1, keepdims=True)                     # exact softmax
            o = jnp.einsum('bqk,bkd->bqd', p.astype(bf16), v.astype(bf16),
                           preferred_element_type=f32)                     # (B, S, hd)
            heads.append(o.reshape(BS, hd))
        attn = jnp.concatenate(heads, axis=-1)                             # (B*S, D)

        # ---- single out-projection over all rows ----
        attn = jnp.dot(attn.astype(bf16), wo_ref[l],
                       preferred_element_type=f32) + bo_ref[l]

        # ---- residual + LayerNorm 1 (post-norm) ----
        y = x + attn
        mu = jnp.mean(y, axis=-1, keepdims=True)
        var = jnp.mean(jnp.square(y - mu), axis=-1, keepdims=True)
        y = (y - mu) * lax.rsqrt(var + 1e-5) * g1_ref[l] + be1_ref[l]

        # ---- FFN on (B*S, dff) (>95% of FLOPs) ----
        h1 = jnp.dot(y.astype(bf16), w1_ref[l],
                     preferred_element_type=f32) + b1_ref[l]               # (B*S, dff)
        h1 = 0.5 * h1 * (1.0 + lax.erf(h1 * 0.7071067811865476))           # exact (erf) GELU
        ff = jnp.dot(h1.astype(bf16), w2_ref[l],
                     preferred_element_type=f32) + b2_ref[l]               # (B*S, D)

        # ---- residual + LayerNorm 2 ----
        z = y + ff
        mu2 = jnp.mean(z, axis=-1, keepdims=True)
        var2 = jnp.mean(jnp.square(z - mu2), axis=-1, keepdims=True)
        x = (z - mu2) * lax.rsqrt(var2 + 1e-5) * g2_ref[l] + be2_ref[l]

    # ---- fused classifier head, lane-dense (B*S, 128) output ----
    out_ref[...] = jnp.dot(x.astype(bf16), cw_ref[...],
                           preferred_element_type=f32) + cb_ref[...]


# ------------------------------ kernel wrapper / model ------------------------------

def transformer_classifier_forward(src, params, *, pad_idx, nhead, num_classes):
    B, S = src.shape
    emb = params["embedding"]
    D = emb.shape[1]

    # embedding gather (JAX glue)
    x = jnp.take(emb, src, axis=0)                                         # (B, S, D)

    # PositionalEncoding — reproduces the reference quirk: in PyTorch x is (S, B, D) and
    # the table is built over x.size(1) == batch, broadcast over the sequence axis.
    position = jnp.arange(B, dtype=jnp.float32)[:, None]
    div_term = jnp.exp(jnp.arange(0, D, 2, dtype=jnp.float32) * (-math.log(10000.0) / D))
    pe = jnp.zeros((B, D), jnp.float32)
    pe = pe.at[:, 0::2].set(jnp.sin(position * div_term))
    pe = pe.at[:, 1::2].set(jnp.cos(position * div_term))
    x = x + pe[:, None, :]                                                 # add along batch (quirk)

    # key-padding mask -> additive bias, one row per batch element
    bias = jnp.where(src == pad_idx, -1e30, 0.0).astype(jnp.float32)[:, None, :]   # (B,1,S)

    L = params["wqkv"].shape[0]
    Npad = params["cls_w"].shape[1]
    kernel = functools.partial(_fused_transformer_kernel,
                               num_layers=L, nhead=nhead, B=B, S=S)

    vmem = pl.BlockSpec(memory_space=pltpu.MemorySpace.VMEM)   # whole array resident in VMEM
    out = pl.pallas_call(
        kernel,
        out_shape=jax.ShapeDtypeStruct((B * S, Npad), jnp.float32),
        in_specs=[vmem] * 16,
        out_specs=vmem,
    )(x.reshape(B * S, D), bias,
      params["wqkv"], params["bqkv"], params["wo"], params["bo"],
      params["ln1_g"], params["ln1_b"], params["w1"], params["b1"],
      params["w2"], params["b2"], params["ln2_g"], params["ln2_b"],
      params["cls_w"], params["cls_b"])

    logits = out[:, :num_classes].reshape(B, S, num_classes)
    return logits.transpose(1, 0, 2)                                       # (seq, batch, classes)


def init_params(key, vocab_size, D, num_layers, num_classes, dff, pad_idx, nhead):
    """Weights stacked per layer on a leading axis, pre-transposed (K, N), bf16 for the MXU.
    The 1/sqrt(head_dim) attention scale is folded into the Q columns of wqkv."""
    hd = D // nhead
    q_scale = 1.0 / math.sqrt(hd)
    n_cls_pad = max(128, ((num_classes + 127) // 128) * 128)

    k_emb, k_cls, k_layers = jax.random.split(key, 3)
    lkeys = iter(jax.random.split(k_layers, 4))

    def rnd(shape):
        return jax.random.normal(next(lkeys), shape, jnp.float32) * 0.02

    emb = jax.random.normal(k_emb, (vocab_size, D), jnp.float32) * 0.02
    emb = emb.at[pad_idx].set(0.0)                         # nn.Embedding padding_idx row

    wqkv = rnd((num_layers, D, 3 * D))
    wqkv = wqkv.at[:, :, :D].multiply(q_scale)             # fold 1/sqrt(hd) into Q weights
    wo = rnd((num_layers, D, D))
    w1 = rnd((num_layers, D, dff))
    w2 = rnd((num_layers, dff, D))

    cls_w = jnp.zeros((D, n_cls_pad), jnp.float32)
    cls_w = cls_w.at[:, :num_classes].set(
        jax.random.normal(k_cls, (D, num_classes), jnp.float32) * 0.02)

    zeros = lambda s: jnp.zeros(s, jnp.float32)
    ones = lambda s: jnp.ones(s, jnp.float32)
    return dict(
        embedding=emb,
        wqkv=wqkv.astype(jnp.bfloat16),
        bqkv=zeros((num_layers, 1, 3 * D)),                # (Q part would also carry q_scale if nonzero)
        wo=wo.astype(jnp.bfloat16), bo=zeros((num_layers, 1, D)),
        ln1_g=ones((num_layers, 1, D)), ln1_b=zeros((num_layers, 1, D)),
        w1=w1.astype(jnp.bfloat16), b1=zeros((num_layers, 1, dff)),
        w2=w2.astype(jnp.bfloat16), b2=zeros((num_layers, 1, D)),
        ln2_g=ones((num_layers, 1, D)), ln2_b=zeros((num_layers, 1, D)),
        cls_w=cls_w.astype(jnp.bfloat16), cls_b=zeros((1, n_cls_pad)),
    )


if __name__ == "__main__":
    vocab_size, embedding_dim, nhead = 50, 32, 4
    num_encoder_layers, num_classes, pad_idx = 2, 5, 0
    dim_feedforward = 2048                                 # PyTorch default
    B, S = 2, 8

    key = jax.random.PRNGKey(0)
    pkey, dkey = jax.random.split(key)
    params = init_params(pkey, vocab_size, embedding_dim, num_encoder_layers,
                         num_classes, dim_feedforward, pad_idx, nhead)

    src = jax.random.randint(dkey, (B, S), 1, vocab_size, dtype=jnp.int32)
    src = src.at[0, -1].set(pad_idx)                       # exercise key-padding mask

    fwd = jax.jit(functools.partial(transformer_classifier_forward,
                                    pad_idx=pad_idx, nhead=nhead,
                                    num_classes=num_classes))
    out = fwd(src, params)
    jax.block_until_ready(out)
    assert out.shape == (S, B, num_classes)
    assert bool(jnp.all(jnp.isfinite(out)))
    print("KERNEL_OK")
</pallas_src>

<mosaic_0001>
module attributes {stable_mosaic.version = 11 : i64} {
  func.func @_fused_transformer_kernel(%arg0: memref<16x32xf32, #tpu.memory_space<vmem>>, %arg1: memref<2x1x8xf32, #tpu.memory_space<vmem>>, %arg2: memref<2x32x96xbf16, #tpu.memory_space<vmem>>, %arg3: memref<2x1x96xf32, #tpu.memory_space<vmem>>, %arg4: memref<2x32x32xbf16, #tpu.memory_space<vmem>>, %arg5: memref<2x1x32xf32, #tpu.memory_space<vmem>>, %arg6: memref<2x1x32xf32, #tpu.memory_space<vmem>>, %arg7: memref<2x1x32xf32, #tpu.memory_space<vmem>>, %arg8: memref<2x32x2048xbf16, #tpu.memory_space<vmem>>, %arg9: memref<2x1x2048xf32, #tpu.memory_space<vmem>>, %arg10: memref<2x2048x32xbf16, #tpu.memory_space<vmem>>, %arg11: memref<2x1x32xf32, #tpu.memory_space<vmem>>, %arg12: memref<2x1x32xf32, #tpu.memory_space<vmem>>, %arg13: memref<2x1x32xf32, #tpu.memory_space<vmem>>, %arg14: memref<32x128xbf16, #tpu.memory_space<vmem>>, %arg15: memref<1x128xf32, #tpu.memory_space<vmem>>, %arg16: memref<16x128xf32, #tpu.memory_space<vmem>>) attributes {dimension_semantics = [], scalar_prefetch = 0 : i64, scratch_operands = 0 : i64, tpu.core_type = #tpu.core_type<tc>} {
    %c0 = arith.constant 0 : index
    %c0_0 = arith.constant 0 : index
    %0 = vector.load %arg0[%c0, %c0_0] : memref<16x32xf32, #tpu.memory_space<vmem>>, vector<16x32xf32>
    %c0_1 = arith.constant 0 : index
    %c0_2 = arith.constant 0 : index
    %c0_3 = arith.constant 0 : index
    %1 = vector.load %arg1[%c0_1, %c0_2, %c0_3] : memref<2x1x8xf32, #tpu.memory_space<vmem>>, vector<2x1x8xf32>
    %2 = arith.truncf %0 : vector<16x32xf32> to vector<16x32xbf16>
    %c0_4 = arith.constant 0 : index
    %c0_5 = arith.constant 0 : index
    %c0_6 = arith.constant 0 : index
    %3 = vector.load %arg2[%c0_4, %c0_5, %c0_6] : memref<2x32x96xbf16, #tpu.memory_space<vmem>>, vector<1x32x96xbf16>
    %4 = vector.shape_cast %3 : vector<1x32x96xbf16> to vector<32x96xbf16>
    %cst = arith.constant dense<0.000000e+00> : vector<16x96xf32>
    %5 = tpu.matmul %2, %4, %cst {dimension_numbers = #tpu.dot_dimension_numbers<[1], [0], [0], [1], [0, 0, 1, 1], [], []>} : vector<16x32xbf16>, vector<32x96xbf16>, vector<16x96xf32> -> vector<16x96xf32>
    %c0_7 = arith.constant 0 : index
    %c0_8 = arith.constant 0 : index
    %c0_9 = arith.constant 0 : index
    %6 = vector.load %arg3[%c0_7, %c0_8, %c0_9] : memref<2x1x96xf32, #tpu.memory_space<vmem>>, vector<1x1x96xf32>
    %7 = vector.shape_cast %6 : vector<1x1x96xf32> to vector<1x96xf32>
    %8 = vector.broadcast %7 : vector<1x96xf32> to vector<16x96xf32>
    %9 = arith.addf %5, %8 : vector<16x96xf32>
    %10 = vector.extract_strided_slice %9 {offsets = [0, 0], sizes = [16, 8], strides = [1, 1]} : vector<16x96xf32> to vector<16x8xf32>
    %11 = vector.shape_cast %10 : vector<16x8xf32> to vector<2x8x8xf32>
    %12 = vector.extract_strided_slice %9 {offsets = [0, 32], sizes = [16, 8], strides = [1, 1]} : vector<16x96xf32> to vector<16x8xf32>
    %13 = vector.shape_cast %12 : vector<16x8xf32> to vector<2x8x8xf32>
    %14 = vector.extract_strided_slice %9 {offsets = [0, 64], sizes = [16, 8], strides = [1, 1]} : vector<16x96xf32> to vector<16x8xf32>
    %15 = vector.shape_cast %14 : vector<16x8xf32> to vector<2x8x8xf32>
    %16 = arith.truncf %11 : vector<2x8x8xf32> to vector<2x8x8xbf16>
    %17 = arith.truncf %13 : vector<2x8x8xf32> to vector<2x8x8xbf16>
    "tpu.trace_start"() <{level = 10 : i32, message = "bqd,bkd->bqk"}> : () -> ()
    %cst_10 = arith.constant dense<0.000000e+00> : vector<2x8x8xf32>
    %18 = tpu.matmul %16, %17, %cst_10 {dimension_numbers = #tpu.dot_dimension_numbers<[2], [2], [1], [1], [0, 0, 0, 1, 1, 1], [0], [0]>} : vector<2x8x8xbf16>, vector<2x8x8xbf16>, vector<2x8x8xf32> -> vector<2x8x8xf32>
    "tpu.trace_stop"() : () -> ()
    %19 = vector.broadcast %1 : vector<2x1x8xf32> to vector<2x8x8xf32>
    %20 = arith.addf %18, %19 : vector<2x8x8xf32>
    %cst_11 = arith.constant dense<0xFF800000> : vector<2x8xf32>
    %21 = vector.multi_reduction <maximumf>, %20, %cst_11 [2] : vector<2x8x8xf32> to vector<2x8xf32>
    %22 = vector.shape_cast %21 : vector<2x8xf32> to vector<2x8x1xf32>
    %23 = vector.broadcast %22 : vector<2x8x1xf32> to vector<2x8x8xf32>
    %24 = arith.subf %20, %23 : vector<2x8x8xf32>
    %25 = math.exp %24 : vector<2x8x8xf32>
    %cst_12 = arith.constant dense<0.000000e+00> : vector<2x8xf32>
    %26 = vector.multi_reduction <add>, %25, %cst_12 [2] : vector<2x8x8xf32> to vector<2x8xf32>
    %27 = vector.shape_cast %26 : vector<2x8xf32> to vector<2x8x1xf32>
    %28 = vector.broadcast %27 : vector<2x8x1xf32> to vector<2x8x8xf32>
    %29 = arith.divf %25, %28 : vector<2x8x8xf32>
    %30 = arith.truncf %29 : vector<2x8x8xf32> to vector<2x8x8xbf16>
    %31 = arith.truncf %15 : vector<2x8x8xf32> to vector<2x8x8xbf16>
    "tpu.trace_start"() <{level = 10 : i32, message = "bqk,bkd->bqd"}> : () -> ()
    %cst_13 = arith.constant dense<0.000000e+00> : vector<2x8x8xf32>
    %32 = tpu.matmul %30, %31, %cst_13 {dimension_numbers = #tpu.dot_dimension_numbers<[2], [1], [1], [2], [0, 0, 0, 1, 1, 2], [0], [0]>} : vector<2x8x8xbf16>, vector<2x8x8xbf16>, vector<2x8x8xf32> -> vector<2x8x8xf32>
    "tpu.trace_stop"() : () -> ()
    %33 = vector.shape_cast %32 : vector<2x8x8xf32> to vector<16x8xf32>
    %34 = vector.extract_strided_slice %9 {offsets = [0, 8], sizes = [16, 8], strides = [1, 1]} : vector<16x96xf32> to vector<16x8xf32>
    %35 = vector.shape_cast %34 : vector<16x8xf32> to vector<2x8x8xf32>
    %36 = vector.extract_strided_slice %9 {offsets = [0, 40], sizes = [16, 8], strides = [1, 1]} : vector<16x96xf32> to vector<16x8xf32>
    %37 = vector.shape_cast %36 : vector<16x8xf32> to vector<2x8x8xf32>
    %38 = vector.extract_strided_slice %9 {offsets = [0, 72], sizes = [16, 8], strides = [1, 1]} : vector<16x96xf32> to vector<16x8xf32>
    %39 = vector.shape_cast %38 : vector<16x8xf32> to vector<2x8x8xf32>
    %40 = arith.truncf %35 : vector<2x8x8xf32> to vector<2x8x8xbf16>
    %41 = arith.truncf %37 : vector<2x8x8xf32> to vector<2x8x8xbf16>
    "tpu.trace_start"() <{level = 10 : i32, message = "bqd,bkd->bqk"}> : () -> ()
    %cst_14 = arith.constant dense<0.000000e+00> : vector<2x8x8xf32>
    %42 = tpu.matmul %40, %41, %cst_14 {dimension_numbers = #tpu.dot_dimension_numbers<[2], [2], [1], [1], [0, 0, 0, 1, 1, 1], [0], [0]>} : vector<2x8x8xbf16>, vector<2x8x8xbf16>, vector<2x8x8xf32> -> vector<2x8x8xf32>
    "tpu.trace_stop"() : () -> ()
    %43 = vector.broadcast %1 : vector<2x1x8xf32> to vector<2x8x8xf32>
    %44 = arith.addf %42, %43 : vector<2x8x8xf32>
    %cst_15 = arith.constant dense<0xFF800000> : vector<2x8xf32>
    %45 = vector.multi_reduction <maximumf>, %44, %cst_15 [2] : vector<2x8x8xf32> to vector<2x8xf32>
    %46 = vector.shape_cast %45 : vector<2x8xf32> to vector<2x8x1xf32>
    %47 = vector.broadcast %46 : vector<2x8x1xf32> to vector<2x8x8xf32>
    %48 = arith.subf %44, %47 : vector<2x8x8xf32>
    %49 = math.exp %48 : vector<2x8x8xf32>
    %cst_16 = arith.constant dense<0.000000e+00> : vector<2x8xf32>
    %50 = vector.multi_reduction <add>, %49, %cst_16 [2] : vector<2x8x8xf32> to vector<2x8xf32>
    %51 = vector.shape_cast %50 : vector<2x8xf32> to vector<2x8x1xf32>
    %52 = vector.broadcast %51 : vector<2x8x1xf32> to vector<2x8x8xf32>
    %53 = arith.divf %49, %52 : vector<2x8x8xf32>
    %54 = arith.truncf %53 : vector<2x8x8xf32> to vector<2x8x8xbf16>
    %55 = arith.truncf %39 : vector<2x8x8xf32> to vector<2x8x8xbf16>
    "tpu.trace_start"() <{level = 10 : i32, message = "bqk,bkd->bqd"}> : () -> ()
    %cst_17 = arith.constant dense<0.000000e+00> : vector<2x8x8xf32>
    %56 = tpu.matmul %54, %55, %cst_17 {dimension_numbers = #tpu.dot_dimension_numbers<[2], [1], [1], [2], [0, 0, 0, 1, 1, 2], [0], [0]>} : vector<2x8x8xbf16>, vector<2x8x8xbf16>, vector<2x8x8xf32> -> vector<2x8x8xf32>
    "tpu.trace_stop"() : () -> ()
    %57 = vector.shape_cast %56 : vector<2x8x8xf32> to vector<16x8xf32>
    %58 = vector.extract_strided_slice %9 {offsets = [0, 16], sizes = [16, 8], strides = [1, 1]} : vector<16x96xf32> to vector<16x8xf32>
    %59 = vector.shape_cast %58 : vector<16x8xf32> to vector<2x8x8xf32>
    %60 = vector.extract_strided_slice %9 {offsets = [0, 48], sizes = [16, 8], strides = [1, 1]} : vector<16x96xf32> to vector<16x8xf32>
    %61 = vector.shape_cast %60 : vector<16x8xf32> to vector<2x8x8xf32>
    %62 = vector.extract_strided_slice %9 {offsets = [0, 80], sizes = [16, 8], strides = [1, 1]} : vector<16x96xf32> to vector<16x8xf32>
    %63 = vector.shape_cast %62 : vector<16x8xf32> to vector<2x8x8xf32>
    %64 = arith.truncf %59 : vector<2x8x8xf32> to vector<2x8x8xbf16>
    %65 = arith.truncf %61 : vector<2x8x8xf32> to vector<2x8x8xbf16>
    "tpu.trace_start"() <{level = 10 : i32, message = "bqd,bkd->bqk"}> : () -> ()
    %cst_18 = arith.constant dense<0.000000e+00> : vector<2x8x8xf32>
    %66 = tpu.matmul %64, %65, %cst_18 {dimension_numbers = #tpu.dot_dimension_numbers<[2], [2], [1], [1], [0, 0, 0, 1, 1, 1], [0], [0]>} : vector<2x8x8xbf16>, vector<2x8x8xbf16>, vector<2x8x8xf32> -> vector<2x8x8xf32>
    "tpu.trace_stop"() : () -> ()
    %67 = vector.broadcast %1 : vector<2x1x8xf32> to vector<2x8x8xf32>
    %68 = arith.addf %66, %67 : vector<2x8x8xf32>
    %cst_19 = arith.constant dense<0xFF800000> : vector<2x8xf32>
    %69 = vector.multi_reduction <maximumf>, %68, %cst_19 [2] : vector<2x8x8xf32> to vector<2x8xf32>
    %70 = vector.shape_cast %69 : vector<2x8xf32> to vector<2x8x1xf32>
    %71 = vector.broadcast %70 : vector<2x8x1xf32> to vector<2x8x8xf32>
    %72 = arith.subf %68, %71 : vector<2x8x8xf32>
    %73 = math.exp %72 : vector<2x8x8xf32>
    %cst_20 = arith.constant dense<0.000000e+00> : vector<2x8xf32>
    %74 = vector.multi_reduction <add>, %73, %cst_20 [2] : vector<2x8x8xf32> to vector<2x8xf32>
    %75 = vector.shape_cast %74 : vector<2x8xf32> to vector<2x8x1xf32>
    %76 = vector.broadcast %75 : vector<2x8x1xf32> to vector<2x8x8xf32>
    %77 = arith.divf %73, %76 : vector<2x8x8xf32>
    %78 = arith.truncf %77 : vector<2x8x8xf32> to vector<2x8x8xbf16>
    %79 = arith.truncf %63 : vector<2x8x8xf32> to vector<2x8x8xbf16>
    "tpu.trace_start"() <{level = 10 : i32, message = "bqk,bkd->bqd"}> : () -> ()
    %cst_21 = arith.constant dense<0.000000e+00> : vector<2x8x8xf32>
    %80 = tpu.matmul %78, %79, %cst_21 {dimension_numbers = #tpu.dot_dimension_numbers<[2], [1], [1], [2], [0, 0, 0, 1, 1, 2], [0], [0]>} : vector<2x8x8xbf16>, vector<2x8x8xbf16>, vector<2x8x8xf32> -> vector<2x8x8xf32>
    "tpu.trace_stop"() : () -> ()
    %81 = vector.shape_cast %80 : vector<2x8x8xf32> to vector<16x8xf32>
    %82 = vector.extract_strided_slice %9 {offsets = [0, 24], sizes = [16, 8], strides = [1, 1]} : vector<16x96xf32> to vector<16x8xf32>
    %83 = vector.shape_cast %82 : vector<16x8xf32> to vector<2x8x8xf32>
    %84 = vector.extract_strided_slice %9 {offsets = [0, 56], sizes = [16, 8], strides = [1, 1]} : vector<16x96xf32> to vector<16x8xf32>
    %85 = vector.shape_cast %84 : vector<16x8xf32> to vector<2x8x8xf32>
    %86 = vector.extract_strided_slice %9 {offsets = [0, 88], sizes = [16, 8], strides = [1, 1]} : vector<16x96xf32> to vector<16x8xf32>
    %87 = vector.shape_cast %86 : vector<16x8xf32> to vector<2x8x8xf32>
    %88 = arith.truncf %83 : vector<2x8x8xf32> to vector<2x8x8xbf16>
    %89 = arith.truncf %85 : vector<2x8x8xf32> to vector<2x8x8xbf16>
    "tpu.trace_start"() <{level = 10 : i32, message = "bqd,bkd->bqk"}> : () -> ()
    %cst_22 = arith.constant dense<0.000000e+00> : vector<2x8x8xf32>
    %90 = tpu.matmul %88, %89, %cst_22 {dimension_numbers = #tpu.dot_dimension_numbers<[2], [2], [1], [1], [0, 0, 0, 1, 1, 1], [0], [0]>} : vector<2x8x8xbf16>, vector<2x8x8xbf16>, vector<2x8x8xf32> -> vector<2x8x8xf32>
    "tpu.trace_stop"() : () -> ()
    %91 = vector.broadcast %1 : vector<2x1x8xf32> to vector<2x8x8xf32>
    %92 = arith.addf %90, %91 : vector<2x8x8xf32>
    %cst_23 = arith.constant dense<0xFF800000> : vector<2x8xf32>
    %93 = vector.multi_reduction <maximumf>, %92, %cst_23 [2] : vector<2x8x8xf32> to vector<2x8xf32>
    %94 = vector.shape_cast %93 : vector<2x8xf32> to vector<2x8x1xf32>
    %95 = vector.broadcast %94 : vector<2x8x1xf32> to vector<2x8x8xf32>
    %96 = arith.subf %92, %95 : vector<2x8x8xf32>
    %97 = math.exp %96 : vector<2x8x8xf32>
    %cst_24 = arith.constant dense<0.000000e+00> : vector<2x8xf32>
    %98 = vector.multi_reduction <add>, %97, %cst_24 [2] : vector<2x8x8xf32> to vector<2x8xf32>
    %99 = vector.shape_cast %98 : vector<2x8xf32> to vector<2x8x1xf32>
    %100 = vector.broadcast %99 : vector<2x8x1xf32> to vector<2x8x8xf32>
    %101 = arith.divf %97, %100 : vector<2x8x8xf32>
    %102 = arith.truncf %101 : vector<2x8x8xf32> to vector<2x8x8xbf16>
    %103 = arith.truncf %87 : vector<2x8x8xf32> to vector<2x8x8xbf16>
    "tpu.trace_start"() <{level = 10 : i32, message = "bqk,bkd->bqd"}> : () -> ()
    %cst_25 = arith.constant dense<0.000000e+00> : vector<2x8x8xf32>
    %104 = tpu.matmul %102, %103, %cst_25 {dimension_numbers = #tpu.dot_dimension_numbers<[2], [1], [1], [2], [0, 0, 0, 1, 1, 2], [0], [0]>} : vector<2x8x8xbf16>, vector<2x8x8xbf16>, vector<2x8x8xf32> -> vector<2x8x8xf32>
    "tpu.trace_stop"() : () -> ()
    %105 = vector.shape_cast %104 : vector<2x8x8xf32> to vector<16x8xf32>
    %106 = tpu.concatenate %33, %57, %81, %105 in 1 : vector<16x8xf32>, vector<16x8xf32>, vector<16x8xf32>, vector<16x8xf32> -> vector<16x32xf32>
    %107 = arith.truncf %106 : vector<16x32xf32> to vector<16x32xbf16>
    %c0_26 = arith.constant 0 : index
    %c0_27 = arith.constant 0 : index
    %c0_28 = arith.constant 0 : index
    %108 = vector.load %arg4[%c0_26, %c0_27, %c0_28] : memref<2x32x32xbf16, #tpu.memory_space<vmem>>, vector<1x32x32xbf16>
    %109 = vector.shape_cast %108 : vector<1x32x32xbf16> to vector<32x32xbf16>
    %cst_29 = arith.constant dense<0.000000e+00> : vector<16x32xf32>
    %110 = tpu.matmul %107, %109, %cst_29 {dimension_numbers = #tpu.dot_dimension_numbers<[1], [0], [0], [1], [0, 0, 1, 1], [], []>} : vector<16x32xbf16>, vector<32x32xbf16>, vector<16x32xf32> -> vector<16x32xf32>
    %c0_30 = arith.constant 0 : index
    %c0_31 = arith.constant 0 : index
    %c0_32 = arith.constant 0 : index
    %111 = vector.load %arg5[%c0_30, %c0_31, %c0_32] : memref<2x1x32xf32, #tpu.memory_space<vmem>>, vector<1x1x32xf32>
    %112 = vector.shape_cast %111 : vector<1x1x32xf32> to vector<1x32xf32>
    %113 = vector.broadcast %112 : vector<1x32xf32> to vector<16x32xf32>
    %114 = arith.addf %110, %113 : vector<16x32xf32>
    %115 = arith.addf %0, %114 : vector<16x32xf32>
    %cst_33 = arith.constant dense<0.000000e+00> : vector<16xf32>
    %116 = vector.multi_reduction <add>, %115, %cst_33 [1] : vector<16x32xf32> to vector<16xf32>
    %117 = vector.shape_cast %116 : vector<16xf32> to vector<16x1xf32>
    %cst_34 = arith.constant 3.200000e+01 : f32
    %118 = vector.broadcast %cst_34 : f32 to vector<16x1xf32>
    %119 = arith.divf %117, %118 : vector<16x1xf32>
    %120 = vector.broadcast %119 : vector<16x1xf32> to vector<16x32xf32>
    %121 = arith.subf %115, %120 : vector<16x32xf32>
    %122 = arith.mulf %121, %121 : vector<16x32xf32>
    %cst_35 = arith.constant dense<0.000000e+00> : vector<16xf32>
    %123 = vector.multi_reduction <add>, %122, %cst_35 [1] : vector<16x32xf32> to vector<16xf32>
    %124 = vector.shape_cast %123 : vector<16xf32> to vector<16x1xf32>
    %cst_36 = arith.constant 3.200000e+01 : f32
    %125 = vector.broadcast %cst_36 : f32 to vector<16x1xf32>
    %126 = arith.divf %124, %125 : vector<16x1xf32>
    %127 = vector.broadcast %119 : vector<16x1xf32> to vector<16x32xf32>
    %128 = arith.subf %115, %127 : vector<16x32xf32>
    %cst_37 = arith.constant 9.99999974E-6 : f32
    %129 = vector.broadcast %cst_37 : f32 to vector<16x1xf32>
    %130 = arith.addf %126, %129 : vector<16x1xf32>
    %131 = math.rsqrt %130 : vector<16x1xf32>
    %132 = vector.broadcast %131 : vector<16x1xf32> to vector<16x32xf32>
    %133 = arith.mulf %128, %132 : vector<16x32xf32>
    %c0_38 = arith.constant 0 : index
    %c0_39 = arith.constant 0 : index
    %c0_40 = arith.constant 0 : index
    %134 = vector.load %arg6[%c0_38, %c0_39, %c0_40] : memref<2x1x32xf32, #tpu.memory_space<vmem>>, vector<1x1x32xf32>
    %135 = vector.shape_cast %134 : vector<1x1x32xf32> to vector<1x32xf32>
    %136 = vector.broadcast %135 : vector<1x32xf32> to vector<16x32xf32>
    %137 = arith.mulf %133, %136 : vector<16x32xf32>
    %c0_41 = arith.constant 0 : index
    %c0_42 = arith.constant 0 : index
    %c0_43 = arith.constant 0 : index
    %138 = vector.load %arg7[%c0_41, %c0_42, %c0_43] : memref<2x1x32xf32, #tpu.memory_space<vmem>>, vector<1x1x32xf32>
    %139 = vector.shape_cast %138 : vector<1x1x32xf32> to vector<1x32xf32>
    %140 = vector.broadcast %139 : vector<1x32xf32> to vector<16x32xf32>
    %141 = arith.addf %137, %140 : vector<16x32xf32>
    %142 = arith.truncf %141 : vector<16x32xf32> to vector<16x32xbf16>
    %c0_44 = arith.constant 0 : index
    %c0_45 = arith.constant 0 : index
    %c0_46 = arith.constant 0 : index
    %143 = vector.load %arg8[%c0_44, %c0_45, %c0_46] : memref<2x32x2048xbf16, #tpu.memory_space<vmem>>, vector<1x32x2048xbf16>
    %144 = vector.shape_cast %143 : vector<1x32x2048xbf16> to vector<32x2048xbf16>
    %cst_47 = arith.constant dense<0.000000e+00> : vector<16x2048xf32>
    %145 = tpu.matmul %142, %144, %cst_47 {dimension_numbers = #tpu.dot_dimension_numbers<[1], [0], [0], [1], [0, 0, 1, 1], [], []>} : vector<16x32xbf16>, vector<32x2048xbf16>, vector<16x2048xf32> -> vector<16x2048xf32>
    %c0_48 = arith.constant 0 : index
    %c0_49 = arith.constant 0 : index
    %c0_50 = arith.constant 0 : index
    %146 = vector.load %arg9[%c0_48, %c0_49, %c0_50] : memref<2x1x2048xf32, #tpu.memory_space<vmem>>, vector<1x1x2048xf32>
    %147 = vector.shape_cast %146 : vector<1x1x2048xf32> to vector<1x2048xf32>
    %148 = vector.broadcast %147 : vector<1x2048xf32> to vector<16x2048xf32>
    %149 = arith.addf %145, %148 : vector<16x2048xf32>
    %cst_51 = arith.constant 5.000000e-01 : f32
    %150 = vector.broadcast %cst_51 : f32 to vector<16x2048xf32>
    %151 = arith.mulf %150, %149 : vector<16x2048xf32>
    %cst_52 = arith.constant 0.707106769 : f32
    %152 = vector.broadcast %cst_52 : f32 to vector<16x2048xf32>
    %153 = arith.mulf %149, %152 : vector<16x2048xf32>
    %154 = math.erf %153 : vector<16x2048xf32>
    %cst_53 = arith.constant 1.000000e+00 : f32
    %155 = vector.broadcast %cst_53 : f32 to vector<16x2048xf32>
    %156 = arith.addf %155, %154 : vector<16x2048xf32>
    %157 = arith.mulf %151, %156 : vector<16x2048xf32>
    %158 = arith.truncf %157 : vector<16x2048xf32> to vector<16x2048xbf16>
    %c0_54 = arith.constant 0 : index
    %c0_55 = arith.constant 0 : index
    %c0_56 = arith.constant 0 : index
    %159 = vector.load %arg10[%c0_54, %c0_55, %c0_56] : memref<2x2048x32xbf16, #tpu.memory_space<vmem>>, vector<1x2048x32xbf16>
    %160 = vector.shape_cast %159 : vector<1x2048x32xbf16> to vector<2048x32xbf16>
    %cst_57 = arith.constant dense<0.000000e+00> : vector<16x32xf32>
    %161 = tpu.matmul %158, %160, %cst_57 {dimension_numbers = #tpu.dot_dimension_numbers<[1], [0], [0], [1], [0, 0, 1, 1], [], []>} : vector<16x2048xbf16>, vector<2048x32xbf16>, vector<16x32xf32> -> vector<16x32xf32>
    %c0_58 = arith.constant 0 : index
    %c0_59 = arith.constant 0 : index
    %c0_60 = arith.constant 0 : index
    %162 = vector.load %arg11[%c0_58, %c0_59, %c0_60] : memref<2x1x32xf32, #tpu.memory_space<vmem>>, vector<1x1x32xf32>
    %163 = vector.shape_cast %162 : vector<1x1x32xf32> to vector<1x32xf32>
    %164 = vector.broadcast %163 : vector<1x32xf32> to vector<16x32xf32>
    %165 = arith.addf %161, %164 : vector<16x32xf32>
    %166 = arith.addf %141, %165 : vector<16x32xf32>
    %cst_61 = arith.constant dense<0.000000e+00> : vector<16xf32>
    %167 = vector.multi_reduction <add>, %166, %cst_61 [1] : vector<16x32xf32> to vector<16xf32>
    %168 = vector.shape_cast %167 : vector<16xf32> to vector<16x1xf32>
    %cst_62 = arith.constant 3.200000e+01 : f32
    %169 = vector.broadcast %cst_62 : f32 to vector<16x1xf32>
    %170 = arith.divf %168, %169 : vector<16x1xf32>
    %171 = vector.broadcast %170 : vector<16x1xf32> to vector<16x32xf32>
    %172 = arith.subf %166, %171 : vector<16x32xf32>
    %173 = arith.mulf %172, %172 : vector<16x32xf32>
    %cst_63 = arith.constant dense<0.000000e+00> : vector<16xf32>
    %174 = vector.multi_reduction <add>, %173, %cst_63 [1] : vector<16x32xf32> to vector<16xf32>
    %175 = vector.shape_cast %174 : vector<16xf32> to vector<16x1xf32>
    %cst_64 = arith.constant 3.200000e+01 : f32
    %176 = vector.broadcast %cst_64 : f32 to vector<16x1xf32>
    %177 = arith.divf %175, %176 : vector<16x1xf32>
    %178 = vector.broadcast %170 : vector<16x1xf32> to vector<16x32xf32>
    %179 = arith.subf %166, %178 : vector<16x32xf32>
    %cst_65 = arith.constant 9.99999974E-6 : f32
    %180 = vector.broadcast %cst_65 : f32 to vector<16x1xf32>
    %181 = arith.addf %177, %180 : vector<16x1xf32>
    %182 = math.rsqrt %181 : vector<16x1xf32>
    %183 = vector.broadcast %182 : vector<16x1xf32> to vector<16x32xf32>
    %184 = arith.mulf %179, %183 : vector<16x32xf32>
    %c0_66 = arith.constant 0 : index
    %c0_67 = arith.constant 0 : index
    %c0_68 = arith.constant 0 : index
    %185 = vector.load %arg12[%c0_66, %c0_67, %c0_68] : memref<2x1x32xf32, #tpu.memory_space<vmem>>, vector<1x1x32xf32>
    %186 = vector.shape_cast %185 : vector<1x1x32xf32> to vector<1x32xf32>
    %187 = vector.broadcast %186 : vector<1x32xf32> to vector<16x32xf32>
    %188 = arith.mulf %184, %187 : vector<16x32xf32>
    %c0_69 = arith.constant 0 : index
    %c0_70 = arith.constant 0 : index
    %c0_71 = arith.constant 0 : index
    %189 = vector.load %arg13[%c0_69, %c0_70, %c0_71] : memref<2x1x32xf32, #tpu.memory_space<vmem>>, vector<1x1x32xf32>
    %190 = vector.shape_cast %189 : vector<1x1x32xf32> to vector<1x32xf32>
    %191 = vector.broadcast %190 : vector<1x32xf32> to vector<16x32xf32>
    %192 = arith.addf %188, %191 : vector<16x32xf32>
    %193 = arith.truncf %192 : vector<16x32xf32> to vector<16x32xbf16>
    %c1 = arith.constant 1 : index
    %c0_72 = arith.constant 0 : index
    %c0_73 = arith.constant 0 : index
    %194 = vector.load %arg2[%c1, %c0_72, %c0_73] : memref<2x32x96xbf16, #tpu.memory_space<vmem>>, vector<1x32x96xbf16>
    %195 = vector.shape_cast %194 : vector<1x32x96xbf16> to vector<32x96xbf16>
    %cst_74 = arith.constant dense<0.000000e+00> : vector<16x96xf32>
    %196 = tpu.matmul %193, %195, %cst_74 {dimension_numbers = #tpu.dot_dimension_numbers<[1], [0], [0], [1], [0, 0, 1, 1], [], []>} : vector<16x32xbf16>, vector<32x96xbf16>, vector<16x96xf32> -> vector<16x96xf32>
    %c1_75 = arith.constant 1 : index
    %c0_76 = arith.constant 0 : index
    %c0_77 = arith.constant 0 : index
    %197 = vector.load %arg3[%c1_75, %c0_76, %c0_77] : memref<2x1x96xf32, #tpu.memory_space<vmem>>, vector<1x1x96xf32>
    %198 = vector.shape_cast %197 : vector<1x1x96xf32> to vector<1x96xf32>
    %199 = vector.broadcast %198 : vector<1x96xf32> to vector<16x96xf32>
    %200 = arith.addf %196, %199 : vector<16x96xf32>
    %201 = vector.extract_strided_slice %200 {offsets = [0, 0], sizes = [16, 8], strides = [1, 1]} : vector<16x96xf32> to vector<16x8xf32>
    %202 = vector.shape_cast %201 : vector<16x8xf32> to vector<2x8x8xf32>
    %203 = vector.extract_strided_slice %200 {offsets = [0, 32], sizes = [16, 8], strides = [1, 1]} : vector<16x96xf32> to vector<16x8xf32>
    %204 = vector.shape_cast %203 : vector<16x8xf32> to vector<2x8x8xf32>
    %205 = vector.extract_strided_slice %200 {offsets = [0, 64], sizes = [16, 8], strides = [1, 1]} : vector<16x96xf32> to vector<16x8xf32>
    %206 = vector.shape_cast %205 : vector<16x8xf32> to vector<2x8x8xf32>
    %207 = arith.truncf %202 : vector<2x8x8xf32> to vector<2x8x8xbf16>
    %208 = arith.truncf %204 : vector<2x8x8xf32> to vector<2x8x8xbf16>
    "tpu.trace_start"() <{level = 10 : i32, message = "bqd,bkd->bqk"}> : () -> ()
    %cst_78 = arith.constant dense<0.000000e+00> : vector<2x8x8xf32>
    %209 = tpu.matmul %207, %208, %cst_78 {dimension_numbers = #tpu.dot_dimension_numbers<[2], [2], [1], [1], [0, 0, 0, 1, 1, 1], [0], [0]>} : vector<2x8x8xbf16>, vector<2x8x8xbf16>, vector<2x8x8xf32> -> vector<2x8x8xf32>
    "tpu.trace_stop"() : () -> ()
    %210 = vector.broadcast %1 : vector<2x1x8xf32> to vector<2x8x8xf32>
    %211 = arith.addf %209, %210 : vector<2x8x8xf32>
    %cst_79 = arith.constant dense<0xFF800000> : vector<2x8xf32>
    %212 = vector.multi_reduction <maximumf>, %211, %cst_79 [2] : vector<2x8x8xf32> to vector<2x8xf32>
    %213 = vector.shape_cast %212 : vector<2x8xf32> to vector<2x8x1xf32>
    %214 = vector.broadcast %213 : vector<2x8x1xf32> to vector<2x8x8xf32>
    %215 = arith.subf %211, %214 : vector<2x8x8xf32>
    %216 = math.exp %215 : vector<2x8x8xf32>
    %cst_80 = arith.constant dense<0.000000e+00> : vector<2x8xf32>
    %217 = vector.multi_reduction <add>, %216, %cst_80 [2] : vector<2x8x8xf32> to vector<2x8xf32>
    %218 = vector.shape_cast %217 : vector<2x8xf32> to vector<2x8x1xf32>
    %219 = vector.broadcast %218 : vector<2x8x1xf32> to vector<2x8x8xf32>
    %220 = arith.divf %216, %219 : vector<2x8x8xf32>
    %221 = arith.truncf %220 : vector<2x8x8xf32> to vector<2x8x8xbf16>
    %222 = arith.truncf %206 : vector<2x8x8xf32> to vector<2x8x8xbf16>
    "tpu.trace_start"() <{level = 10 : i32, message = "bqk,bkd->bqd"}> : () -> ()
    %cst_81 = arith.constant dense<0.000000e+00> : vector<2x8x8xf32>
    %223 = tpu.matmul %221, %222, %cst_81 {dimension_numbers = #tpu.dot_dimension_numbers<[2], [1], [1], [2], [0, 0, 0, 1, 1, 2], [0], [0]>} : vector<2x8x8xbf16>, vector<2x8x8xbf16>, vector<2x8x8xf32> -> vector<2x8x8xf32>
    "tpu.trace_stop"() : () -> ()
    %224 = vector.shape_cast %223 : vector<2x8x8xf32> to vector<16x8xf32>
    %225 = vector.extract_strided_slice %200 {offsets = [0, 8], sizes = [16, 8], strides = [1, 1]} : vector<16x96xf32> to vector<16x8xf32>
    %226 = vector.shape_cast %225 : vector<16x8xf32> to vector<2x8x8xf32>
    %227 = vector.extract_strided_slice %200 {offsets = [0, 40], sizes = [16, 8], strides = [1, 1]} : vector<16x96xf32> to vector<16x8xf32>
    %228 = vector.shape_cast %227 : vector<16x8xf32> to vector<2x8x8xf32>
    %229 = vector.extract_strided_slice %200 {offsets = [0, 72], sizes = [16, 8], strides = [1, 1]} : vector<16x96xf32> to vector<16x8xf32>
    %230 = vector.shape_cast %229 : vector<16x8xf32> to vector<2x8x8xf32>
    %231 = arith.truncf %226 : vector<2x8x8xf32> to vector<2x8x8xbf16>
    %232 = arith.truncf %228 : vector<2x8x8xf32> to vector<2x8x8xbf16>
    "tpu.trace_start"() <{level = 10 : i32, message = "bqd,bkd->bqk"}> : () -> ()
    %cst_82 = arith.constant dense<0.000000e+00> : vector<2x8x8xf32>
    %233 = tpu.matmul %231, %232, %cst_82 {dimension_numbers = #tpu.dot_dimension_numbers<[2], [2], [1], [1], [0, 0, 0, 1, 1, 1], [0], [0]>} : vector<2x8x8xbf16>, vector<2x8x8xbf16>, vector<2x8x8xf32> -> vector<2x8x8xf32>
    "tpu.trace_stop"() : () -> ()
    %234 = vector.broadcast %1 : vector<2x1x8xf32> to vector<2x8x8xf32>
    %235 = arith.addf %233, %234 : vector<2x8x8xf32>
    %cst_83 = arith.constant dense<0xFF800000> : vector<2x8xf32>
    %236 = vector.multi_reduction <maximumf>, %235, %cst_83 [2] : vector<2x8x8xf32> to vector<2x8xf32>
    %237 = vector.shape_cast %236 : vector<2x8xf32> to vector<2x8x1xf32>
    %238 = vector.broadcast %237 : vector<2x8x1xf32> to vector<2x8x8xf32>
    %239 = arith.subf %235, %238 : vector<2x8x8xf32>
    %240 = math.exp %239 : vector<2x8x8xf32>
    %cst_84 = arith.constant dense<0.000000e+00> : vector<2x8xf32>
    %241 = vector.multi_reduction <add>, %240, %cst_84 [2] : vector<2x8x8xf32> to vector<2x8xf32>
    %242 = vector.shape_cast %241 : vector<2x8xf32> to vector<2x8x1xf32>
    %243 = vector.broadcast %242 : vector<2x8x1xf32> to vector<2x8x8xf32>
    %244 = arith.divf %240, %243 : vector<2x8x8xf32>
    %245 = arith.truncf %244 : vector<2x8x8xf32> to vector<2x8x8xbf16>
    %246 = arith.truncf %230 : vector<2x8x8xf32> to vector<2x8x8xbf16>
    "tpu.trace_start"() <{level = 10 : i32, message = "bqk,bkd->bqd"}> : () -> ()
    %cst_85 = arith.constant dense<0.000000e+00> : vector<2x8x8xf32>
    %247 = tpu.matmul %245, %246, %cst_85 {dimension_numbers = #tpu.dot_dimension_numbers<[2], [1], [1], [2], [0, 0, 0, 1, 1, 2], [0], [0]>} : vector<2x8x8xbf16>, vector<2x8x8xbf16>, vector<2x8x8xf32> -> vector<2x8x8xf32>
    "tpu.trace_stop"() : () -> ()
    %248 = vector.shape_cast %247 : vector<2x8x8xf32> to vector<16x8xf32>
    %249 = vector.extract_strided_slice %200 {offsets = [0, 16], sizes = [16, 8], strides = [1, 1]} : vector<16x96xf32> to vector<16x8xf32>
    %250 = vector.shape_cast %249 : vector<16x8xf32> to vector<2x8x8xf32>
    %251 = vector.extract_strided_slice %200 {offsets = [0, 48], sizes = [16, 8], strides = [1, 1]} : vector<16x96xf32> to vector<16x8xf32>
    %252 = vector.shape_cast %251 : vector<16x8xf32> to vector<2x8x8xf32>
    %253 = vector.extract_strided_slice %200 {offsets = [0, 80], sizes = [16, 8], strides = [1, 1]} : vector<16x96xf32> to vector<16x8xf32>
    %254 = vector.shape_cast %253 : vector<16x8xf32> to vector<2x8x8xf32>
    %255 = arith.truncf %250 : vector<2x8x8xf32> to vector<2x8x8xbf16>
    %256 = arith.truncf %252 : vector<2x8x8xf32> to vector<2x8x8xbf16>
    "tpu.trace_start"() <{level = 10 : i32, message = "bqd,bkd->bqk"}> : () -> ()
    %cst_86 = arith.constant dense<0.000000e+00> : vector<2x8x8xf32>
    %257 = tpu.matmul %255, %256, %cst_86 {dimension_numbers = #tpu.dot_dimension_numbers<[2], [2], [1], [1], [0, 0, 0, 1, 1, 1], [0], [0]>} : vector<2x8x8xbf16>, vector<2x8x8xbf16>, vector<2x8x8xf32> -> vector<2x8x8xf32>
    "tpu.trace_stop"() : () -> ()
    %258 = vector.broadcast %1 : vector<2x1x8xf32> to vector<2x8x8xf32>
    %259 = arith.addf %257, %258 : vector<2x8x8xf32>
    %cst_87 = arith.constant dense<0xFF800000> : vector<2x8xf32>
    %260 = vector.multi_reduction <maximumf>, %259, %cst_87 [2] : vector<2x8x8xf32> to vector<2x8xf32>
    %261 = vector.shape_cast %260 : vector<2x8xf32> to vector<2x8x1xf32>
    %262 = vector.broadcast %261 : vector<2x8x1xf32> to vector<2x8x8xf32>
    %263 = arith.subf %259, %262 : vector<2x8x8xf32>
    %264 = math.exp %263 : vector<2x8x8xf32>
    %cst_88 = arith.constant dense<0.000000e+00> : vector<2x8xf32>
    %265 = vector.multi_reduction <add>, %264, %cst_88 [2] : vector<2x8x8xf32> to vector<2x8xf32>
    %266 = vector.shape_cast %265 : vector<2x8xf32> to vector<2x8x1xf32>
    %267 = vector.broadcast %266 : vector<2x8x1xf32> to vector<2x8x8xf32>
    %268 = arith.divf %264, %267 : vector<2x8x8xf32>
    %269 = arith.truncf %268 : vector<2x8x8xf32> to vector<2x8x8xbf16>
    %270 = arith.truncf %254 : vector<2x8x8xf32> to vector<2x8x8xbf16>
    "tpu.trace_start"() <{level = 10 : i32, message = "bqk,bkd->bqd"}> : () -> ()
    %cst_89 = arith.constant dense<0.000000e+00> : vector<2x8x8xf32>
    %271 = tpu.matmul %269, %270, %cst_89 {dimension_numbers = #tpu.dot_dimension_numbers<[2], [1], [1], [2], [0, 0, 0, 1, 1, 2], [0], [0]>} : vector<2x8x8xbf16>, vector<2x8x8xbf16>, vector<2x8x8xf32> -> vector<2x8x8xf32>
    "tpu.trace_stop"() : () -> ()
    %272 = vector.shape_cast %271 : vector<2x8x8xf32> to vector<16x8xf32>
    %273 = vector.extract_strided_slice %200 {offsets = [0, 24], sizes = [16, 8], strides = [1, 1]} : vector<16x96xf32> to vector<16x8xf32>
    %274 = vector.shape_cast %273 : vector<16x8xf32> to vector<2x8x8xf32>
    %275 = vector.extract_strided_slice %200 {offsets = [0, 56], sizes = [16, 8], strides = [1, 1]} : vector<16x96xf32> to vector<16x8xf32>
    %276 = vector.shape_cast %275 : vector<16x8xf32> to vector<2x8x8xf32>
    %277 = vector.extract_strided_slice %200 {offsets = [0, 88], sizes = [16, 8], strides = [1, 1]} : vector<16x96xf32> to vector<16x8xf32>
    %278 = vector.shape_cast %277 : vector<16x8xf32> to vector<2x8x8xf32>
    %279 = arith.truncf %274 : vector<2x8x8xf32> to vector<2x8x8xbf16>
    %280 = arith.truncf %276 : vector<2x8x8xf32> to vector<2x8x8xbf16>
    "tpu.trace_start"() <{level = 10 : i32, message = "bqd,bkd->bqk"}> : () -> ()
    %cst_90 = arith.constant dense<0.000000e+00> : vector<2x8x8xf32>
    %281 = tpu.matmul %279, %280, %cst_90 {dimension_numbers = #tpu.dot_dimension_numbers<[2], [2], [1], [1], [0, 0, 0, 1, 1, 1], [0], [0]>} : vector<2x8x8xbf16>, vector<2x8x8xbf16>, vector<2x8x8xf32> -> vector<2x8x8xf32>
    "tpu.trace_stop"() : () -> ()
    %282 = vector.broadcast %1 : vector<2x1x8xf32> to vector<2x8x8xf32>
    %283 = arith.addf %281, %282 : vector<2x8x8xf32>
    %cst_91 = arith.constant dense<0xFF800000> : vector<2x8xf32>
    %284 = vector.multi_reduction <maximumf>, %283, %cst_91 [2] : vector<2x8x8xf32> to vector<2x8xf32>
    %285 = vector.shape_cast %284 : vector<2x8xf32> to vector<2x8x1xf32>
    %286 = vector.broadcast %285 : vector<2x8x1xf32> to vector<2x8x8xf32>
    %287 = arith.subf %283, %286 : vector<2x8x8xf32>
    %288 = math.exp %287 : vector<2x8x8xf32>
    %cst_92 = arith.constant dense<0.000000e+00> : vector<2x8xf32>
    %289 = vector.multi_reduction <add>, %288, %cst_92 [2] : vector<2x8x8xf32> to vector<2x8xf32>
    %290 = vector.shape_cast %289 : vector<2x8xf32> to vector<2x8x1xf32>
    %291 = vector.broadcast %290 : vector<2x8x1xf32> to vector<2x8x8xf32>
    %292 = arith.divf %288, %291 : vector<2x8x8xf32>
    %293 = arith.truncf %292 : vector<2x8x8xf32> to vector<2x8x8xbf16>
    %294 = arith.truncf %278 : vector<2x8x8xf32> to vector<2x8x8xbf16>
    "tpu.trace_start"() <{level = 10 : i32, message = "bqk,bkd->bqd"}> : () -> ()
    %cst_93 = arith.constant dense<0.000000e+00> : vector<2x8x8xf32>
    %295 = tpu.matmul %293, %294, %cst_93 {dimension_numbers = #tpu.dot_dimension_numbers<[2], [1], [1], [2], [0, 0, 0, 1, 1, 2], [0], [0]>} : vector<2x8x8xbf16>, vector<2x8x8xbf16>, vector<2x8x8xf32> -> vector<2x8x8xf32>
    "tpu.trace_stop"() : () -> ()
    %296 = vector.shape_cast %295 : vector<2x8x8xf32> to vector<16x8xf32>
    %297 = tpu.concatenate %224, %248, %272, %296 in 1 : vector<16x8xf32>, vector<16x8xf32>, vector<16x8xf32>, vector<16x8xf32> -> vector<16x32xf32>
    %298 = arith.truncf %297 : vector<16x32xf32> to vector<16x32xbf16>
    %c1_94 = arith.constant 1 : index
    %c0_95 = arith.constant 0 : index
    %c0_96 = arith.constant 0 : index
    %299 = vector.load %arg4[%c1_94, %c0_95, %c0_96] : memref<2x32x32xbf16, #tpu.memory_space<vmem>>, vector<1x32x32xbf16>
    %300 = vector.shape_cast %299 : vector<1x32x32xbf16> to vector<32x32xbf16>
    %cst_97 = arith.constant dense<0.000000e+00> : vector<16x32xf32>
    %301 = tpu.matmul %298, %300, %cst_97 {dimension_numbers = #tpu.dot_dimension_numbers<[1], [0], [0], [1], [0, 0, 1, 1], [], []>} : vector<16x32xbf16>, vector<32x32xbf16>, vector<16x32xf32> -> vector<16x32xf32>
    %c1_98 = arith.constant 1 : index
    %c0_99 = arith.constant 0 : index
    %c0_100 = arith.constant 0 : index
    %302 = vector.load %arg5[%c1_98, %c0_99, %c0_100] : memref<2x1x32xf32, #tpu.memory_space<vmem>>, vector<1x1x32xf32>
    %303 = vector.shape_cast %302 : vector<1x1x32xf32> to vector<1x32xf32>
    %304 = vector.broadcast %303 : vector<1x32xf32> to vector<16x32xf32>
    %305 = arith.addf %301, %304 : vector<16x32xf32>
    %306 = arith.addf %192, %305 : vector<16x32xf32>
    %cst_101 = arith.constant dense<0.000000e+00> : vector<16xf32>
    %307 = vector.multi_reduction <add>, %306, %cst_101 [1] : vector<16x32xf32> to vector<16xf32>
    %308 = vector.shape_cast %307 : vector<16xf32> to vector<16x1xf32>
    %cst_102 = arith.constant 3.200000e+01 : f32
    %309 = vector.broadcast %cst_102 : f32 to vector<16x1xf32>
    %310 = arith.divf %308, %309 : vector<16x1xf32>
    %311 = vector.broadcast %310 : vector<16x1xf32> to vector<16x32xf32>
    %312 = arith.subf %306, %311 : vector<16x32xf32>
    %313 = arith.mulf %312, %312 : vector<16x32xf32>
    %cst_103 = arith.constant dense<0.000000e+00> : vector<16xf32>
    %314 = vector.multi_reduction <add>, %313, %cst_103 [1] : vector<16x32xf32> to vector<16xf32>
    %315 = vector.shape_cast %314 : vector<16xf32> to vector<16x1xf32>
    %cst_104 = arith.constant 3.200000e+01 : f32
    %316 = vector.broadcast %cst_104 : f32 to vector<16x1xf32>
    %317 = arith.divf %315, %316 : vector<16x1xf32>
    %318 = vector.broadcast %310 : vector<16x1xf32> to vector<16x32xf32>
    %319 = arith.subf %306, %318 : vector<16x32xf32>
    %cst_105 = arith.constant 9.99999974E-6 : f32
    %320 = vector.broadcast %cst_105 : f32 to vector<16x1xf32>
    %321 = arith.addf %317, %320 : vector<16x1xf32>
    %322 = math.rsqrt %321 : vector<16x1xf32>
    %323 = vector.broadcast %322 : vector<16x1xf32> to vector<16x32xf32>
    %324 = arith.mulf %319, %323 : vector<16x32xf32>
    %c1_106 = arith.constant 1 : index
    %c0_107 = arith.constant 0 : index
    %c0_108 = arith.constant 0 : index
    %325 = vector.load %arg6[%c1_106, %c0_107, %c0_108] : memref<2x1x32xf32, #tpu.memory_space<vmem>>, vector<1x1x32xf32>
    %326 = vector.shape_cast %325 : vector<1x1x32xf32> to vector<1x32xf32>
    %327 = vector.broadcast %326 : vector<1x32xf32> to vector<16x32xf32>
    %328 = arith.mulf %324, %327 : vector<16x32xf32>
    %c1_109 = arith.constant 1 : index
    %c0_110 = arith.constant 0 : index
    %c0_111 = arith.constant 0 : index
    %329 = vector.load %arg7[%c1_109, %c0_110, %c0_111] : memref<2x1x32xf32, #tpu.memory_space<vmem>>, vector<1x1x32xf32>
    %330 = vector.shape_cast %329 : vector<1x1x32xf32> to vector<1x32xf32>
    %331 = vector.broadcast %330 : vector<1x32xf32> to vector<16x32xf32>
    %332 = arith.addf %328, %331 : vector<16x32xf32>
    %333 = arith.truncf %332 : vector<16x32xf32> to vector<16x32xbf16>
    %c1_112 = arith.constant 1 : index
    %c0_113 = arith.constant 0 : index
    %c0_114 = arith.constant 0 : index
    %334 = vector.load %arg8[%c1_112, %c0_113, %c0_114] : memref<2x32x2048xbf16, #tpu.memory_space<vmem>>, vector<1x32x2048xbf16>
    %335 = vector.shape_cast %334 : vector<1x32x2048xbf16> to vector<32x2048xbf16>
    %cst_115 = arith.constant dense<0.000000e+00> : vector<16x2048xf32>
    %336 = tpu.matmul %333, %335, %cst_115 {dimension_numbers = #tpu.dot_dimension_numbers<[1], [0], [0], [1], [0, 0, 1, 1], [], []>} : vector<16x32xbf16>, vector<32x2048xbf16>, vector<16x2048xf32> -> vector<16x2048xf32>
    %c1_116 = arith.constant 1 : index
    %c0_117 = arith.constant 0 : index
    %c0_118 = arith.constant 0 : index
    %337 = vector.load %arg9[%c1_116, %c0_117, %c0_118] : memref<2x1x2048xf32, #tpu.memory_space<vmem>>, vector<1x1x2048xf32>
    %338 = vector.shape_cast %337 : vector<1x1x2048xf32> to vector<1x2048xf32>
    %339 = vector.broadcast %338 : vector<1x2048xf32> to vector<16x2048xf32>
    %340 = arith.addf %336, %339 : vector<16x2048xf32>
    %cst_119 = arith.constant 5.000000e-01 : f32
    %341 = vector.broadcast %cst_119 : f32 to vector<16x2048xf32>
    %342 = arith.mulf %341, %340 : vector<16x2048xf32>
    %cst_120 = arith.constant 0.707106769 : f32
    %343 = vector.broadcast %cst_120 : f32 to vector<16x2048xf32>
    %344 = arith.mulf %340, %343 : vector<16x2048xf32>
    %345 = math.erf %344 : vector<16x2048xf32>
    %cst_121 = arith.constant 1.000000e+00 : f32
    %346 = vector.broadcast %cst_121 : f32 to vector<16x2048xf32>
    %347 = arith.addf %346, %345 : vector<16x2048xf32>
    %348 = arith.mulf %342, %347 : vector<16x2048xf32>
    %349 = arith.truncf %348 : vector<16x2048xf32> to vector<16x2048xbf16>
    %c1_122 = arith.constant 1 : index
    %c0_123 = arith.constant 0 : index
    %c0_124 = arith.constant 0 : index
    %350 = vector.load %arg10[%c1_122, %c0_123, %c0_124] : memref<2x2048x32xbf16, #tpu.memory_space<vmem>>, vector<1x2048x32xbf16>
    %351 = vector.shape_cast %350 : vector<1x2048x32xbf16> to vector<2048x32xbf16>
    %cst_125 = arith.constant dense<0.000000e+00> : vector<16x32xf32>
    %352 = tpu.matmul %349, %351, %cst_125 {dimension_numbers = #tpu.dot_dimension_numbers<[1], [0], [0], [1], [0, 0, 1, 1], [], []>} : vector<16x2048xbf16>, vector<2048x32xbf16>, vector<16x32xf32> -> vector<16x32xf32>
    %c1_126 = arith.constant 1 : index
    %c0_127 = arith.constant 0 : index
    %c0_128 = arith.constant 0 : index
    %353 = vector.load %arg11[%c1_126, %c0_127, %c0_128] : memref<2x1x32xf32, #tpu.memory_space<vmem>>, vector<1x1x32xf32>
    %354 = vector.shape_cast %353 : vector<1x1x32xf32> to vector<1x32xf32>
    %355 = vector.broadcast %354 : vector<1x32xf32> to vector<16x32xf32>
    %356 = arith.addf %352, %355 : vector<16x32xf32>
    %357 = arith.addf %332, %356 : vector<16x32xf32>
    %cst_129 = arith.constant dense<0.000000e+00> : vector<16xf32>
    %358 = vector.multi_reduction <add>, %357, %cst_129 [1] : vector<16x32xf32> to vector<16xf32>
    %359 = vector.shape_cast %358 : vector<16xf32> to vector<16x1xf32>
    %cst_130 = arith.constant 3.200000e+01 : f32
    %360 = vector.broadcast %cst_130 : f32 to vector<16x1xf32>
    %361 = arith.divf %359, %360 : vector<16x1xf32>
    %362 = vector.broadcast %361 : vector<16x1xf32> to vector<16x32xf32>
    %363 = arith.subf %357, %362 : vector<16x32xf32>
    %364 = arith.mulf %363, %363 : vector<16x32xf32>
    %cst_131 = arith.constant dense<0.000000e+00> : vector<16xf32>
    %365 = vector.multi_reduction <add>, %364, %cst_131 [1] : vector<16x32xf32> to vector<16xf32>
    %366 = vector.shape_cast %365 : vector<16xf32> to vector<16x1xf32>
    %cst_132 = arith.constant 3.200000e+01 : f32
    %367 = vector.broadcast %cst_132 : f32 to vector<16x1xf32>
    %368 = arith.divf %366, %367 : vector<16x1xf32>
    %369 = vector.broadcast %361 : vector<16x1xf32> to vector<16x32xf32>
    %370 = arith.subf %357, %369 : vector<16x32xf32>
    %cst_133 = arith.constant 9.99999974E-6 : f32
    %371 = vector.broadcast %cst_133 : f32 to vector<16x1xf32>
    %372 = arith.addf %368, %371 : vector<16x1xf32>
    %373 = math.rsqrt %372 : vector<16x1xf32>
    %374 = vector.broadcast %373 : vector<16x1xf32> to vector<16x32xf32>
    %375 = arith.mulf %370, %374 : vector<16x32xf32>
    %c1_134 = arith.constant 1 : index
    %c0_135 = arith.constant 0 : index
    %c0_136 = arith.constant 0 : index
    %376 = vector.load %arg12[%c1_134, %c0_135, %c0_136] : memref<2x1x32xf32, #tpu.memory_space<vmem>>, vector<1x1x32xf32>
    %377 = vector.shape_cast %376 : vector<1x1x32xf32> to vector<1x32xf32>
    %378 = vector.broadcast %377 : vector<1x32xf32> to vector<16x32xf32>
    %379 = arith.mulf %375, %378 : vector<16x32xf32>
    %c1_137 = arith.constant 1 : index
    %c0_138 = arith.constant 0 : index
    %c0_139 = arith.constant 0 : index
    %380 = vector.load %arg13[%c1_137, %c0_138, %c0_139] : memref<2x1x32xf32, #tpu.memory_space<vmem>>, vector<1x1x32xf32>
    %381 = vector.shape_cast %380 : vector<1x1x32xf32> to vector<1x32xf32>
    %382 = vector.broadcast %381 : vector<1x32xf32> to vector<16x32xf32>
    %383 = arith.addf %379, %382 : vector<16x32xf32>
    %384 = arith.truncf %383 : vector<16x32xf32> to vector<16x32xbf16>
    %c0_140 = arith.constant 0 : index
    %c0_141 = arith.constant 0 : index
    %385 = vector.load %arg14[%c0_140, %c0_141] : memref<32x128xbf16, #tpu.memory_space<vmem>>, vector<32x128xbf16>
    %cst_142 = arith.constant dense<0.000000e+00> : vector<16x128xf32>
    %386 = tpu.matmul %384, %385, %cst_142 {dimension_numbers = #tpu.dot_dimension_numbers<[1], [0], [0], [1], [0, 0, 1, 1], [], []>} : vector<16x32xbf16>, vector<32x128xbf16>, vector<16x128xf32> -> vector<16x128xf32>
    %c0_143 = arith.constant 0 : index
    %c0_144 = arith.constant 0 : index
    %387 = vector.load %arg15[%c0_143, %c0_144] : memref<1x128xf32, #tpu.memory_space<vmem>>, vector<1x128xf32>
    %388 = vector.broadcast %387 : vector<1x128xf32> to vector<16x128xf32>
    %389 = arith.addf %386, %388 : vector<16x128xf32>
    %c0_145 = arith.constant 0 : index
    %c0_146 = arith.constant 0 : index
    %390 = vector.load %arg16[%c0_145, %c0_146] : memref<16x128xf32, #tpu.memory_space<vmem>>, vector<16x128xf32>
    tpu.vector_store %arg16[%c0_145, %c0_146], %389 {strides = array<i32>} : memref<16x128xf32, #tpu.memory_space<vmem>>, vector<16x128xf32>,
    return
  }
}

</mosaic_0001>

<bundles_post_ra>
// kernel: transformer_classifier_forward.1
= control target key start
LH: loop header
LB: loop body
LE: loop exit
PB: predicated region body
PF: predicated region fallthrough
CT: control target
= control target key end

     0   :  { %v10906_v0 = vmov 0.0   ;;  %vm8648_vm0 = vmmov 0   ;;  %vm82_vm1 = vcmask 261120   ;;  %vm144_vm2 = vcmask 64512   ;;  %s8650_s21 = smov 64   ;;  %s8651_s22 = smov 88   ;;  %s10871_s2 = inlined_call_operand.vmem [shape: bf16[2,32,96], index: 2, kind: input, shape index: {}]   ;;  %s10872_s0 = inlined_call_operand.vmem [shape: f32[16,32], index: 0, kind: input, shape index: {}]   ;;  %s10873_s3 = inlined_call_operand.vmem [shape: f32[2,1,96], index: 3, kind: input, shape index: {}]   ;;  %s10874_s1 = inlined_call_operand.vmem [shape: f32[2,1,8], index: 1, kind: input, shape index: {}]   ;;  %s10875_s4 = inlined_call_operand.vmem [shape: bf16[2,32,32], index: 4, kind: input, shape index: {}]   ;;  %s10876_s5 = inlined_call_operand.vmem [shape: f32[2,1,32], index: 5, kind: input, shape index: {}]   ;;  %s10877_s8 = inlined_call_operand.vmem [shape: bf16[2,32,2048], index: 8, kind: input, shape index: {}]   ;;  %s10878_s10 = inlined_call_operand.vmem [shape: bf16[2,2048,32], index: 10, kind: input, shape index: {}]   ;;  %s10879_s6 = inlined_call_operand.vmem [shape: f32[2,1,32], index: 6, kind: input, shape index: {}]   ;;  %s10880_s7 = inlined_call_operand.vmem [shape: f32[2,1,32], index: 7, kind: input, shape index: {}]   ;;  %s10881_s9 = inlined_call_operand.vmem [shape: f32[2,1,2048], index: 9, kind: input, shape index: {}]   ;;  %s10882_s11 = inlined_call_operand.vmem [shape: f32[2,1,32], index: 11, kind: input, shape index: {}]   ;;  %s10883_s12 = inlined_call_operand.vmem [shape: f32[2,1,32], index: 12, kind: input, shape index: {}]   ;;  %s10884_s13 = inlined_call_operand.vmem [shape: f32[2,1,32], index: 13, kind: input, shape index: {}]   ;;  %s10885_s14 = inlined_call_operand.vmem [shape: bf16[32,128], index: 14, kind: input, shape index: {}]   ;;  %s10886_s15 = inlined_call_operand.vmem [shape: f32[1,128], index: 15, kind: input, shape index: {}]   ;;  %s10887_s16 = inlined_call_operand.vmem [shape: f32[16,128], index: 16, kind: output, shape index: {}]  }
   0x1   :  { %10918 = sst [smem:[#allocation7_spill]] %s10871_s2  ;;  %7892 = vmatprep.subr.bf16.mxu0 %v10906_v0  ;;  %7896 = vmatprep.mubr.msk.bf16.mxu0 %vm8648_vm0, %v10906_v0  ;;  %v8764_v3 = vld [vmem:[%s10872_s0] sm:$0xff]  ;;  %v8769_v4 = vld [vmem:[%s10872_s0 + $0x8] sm:$0xff]  ;;  %s8649_s0 = smov 96   ;;  %vm269_vm3 = vcmask 1043456   ;;  %vm1047_vm4 = vcmask 130048  }
   0x2   :  { %s10919_s23 = sld [smem:[#allocation7_spill]]  ;;  %7900 = vmatprep.subr.bf16.mxu1 %v10906_v0  ;;  %7902 = vmatprep.mubr.msk.bf16.mxu1 %vm8648_vm0, %v10906_v0  ;;  %v58_v5 = vpack.c.bf16 %v8769_v4, %v8764_v3  ;;  %v6756_v6 = vld [vmem:[%s10873_s3] ss:$0 sm:$0xff]  ;;  %v8810_v24 = vld [vmem:[%s10874_s1 + $0x1] ss:$0 sm:$0xff]  ;;  %s8652_s24 = smov 120  }
   0x3   :  { %v8804_v19 = vld [vmem:[%s10874_s1] ss:$0 sm:$0xff]  ;;  %s8653_s25 = smov 56   ;;  %s10902_s26 = smov 80   ;;  %vm1050_vm5 = vcmask 195584  }
   0x4   :  { %s10900_s27 = smov 112   ;;  %s10898_s28 = smov 48  }
   0x5   :  { %s10896_s29 = smov 72   ;;  %s10894_s30 = smov 104  }
   0x6   :  { %s10891_s2 = smov 40   ;;  %s10890_s17 = smov 8  }
   0x7   :  { %s10889_s18 = smov 16  }
   0x8   :  { %v8171_v1 = vld [vmem:[%s10919_s23] sm:$0xff]   ;;  %v8172_v2 = vld [vmem:[%s10919_s23 + $0x8] sm:$0xff]  }
   0x9   :  { %7893 = vmatpush3.bf16.msra.mxu0 %v8171_v1 }
   0xa   :  { %7894 = vmatprep.subr.bf16.mxu0 %v10906_v0 }
   0xd   :  { %7895 = vmatpush3.bf16.msra.mxu0 %v8172_v2 }
   0xe   :  { %7906 = vmatprep.subr.bf16.mxu0 %v10906_v0 }
  0x10   :  { %7897 = vmatmul.mubr.msk.bf16.vlgmr.msra.gmra.mrb[0].mxu0 %vm82_vm1, %v58_v5 }
  0x11   :  { %7908 = vmatprep.mubr.msk.bf16.mxu0 %vm8648_vm0, %v10906_v0 }
  0xe3   :  { %v120_v7 = vpop.f32.mrb[0].mxu0 }
  0xe4   :  { %v121_v8 = vadd.f32 %v6756_v6, %v120_v7  ;;  %v7898_v9 = vpop.f32.mrb[1].mxu0 }
  0xe5   :  { %v123_v10 = vpop.f32.mrb[2].mxu0 }
  0xe6   :  { %v8781_v11 = vpack.c.bf16 %v121_v8, %v121_v8  ;;  %v124_v12 = vadd.f32 %v6756_v6, %v123_v10  ;;  %v7899_v13 = vpop.f32.mrb[3].mxu0 }
  0xe8   :  { %142 = vrot.lane.b32.xlu0 %v8781_v11, %s8649_s0  ;;  %v8785_v14 = vpack.c.bf16 %v124_v12, %v124_v12 }
  0xec   :  { %192 = vrot.lane.b32.xlu0 %v8785_v14, %s8649_s0 }
 0x15a   :  { %v143_v15 = vpop.permute.xlu0 %142 }
 0x15b   :  { %v149_v16 = vsel %vm144_vm2, %v143_v15, 0 }
 0x15c   :  { %7901 = vmatpush3.bf16.xpose.msra.mxu1 %v149_v16 }
 0x15d   :  { %7912 = vmatprep.subr.bf16.mxu1 %v10906_v0 }
 0x15e   :  { %v193_v17 = vpop.permute.xlu0 %192 }
 0x15f   :  { %v198_v18 = vsel %vm144_vm2, %v193_v17, 0 }
 0x160   :  { %7907 = vmatpush3.bf16.xpose.msra.mxu0 %v198_v18 }
 0x161   :  { %7918 = vmatprep.subr.bf16.mxu0 %v10906_v0 }
 0x163   :  { %7903 = vmatmul.mubr.msk.bf16.vlgmr.msra.gmra.mrb[0].mxu1 %vm144_vm2, %v8781_v11 }
 0x164   :  { %7914 = vmatprep.mubr.msk.bf16.mxu1 %vm8648_vm0, %v10906_v0 }
 0x167   :  { %7909 = vmatmul.mubr.msk.bf16.vlgmr.msra.gmra.mrb[4].mxu0 %vm144_vm2, %v8785_v14 }
 0x168   :  { %7920 = vmatprep.mubr.msk.bf16.mxu0 %vm8648_vm0, %v10906_v0 }
 0x236   :  { %v185_v20 = vpop.f32.mrb[0].mxu1 }
 0x237   :  { %v186_v21 = vadd.f32 %v8804_v19, %v185_v20  ;;  %v7904_v22 = vpop.f32.mrb[1].mxu1 }
 0x238   :  { %v188_v23 = vpop.f32.mrb[2].mxu1 }
 0x239   :  { %v7905_v25 = vpop.f32.mrb[3].mxu1  ;;  %v240_v26 = vsel %vm144_vm2, %v186_v21, -inf }
 0x23a   :  { %241 = vmax.xlane.f32.xlu1 %v240_v26  ;;  %v234_v27 = vpop.f32.mrb[4].mxu0 }
 0x23b   :  { %v235_v28 = vadd.f32 %v8810_v24, %v234_v27  ;;  %v7910_v29 = vpop.f32.mrb[5].mxu0 }
 0x23c   :  { %v237_v30 = vpop.f32.mrb[6].mxu0 }
 0x23d   :  { %v7911_v31 = vpop.f32.mrb[7].mxu0  ;;  %v243_v32 = vsel %vm144_vm2, %v235_v28, -inf }
 0x23e   :  { %244 = vmax.xlane.f32.xlu1 %v243_v32 }
 0x24f   :  { %264 = vrot.lane.b32.xlu1 %v8781_v11, %s8650_s21 }
 0x253   :  { %313 = vrot.lane.b32.xlu1 %v8785_v14, %s8650_s21 }
 0x257   :  { %363 = vrot.lane.b32.xlu1 %v8781_v11, %s8651_s22 }
 0x2c7   :  { %v242_v33 = vpop.xlane.xlu1 %241 }
 0x2c8   :  { %v246_v34 = vsub.f32 %v186_v21, %v242_v33 }
 0x2ca   :  { %v248_v35 = vmul.f32 1.442695, %v246_v34 }
 0x2cb   :  { %v245_v36 = vpop.xlane.xlu1 %244 }
 0x2cc   :  { %8437 = vpow2.f32 %v248_v35  ;;  %v247_v37 = vsub.f32 %v235_v28, %v245_v36 }
 0x2ce   :  { %v250_v38 = vmul.f32 1.442695, %v247_v37 }
 0x2cf   :  { %v265_v39 = vpop.permute.xlu1 %264 }
 0x2d0   :  { %8439 = vpow2.f32 %v250_v38  ;;  %v271_v40 = vsel %vm269_vm3, %v265_v39, 0 }
 0x2d1   :  { %7913 = vmatpush3.bf16.msra.mxu1 %v271_v40 }
 0x2d2   :  { %7924 = vmatprep.subr.bf16.mxu1 %v10906_v0 }
 0x2d3   :  { %v314_v41 = vpop.permute.xlu1 %313 }
 0x2d4   :  { %v319_v42 = vsel %vm269_vm3, %v314_v41, 0 }
 0x2d5   :  { %7919 = vmatpush3.bf16.msra.mxu0 %v319_v42 }
 0x2d6   :  { %v8438_v43 = vpop.eup %8437  ;;  %7930 = vmatprep.subr.bf16.mxu0 %v10906_v0 }
 0x2d7   :  { %v252_v44 = vsel %vm144_vm2, %v8438_v43, 0.0  ;;  %v364_v47 = vpop.permute.xlu1 %363 }
 0x2d8   :  { %253 = vadd.xlane.f32.xlu0 %v252_v44  ;;  %v369_v54 = vsel %vm144_vm2, %v364_v47, 0 }
 0x2da   :  { %v8440_v45 = vpop.eup %8439 }
 0x2db   :  { %v255_v46 = vsel %vm144_vm2, %v8440_v45, 0.0 }
 0x2dc   :  { %256 = vadd.xlane.f32.xlu1 %v255_v46 }
 0x2ed   :  { %413 = vrot.lane.b32.xlu1 %v8785_v14, %s8651_s22 }
 0x2ee   :  { %361 = vrot.lane.b32.xlu0 %v8781_v11, %s8652_s24 }
 0x2f1   :  { %411 = vrot.lane.b32.xlu1 %v8785_v14, %s8652_s24 }
 0x365   :  { %v254_v48 = vpop.xlane.xlu0 %253 }
 0x366   :  { %8441 = vrcp.f32 %v254_v48 }
 0x369   :  { %v257_v49 = vpop.xlane.xlu1 %256  ;;  %v362_v59 = vpop.permute.xlu0 %361 }
 0x36a   :  { %8443 = vrcp.f32 %v257_v49 }
 0x36d   :  { %v414_v56 = vpop.permute.xlu1 %413 }
 0x36e   :  { %v419_v58 = vsel %vm144_vm2, %v414_v56, 0 }
 0x370   :  { %v8442_v50 = vpop.eup %8441 }
 0x371   :  { %v259_v51 = vmul.f32 %v8442_v50, %v8438_v43  ;;  %v412_v60 = vpop.permute.xlu1 %411 }
 0x373   :  { %v262_v52 = vpack.c.bf16 %v259_v51, %v259_v51 }
 0x374   :  { %v8444_v53 = vpop.eup %8443 }
 0x375   :  { %v261_v55 = vmul.f32 %v8444_v53, %v8440_v45  ;;  %7915 = vmatmul.mubr.msk.bf16.vlgmr.msra.gmra.mrb[4].mxu1 %vm144_vm2, %v262_v52 }
 0x376   :  { %7925 = vmatpush3.bf16.xpose.msra.mxu1 %v369_v54  ;;  %7926 = vmatprep.mubr.msk.bf16.mxu1 %vm8648_vm0, %v10906_v0 }
 0x377   :  { %v263_v57 = vpack.c.bf16 %v261_v55, %v261_v55  ;;  %7936 = vmatprep.subr.bf16.mxu1 %v10906_v0 }
 0x379   :  { %7921 = vmatmul.mubr.msk.bf16.vlgmr.msra.gmra.mrb[8].mxu0 %vm144_vm2, %v263_v57 }
 0x37a   :  { %7931 = vmatpush3.bf16.xpose.msra.mxu0 %v419_v58  ;;  %7932 = vmatprep.mubr.msk.bf16.mxu0 %vm8648_vm0, %v10906_v0 }
 0x37b   :  { %7942 = vmatprep.subr.bf16.mxu0 %v10906_v0 }
 0x37d   :  { %7927 = vmatmul.mubr.msk.bf16.vlgmr.msra.gmra.mrb[8].mxu1 %vm144_vm2, %v362_v59 }
 0x37e   :  { %7938 = vmatprep.mubr.msk.bf16.mxu1 %vm8648_vm0, %v10906_v0 }
 0x381   :  { %7933 = vmatmul.mubr.msk.bf16.vlgmr.msra.gmra.mrb[12].mxu0 %vm144_vm2, %v412_v60 }
 0x382   :  { %7944 = vmatprep.mubr.msk.bf16.mxu0 %vm8648_vm0, %v10906_v0 }
 0x448   :  { %v8849_v61 = vpop.f32.mrb[4].mxu1 }
 0x449   :  { %v7916_v62 = vpop.f32.mrb[5].mxu1 }
 0x44a   :  { %v310_v63 = vpop.f32.mrb[6].mxu1 }
 0x44b   :  { %v7917_v1 = vpop.f32.mrb[7].mxu1 }
 0x44c   :  { %v8851_v2 = vpop.f32.mrb[8].mxu0 }
 0x44d   :  { %v7922_v5 = vpop.f32.mrb[9].mxu0 }
 0x44e   :  { %v358_v6 = vpop.f32.mrb[10].mxu0 }
 0x44f   :  { %v7923_v7 = vpop.f32.mrb[11].mxu0 }
 0x450   :  { %v405_v8 = vpop.f32.mrb[8].mxu1 }
 0x451   :  { %v406_v9 = vadd.f32 %v8804_v19, %v405_v8  ;;  %v7928_v10 = vpop.f32.mrb[9].mxu1 }
 0x452   :  { %v408_v12 = vpop.f32.mrb[10].mxu1 }
 0x453   :  { %v7929_v13 = vpop.f32.mrb[11].mxu1  ;;  %v461_v15 = vsel %vm144_vm2, %v406_v9, -inf }
 0x454   :  { %462 = vmax.xlane.f32.xlu1 %v461_v15  ;;  %v455_v16 = vpop.f32.mrb[12].mxu0 }
 0x455   :  { %v456_v17 = vadd.f32 %v8810_v24, %v455_v16  ;;  %v7934_v18 = vpop.f32.mrb[13].mxu0 }
 0x456   :  { %v458_v20 = vpop.f32.mrb[14].mxu0 }
 0x457   :  { %v7935_v21 = vpop.f32.mrb[15].mxu0  ;;  %v464_v22 = vsel %vm144_vm2, %v456_v17, -inf }
 0x458   :  { %465 = vmax.xlane.f32.xlu0 %v464_v22 }
 0x465   :  { %485 = vrot.lane.b32.xlu1 %v8781_v11, %s8653_s25 }
 0x469   :  { %583 = vrot.lane.b32.xlu1 %v8781_v11, %s10902_s26 }
 0x46e   :  { %533 = vrot.lane.b32.xlu0 %v8785_v14, %s8653_s25 }
 0x472   :  { %581 = vrot.lane.b32.xlu0 %v8781_v11, %s10900_s27 }
 0x4e1   :  { %v463_v23 = vpop.xlane.xlu1 %462 }
 0x4e2   :  { %v467_v25 = vsub.f32 %v406_v9, %v463_v23 }
 0x4e4   :  { %v469_v26 = vmul.f32 1.442695, %v467_v25 }
 0x4e5   :  { %v486_v27 = vpop.permute.xlu1 %485  ;;  %v466_v28 = vpop.xlane.xlu0 %465 }
 0x4e6   :  { %8445 = vpow2.f32 %v469_v26  ;;  %v491_v29 = vsel %vm269_vm3, %v486_v27, 0  ;;  %v468_v30 = vsub.f32 %v456_v17, %v466_v28 }
 0x4e7   :  { %7937 = vmatpush3.bf16.msra.mxu1 %v491_v29 }
 0x4e8   :  { %v471_v31 = vmul.f32 1.442695, %v468_v30  ;;  %7948 = vmatprep.subr.bf16.mxu1 %v10906_v0 }
 0x4e9   :  { %v534_v32 = vpop.permute.xlu0 %533  ;;  %v584_v38 = vpop.permute.xlu1 %583 }
 0x4ea   :  { %8447 = vpow2.f32 %v471_v31  ;;  %v539_v33 = vsel %vm269_vm3, %v534_v32, 0  ;;  %v589_v45 = vsel %vm144_vm2, %v584_v38, 0 }
 0x4eb   :  { %7943 = vmatpush3.bf16.msra.mxu0 %v539_v33 }
 0x4ec   :  { %7954 = vmatprep.subr.bf16.mxu0 %v10906_v0 }
 0x4ed   :  { %v582_v50 = vpop.permute.xlu0 %581 }
 0x4f0   :  { %v8446_v34 = vpop.eup %8445 }
 0x4f1   :  { %v473_v35 = vsel %vm144_vm2, %v8446_v34, 0.0 }
 0x4f2   :  { %474 = vadd.xlane.f32.xlu1 %v473_v35 }
 0x4f4   :  { %v8448_v36 = vpop.eup %8447 }
 0x4f5   :  { %v476_v37 = vsel %vm144_vm2, %v8448_v36, 0.0 }
 0x4f6   :  { %477 = vadd.xlane.f32.xlu1 %v476_v37 }
 0x507   :  { %633 = vrot.lane.b32.xlu1 %v8785_v14, %s10902_s26  ;;  %s10935_s26 = smov 16  }
 0x50b   :  { %631 = vrot.lane.b32.xlu1 %v8785_v14, %s10900_s27  ;;  %s10933_s27 = smov 40  }
 0x57f   :  { %v475_v39 = vpop.xlane.xlu1 %474 }
 0x580   :  { %8449 = vrcp.f32 %v475_v39 }
 0x583   :  { %v478_v40 = vpop.xlane.xlu1 %477 }
 0x584   :  { %8451 = vrcp.f32 %v478_v40 }
 0x587   :  { %v634_v47 = vpop.permute.xlu1 %633 }
 0x588   :  { %v639_v49 = vsel %vm144_vm2, %v634_v47, 0 }
 0x58a   :  { %v8450_v41 = vpop.eup %8449 }
 0x58b   :  { %v480_v42 = vmul.f32 %v8450_v41, %v8446_v34  ;;  %v632_v51 = vpop.permute.xlu1 %631 }
 0x58d   :  { %v483_v43 = vpack.c.bf16 %v480_v42, %v480_v42 }
 0x58e   :  { %v8452_v44 = vpop.eup %8451 }
 0x58f   :  { %v482_v46 = vmul.f32 %v8452_v44, %v8448_v36  ;;  %7939 = vmatmul.mubr.msk.bf16.vlgmr.msra.gmra.mrb[12].mxu1 %vm144_vm2, %v483_v43 }
 0x590   :  { %7949 = vmatpush3.bf16.xpose.msra.mxu1 %v589_v45  ;;  %7950 = vmatprep.mubr.msk.bf16.mxu1 %vm8648_vm0, %v10906_v0 }
 0x591   :  { %v484_v48 = vpack.c.bf16 %v482_v46, %v482_v46  ;;  %7960 = vmatprep.subr.bf16.mxu1 %v10906_v0 }
 0x593   :  { %7945 = vmatmul.mubr.msk.bf16.vlgmr.msra.gmra.mrb[16].mxu0 %vm144_vm2, %v484_v48 }
 0x594   :  { %7955 = vmatpush3.bf16.xpose.msra.mxu0 %v639_v49  ;;  %7956 = vmatprep.mubr.msk.bf16.mxu0 %vm8648_vm0, %v10906_v0 }
 0x595   :  { %7966 = vmatprep.subr.bf16.mxu0 %v10906_v0 }
 0x597   :  { %7951 = vmatmul.mubr.msk.bf16.vlgmr.msra.gmra.mrb[16].mxu1 %vm144_vm2, %v582_v50 }
 0x598   :  { %7962 = vmatprep.mubr.msk.bf16.mxu1 %vm8648_vm0, %v10906_v0 }
 0x59b   :  { %7957 = vmatmul.mubr.msk.bf16.vlgmr.msra.gmra.mrb[20].mxu0 %vm144_vm2, %v632_v51 }
 0x59c   :  { %7968 = vmatprep.mubr.msk.bf16.mxu0 %vm8648_vm0, %v10906_v0 }
 0x662   :  { %v8891_v52 = vpop.f32.mrb[12].mxu1 }
 0x663   :  { %v7940_v53 = vpop.f32.mrb[13].mxu1 }
 0x664   :  { %v530_v54 = vpop.f32.mrb[14].mxu1 }
 0x665   :  { %v7941_v55 = vpop.f32.mrb[15].mxu1 }
 0x666   :  { %v8893_v56 = vpop.f32.mrb[16].mxu0 }
 0x667   :  { %v8141_v57 = vpack.i.bf16 %v8893_v56, %v8891_v52  ;;  %v7946_v58 = vpop.f32.mrb[17].mxu0 }
 0x668   :  { %v578_v59 = vpop.f32.mrb[18].mxu0 }
 0x669   :  { %v7947_v60 = vpop.f32.mrb[19].mxu0 }
 0x66a   :  { %v625_v62 = vpop.f32.mrb[16].mxu1 }
 0x66b   :  { %v626_v63 = vadd.f32 %v8804_v19, %v625_v62  ;;  %v7952_v1 = vpop.f32.mrb[17].mxu1 }
 0x66c   :  { %v628_v5 = vpop.f32.mrb[18].mxu1 }
 0x66d   :  { %v7953_v6 = vpop.f32.mrb[19].mxu1  ;;  %v681_v7 = vsel %vm144_vm2, %v626_v63, -inf }
 0x66e   :  { %682 = vmax.xlane.f32.xlu0 %v681_v7  ;;  %v675_v8 = vpop.f32.mrb[20].mxu0 }
 0x66f   :  { %v676_v9 = vadd.f32 %v8810_v24, %v675_v8  ;;  %v7958_v10 = vpop.f32.mrb[21].mxu0 }
 0x670   :  { %v678_v12 = vpop.f32.mrb[22].mxu0 }
 0x671   :  { %v7959_v13 = vpop.f32.mrb[23].mxu0  ;;  %v684_v15 = vsel %vm144_vm2, %v676_v9, -inf }
 0x672   :  { %685 = vmax.xlane.f32.xlu1 %v684_v15 }
 0x683   :  { %705 = vrot.lane.b32.xlu1 %v8781_v11, %s10898_s28 }
 0x687   :  { %803 = vrot.lane.b32.xlu1 %v8781_v11, %s10896_s29 }
 0x68b   :  { %853 = vrot.lane.b32.xlu1 %v8785_v14, %s10896_s29  ;;  %s10934_s29 = smov 8  }
 0x68f   :  { %851 = vrot.lane.b32.xlu1 %v8785_v14, %s10894_s30 }
 0x6fb   :  { %v683_v16 = vpop.xlane.xlu0 %682 }
 0x6fc   :  { %v687_v17 = vsub.f32 %v626_v63, %v683_v16 }
 0x6fe   :  { %v689_v18 = vmul.f32 1.442695, %v687_v17 }
 0x6ff   :  { %v686_v20 = vpop.xlane.xlu1 %685 }
 0x700   :  { %8453 = vpow2.f32 %v689_v18  ;;  %v688_v21 = vsub.f32 %v676_v9, %v686_v20 }
 0x702   :  { %v691_v22 = vmul.f32 1.442695, %v688_v21 }
 0x703   :  { %v706_v23 = vpop.permute.xlu1 %705 }
 0x704   :  { %8455 = vpow2.f32 %v691_v22  ;;  %v711_v25 = vsel %vm269_vm3, %v706_v23, 0 }
 0x705   :  { %7961 = vmatpush3.bf16.msra.mxu1 %v711_v25 }
 0x706   :  { %7972 = vmatprep.subr.bf16.mxu1 %v10906_v0 }
 0x707   :  { %v804_v35 = vpop.permute.xlu1 %803 }
 0x708   :  { %v809_v39 = vsel %vm144_vm2, %v804_v35, 0 }
 0x70a   :  { %v8454_v26 = vpop.eup %8453 }
 0x70b   :  { %v693_v27 = vsel %vm144_vm2, %v8454_v26, 0.0  ;;  %v854_v41 = vpop.permute.xlu1 %853 }
 0x70c   :  { %694 = vadd.xlane.f32.xlu0 %v693_v27  ;;  %v859_v43 = vsel %vm144_vm2, %v854_v41, 0 }
 0x70e   :  { %v8456_v28 = vpop.eup %8455 }
 0x70f   :  { %v696_v29 = vsel %vm144_vm2, %v8456_v28, 0.0  ;;  %v852_v45 = vpop.permute.xlu1 %851 }
 0x710   :  { %697 = vadd.xlane.f32.xlu0 %v696_v29 }
 0x726   :  { %753 = vrot.lane.b32.xlu0 %v8785_v14, %s10898_s28 }
 0x72a   :  { %801 = vrot.lane.b32.xlu0 %v8781_v11, %s10894_s30 }
 0x799   :  { %v695_v30 = vpop.xlane.xlu0 %694 }
 0x79a   :  { %8457 = vrcp.f32 %v695_v30 }
 0x79d   :  { %v698_v31 = vpop.xlane.xlu0 %697 }
 0x79e   :  { %8459 = vrcp.f32 %v698_v31  ;;  %v8174_v31 = vld [vmem:[%s10875_s4 + $0x8] sm:$0xff]  }
 0x7a1   :  { %v754_v32 = vpop.permute.xlu0 %753 }
 0x7a2   :  { %v759_v33 = vsel %vm269_vm3, %v754_v32, 0 }
 0x7a3   :  { %7967 = vmatpush3.bf16.msra.mxu0 %v759_v33 }
 0x7a4   :  { %v8458_v34 = vpop.eup %8457  ;;  %7978 = vmatprep.subr.bf16.mxu0 %v10906_v0 }
 0x7a5   :  { %v700_v36 = vmul.f32 %v8458_v34, %v8454_v26  ;;  %v802_v44 = vpop.permute.xlu0 %801 }
 0x7a7   :  { %v703_v37 = vpack.c.bf16 %v700_v36, %v700_v36 }
 0x7a8   :  { %v8460_v38 = vpop.eup %8459 }
 0x7a9   :  { %v702_v40 = vmul.f32 %v8460_v38, %v8456_v28  ;;  %7963 = vmatmul.mubr.msk.bf16.vlgmr.msra.gmra.mrb[20].mxu1 %vm144_vm2, %v703_v37 }
 0x7aa   :  { %7973 = vmatpush3.bf16.xpose.msra.mxu1 %v809_v39  ;;  %7974 = vmatprep.mubr.msk.bf16.mxu1 %vm8648_vm0, %v10906_v0 }
 0x7ab   :  { %v704_v42 = vpack.c.bf16 %v702_v40, %v702_v40  ;;  %7984 = vmatprep.subr.bf16.mxu1 %v10906_v0 }
 0x7ad   :  { %7969 = vmatmul.mubr.msk.bf16.vlgmr.msra.gmra.mrb[24].mxu0 %vm144_vm2, %v704_v42 }
 0x7ae   :  { %7979 = vmatpush3.bf16.xpose.msra.mxu0 %v859_v43  ;;  %7980 = vmatprep.mubr.msk.bf16.mxu0 %vm8648_vm0, %v10906_v0 }
 0x7af   :  { %7990 = vmatprep.subr.bf16.mxu0 %v10906_v0 }
 0x7b1   :  { %7975 = vmatmul.mubr.msk.bf16.vlgmr.msra.gmra.mrb[24].mxu1 %vm144_vm2, %v802_v44 }
 0x7b2   :  { %7986 = vmatprep.mubr.msk.bf16.mxu1 %vm8648_vm0, %v10906_v0 }
 0x7b5   :  { %7981 = vmatmul.mubr.msk.bf16.vlgmr.msra.gmra.mrb[28].mxu0 %vm144_vm2, %v852_v45 }
 0x7b6   :  { %7992 = vmatprep.mubr.msk.bf16.mxu0 %vm8648_vm0, %v10906_v0 }
 0x87c   :  { %v747_v46 = vpop.f32.mrb[20].mxu1 }
 0x87d   :  { %v7964_v47 = vpop.f32.mrb[21].mxu1 }
 0x87e   :  { %v750_v48 = vpop.f32.mrb[22].mxu1 }
 0x87f   :  { %v7965_v49 = vpop.f32.mrb[23].mxu1 }
 0x880   :  { %v795_v50 = vpop.f32.mrb[24].mxu0 }
 0x881   :  { %v8146_v51 = vpack.i.bf16 %v795_v50, %v747_v46  ;;  %v7970_v53 = vpop.f32.mrb[25].mxu0 }
 0x882   :  { %v798_v54 = vpop.f32.mrb[26].mxu0 }
 0x883   :  { %v7971_v55 = vpop.f32.mrb[27].mxu0 }
 0x884   :  { %v845_v58 = vpop.f32.mrb[24].mxu1 }
 0x885   :  { %v846_v59 = vadd.f32 %v8804_v19, %v845_v58  ;;  %v7976_v60 = vpop.f32.mrb[25].mxu1 }
 0x886   :  { %v848_v62 = vpop.f32.mrb[26].mxu1 }
 0x887   :  { %v7977_v63 = vpop.f32.mrb[27].mxu1  ;;  %v901_v1 = vsel %vm144_vm2, %v846_v59, -inf }
 0x888   :  { %902 = vmax.xlane.f32.xlu0 %v901_v1  ;;  %v895_v5 = vpop.f32.mrb[28].mxu0 }
 0x889   :  { %v896_v6 = vadd.f32 %v8810_v24, %v895_v5  ;;  %v7982_v7 = vpop.f32.mrb[29].mxu0 }
 0x88a   :  { %v898_v8 = vpop.f32.mrb[30].mxu0 }
 0x88b   :  { %v7983_v9 = vpop.f32.mrb[31].mxu0  ;;  %v904_v10 = vsel %vm144_vm2, %v896_v6, -inf }
 0x88c   :  { %905 = vmax.xlane.f32.xlu1 %v904_v10 }
 0x89d   :  { %925 = vrot.lane.b32.xlu1 %v8781_v11, %s10891_s2 }
 0x8a1   :  { %8142 = vrot.lane.b32.xlu1 %v8141_v57, %s10890_s17 }
 0x8a5   :  { %8147 = vrot.lane.b32.xlu1 %v8146_v51, %s10889_s18  ;;  %s10937_s18 = smov 24  }
 0x915   :  { %v903_v19 = vpop.xlane.xlu0 %902 }
 0x916   :  { %v907_v24 = vsub.f32 %v846_v59, %v903_v19 }
 0x918   :  { %v909_v12 = vmul.f32 1.442695, %v907_v24 }
 0x919   :  { %v906_v13 = vpop.xlane.xlu1 %905 }
 0x91a   :  { %8461 = vpow2.f32 %v909_v12  ;;  %v908_v15 = vsub.f32 %v896_v6, %v906_v13 }
 0x91c   :  { %v911_v16 = vmul.f32 1.442695, %v908_v15 }
 0x91d   :  { %v926_v17 = vpop.permute.xlu1 %925 }
 0x91e   :  { %8463 = vpow2.f32 %v911_v16  ;;  %v931_v11 = vsel %vm269_vm3, %v926_v17, 0 }
 0x91f   :  { %7985 = vmatpush3.bf16.msra.mxu1 %v931_v11 }
 0x920   :  { %7996 = vmatprep.subr.bf16.mxu1 %v10906_v0 }
 0x921   :  { %v8143_v41 = vpop.permute.xlu1 %8142 }
 0x922   :  { %v8145_v43 = vunpack.i.h.bf16 %v8143_v41  ;;  %v8144_v44 = vunpack.i.l.bf16 %v8143_v41 }
 0x924   :  { %v8462_v18 = vpop.eup %8461  ;;  %v1046_v48 = vsel %vm144_vm2, %v8851_v2, %v8145_v43  ;;  %v1045_v49 = vsel %vm144_vm2, %v8849_v61, %v8144_v44  ;;  %v6778_v2 = vld [vmem:[%s10876_s5] ss:$0 sm:$0xff] }
 0x925   :  { %v913_v52 = vsel %vm144_vm2, %v8462_v18, 0.0  ;;  %v8148_v42 = vpop.permute.xlu1 %8147 }
 0x926   :  { %914 = vadd.xlane.f32.xlu0 %v913_v52  ;;  %v8150_v45 = vunpack.i.h.bf16 %v8148_v42  ;;  %v8149_v46 = vunpack.i.l.bf16 %v8148_v42  ;;  %v1170_v52 = vld [vmem:[%s10877_s8 + $0x8] sm:$0xff] }
 0x928   :  { %v8464_v56 = vpop.eup %8463  ;;  %v1048_v53 = vsel %vm1047_vm4, %v1045_v49, %v8149_v46  ;;  %v1049_v54 = vsel %vm1047_vm4, %v1046_v48, %v8150_v45  ;;  %v6782_v46 = vld [vmem:[%s10879_s6] ss:$0 sm:$0xff] }
 0x929   :  { %v916_v57 = vsel %vm144_vm2, %v8464_v56, 0.0 }
 0x92a   :  { %917 = vadd.xlane.f32.xlu0 %v916_v57  ;;  %v1178_v57 = vld [vmem:[%s10877_s8 + $0x48] sm:$0xff] }
 0x940   :  { %973 = vrot.lane.b32.xlu0 %v8785_v14, %s10891_s2  ;;  %v8173_v14 = vld [vmem:[%s10875_s4] sm:$0xff]   ;;  %s10893_s2 = smov 24  }
 0x9b3   :  { %v915_v20 = vpop.xlane.xlu0 %914 }
 0x9b4   :  { %8465 = vrcp.f32 %v915_v20 }
 0x9b7   :  { %v918_v21 = vpop.xlane.xlu0 %917 }
 0x9b8   :  { %8467 = vrcp.f32 %v918_v21  ;;  %v6786_v21 = vcombine.low %v1170_v52, %v1178_v57 }
 0x9bb   :  { %v974_v22 = vpop.permute.xlu0 %973 }
 0x9bc   :  { %v979_v23 = vsel %vm269_vm3, %v974_v22, 0  ;;  %v6787_v22 = vcombine.high %v1170_v52, %v1178_v57  ;;  %v1184_v52 = vld [vmem:[%s10877_s8 + $0x78] sm:$0xff] }
 0x9bd   :  { %7991 = vmatpush3.bf16.msra.mxu0 %v979_v23  ;;  %v1185_v23 = vld [vmem:[%s10877_s8 + $0x80] sm:$0xff] }
 0x9be   :  { %v8466_v25 = vpop.eup %8465 }
 0x9bf   :  { %v920_v26 = vmul.f32 %v8466_v25, %v8462_v18  ;;  %v1177_v18 = vld [vmem:[%s10877_s8 + $0x40] sm:$0xff] }
 0x9c0   :  { %v1193_v25 = vld [vmem:[%s10877_s8 + $0xc0] sm:$0xff] }
 0x9c1   :  { %v923_v27 = vpack.c.bf16 %v920_v26, %v920_v26  ;;  %v1186_v26 = vld [vmem:[%s10877_s8 + $0x88] sm:$0xff] }
 0x9c2   :  { %v8468_v28 = vpop.eup %8467 }
 0x9c3   :  { %v922_v29 = vmul.f32 %v8468_v28, %v8464_v56  ;;  %7987 = vmatmul.mubr.msk.bf16.vlgmr.msra.gmra.mrb[28].mxu1 %vm144_vm2, %v923_v27  ;;  %v6801_v27 = vcombine.high %v1185_v23, %v1193_v25  ;;  %v1194_v28 = vld [vmem:[%s10877_s8 + $0xc8] sm:$0xff] }
 0x9c4   :  { %8000 = vmatprep.mubr.msk.bf16.mxu1 %vm8648_vm0, %v10906_v0  ;;  %7997 = vmatpush3.bf16.msra.mxu1 %v8173_v14  ;;  %v6803_v14 = vcombine.high %v1186_v26, %v1194_v28 }
 0x9c5   :  { %v924_v30 = vpack.c.bf16 %v922_v29, %v922_v29  ;;  %7998 = vmatprep.subr.bf16.mxu1 %v10906_v0  ;;  %v6800_v29 = vcombine.low %v1185_v23, %v1193_v25  ;;  %v1199_v23 = vld [vmem:[%s10877_s8 + $0xf0] sm:$0xff]  ;;  %v1192_v25 = vld [vmem:[%s10877_s8 + $0xb8] sm:$0xff] }
 0x9c7   :  { %7993 = vmatmul.mubr.msk.bf16.vlgmr.msra.gmra.mrb[32].mxu0 %vm144_vm2, %v924_v30  ;;  %v6802_v30 = vcombine.low %v1186_v26, %v1194_v28  ;;  %v1200_v26 = vld [vmem:[%s10877_s8 + $0xf8] sm:$0xff] }
 0x9c8   :  { %7999 = vmatpush3.bf16.msra.mxu1 %v8174_v31  ;;  %v1171_v31 = vld [vmem:[%s10877_s8 + $0x10] sm:$0xff] }
 0x9c9   :  { %1491 = vmatprep.subr.bf16.mxu1 %v6787_v22  ;;  %v1191_v22 = vld [vmem:[%s10877_s8 + $0xb0] sm:$0xff] }
 0xa96   :  { %v967_v32 = vpop.f32.mrb[28].mxu1 }
 0xa97   :  { %v7988_v33 = vpop.f32.mrb[29].mxu1 }
 0xa98   :  { %v970_v34 = vpop.f32.mrb[30].mxu1  ;;  %v1172_v33 = vld [vmem:[%s10877_s8 + $0x18] sm:$0xff] }
 0xa99   :  { %v7989_v35 = vpop.f32.mrb[31].mxu1  ;;  %v10904_v34 = vmov 0  }
 0xa9a   :  { %v1015_v36 = vpop.f32.mrb[32].mxu0  ;;  %1480 = vmatprep.mubr.bf16.mxu0 %v10904_v34 }
 0xa9b   :  { %v8151_v37 = vpack.i.bf16 %v1015_v36, %v967_v32  ;;  %v7994_v38 = vpop.f32.mrb[33].mxu0  ;;  %v1179_v32 = vld [vmem:[%s10877_s8 + $0x50] sm:$0xff]  ;;  %v1180_v36 = vld [vmem:[%s10877_s8 + $0x58] sm:$0xff] }
 0xa9c   :  { %v1018_v39 = vpop.f32.mrb[34].mxu0  ;;  %v6789_v35 = vcombine.high %v1171_v31, %v1179_v32  ;;  %v6790_v38 = vcombine.low %v1172_v33, %v1180_v36 }
 0xa9d   :  { %8152 = vrot.lane.b32.xlu0 %v8151_v37, %s10893_s2  ;;  %v7995_v40 = vpop.f32.mrb[35].mxu0  ;;  %v6788_v37 = vcombine.low %v1171_v31, %v1179_v32  ;;  %v6791_v39 = vcombine.high %v1172_v33, %v1180_v36  ;;  %v6815_v31 = vcombine.high %v1192_v25, %v1200_v26  ;;  %v8175_v32 = vld [vmem:[%s10878_s10 + $0x40] sm:$0xff]   ;;  %v6814_v36 = vcombine.low %v1192_v25, %v1200_v26 }
 0xa9e   :  { %v8176_v33 = vld [vmem:[%s10878_s10 + $0xc0] sm:$0xff]  }
 0xb0f   :  { %v8153_v47 = vpop.permute.xlu0 %8152 }
 0xb10   :  { %v8155_v50 = vunpack.i.h.bf16 %v8153_v47  ;;  %v8154_v51 = vunpack.i.l.bf16 %v8153_v47 }
 0xb12   :  { %v1052_v55 = vsel %vm1050_vm5, %v1049_v54, %v8155_v50  ;;  %v1051_v58 = vsel %vm1050_vm5, %v1048_v53, %v8154_v51  ;;  %v6783_v50 = vld [vmem:[%s10880_s7] ss:$0 sm:$0xff]  ;;  %v1187_v54 = vld [vmem:[%s10877_s8 + $0x90] sm:$0xff] }
 0xb13   :  { %v1053_v59 = vpack.c.bf16 %v1052_v55, %v1051_v58  ;;  %v1195_v55 = vld [vmem:[%s10877_s8 + $0xd0] sm:$0xff]  ;;  %v1188_v58 = vld [vmem:[%s10877_s8 + $0x98] sm:$0xff] }
 0xb15   :  { %8001 = vmatmul.mubr.msk.bf16.vlgmr.msra.gmra.mrb[32].mxu1 %vm82_vm1, %v1053_v59  ;;  %v1196_v59 = vld [vmem:[%s10877_s8 + $0xd8] sm:$0xff] }
 0xb16   :  { %1492 = vmatpush1.bf16.msra.mxu1 %v6786_v21  ;;  %1523 = vmatprep.mubr.bf16.mxu1 %v10904_v34 }
 0xb17   :  { %1493 = vmatprep.subr.bf16.mxu1 %v6803_v14  ;;  %v6813_v14 = vcombine.high %v1191_v22, %v1199_v23 }
 0xb1a   :  { %1494 = vmatpush1.bf16.msra.mxu1 %v6802_v30 }
 0xb1b   :  { %1577 = vmatprep.subr.bf16.mxu1 %v6791_v39  ;;  %v8179_v39 = vld [vmem:[%s10878_s10 + $0x48] sm:$0xff]  }
 0xbe8   :  { %v1114_v60 = vpop.f32.mrb[32].mxu1 }
 0xbe9   :  { %v1115_v62 = vadd.f32 %v6778_v2, %v1114_v60  ;;  %v8002_v61 = vpop.f32.mrb[33].mxu1 }
 0xbea   :  { %v1117_v63 = vpop.f32.mrb[34].mxu1  ;;  %v1173_v61 = vld [vmem:[%s10877_s8 + $0x20] sm:$0xff] }
 0xbeb   :  { %v1118_v1 = vadd.f32 %v6778_v2, %v1117_v63  ;;  %v8003_v5 = vpop.f32.mrb[35].mxu1  ;;  %v1121_v6 = vadd.f32 %v1115_v62, %v8764_v3  ;;  %v1181_v63 = vld [vmem:[%s10877_s8 + $0x60] sm:$0xff] }
 0xbec   :  { %v1182_v5 = vld [vmem:[%s10877_s8 + $0x68] sm:$0xff] }
 0xbed   :  { %v1123_v7 = vsel %vm82_vm1, %v1121_v6, 0.0  ;;  %v1122_v8 = vadd.f32 %v1118_v1, %v8769_v4  ;;  %v1169_v4 = vld [vmem:[%s10877_s8] sm:$0xff]  ;;  %v1174_v1 = vld [vmem:[%s10877_s8 + $0x28] sm:$0xff] }
 0xbee   :  { %1124 = vadd.xlane.f32.xlu1 %v1123_v7  ;;  %v6785_v56 = vcombine.high %v1169_v4, %v1177_v18  ;;  %v6784_v20 = vcombine.low %v1169_v4, %v1177_v18  ;;  %v6805_v7 = vcombine.high %v1187_v54, %v1195_v55  ;;  %v1183_v4 = vld [vmem:[%s10877_s8 + $0x70] sm:$0xff]  ;;  %v1176_v18 = vld [vmem:[%s10877_s8 + $0x38] sm:$0xff] }
 0xbef   :  { %v1126_v9 = vsel %vm82_vm1, %v1122_v8, 0.0  ;;  %v6799_v28 = vcombine.high %v1176_v18, %v1184_v52  ;;  %v6798_v30 = vcombine.low %v1176_v18, %v1184_v52 }
 0xbf0   :  { %1127 = vadd.xlane.f32.xlu0 %v1126_v9  ;;  %1448 = vmatprep.subr.bf16.mxu0 %v6785_v56  ;;  %v6804_v9 = vcombine.low %v1187_v54, %v1195_v55  ;;  %v8193_v54 = vld [vmem:[%s10878_s10 + $0x20] sm:$0xff]  }
 0xbf1   :  { %1449 = vmatpush1.bf16.msra.mxu0 %v6784_v20  ;;  %v8194_v55 = vld [vmem:[%s10878_s10 + $0xa0] sm:$0xff]  }
 0xbf2   :  { %1450 = vmatprep.subr.bf16.mxu0 %v6801_v27 }
 0xbf5   :  { %1451 = vmatpush1.bf16.msra.mxu0 %v6800_v29 }
 0xbf6   :  { %1534 = vmatprep.subr.bf16.mxu0 %v6789_v35  ;;  %v6812_v35 = vcombine.low %v1191_v22, %v1199_v23 }
 0xc7b   :  { %v1125_v10 = vpop.xlane.xlu1 %1124 }
 0xc7c   :  { %v1130_v19 = vmul.f32 0.03125, %v1125_v10  ;;  %v6806_v10 = vcombine.low %v1188_v58, %v1196_v59 }
 0xc7d   :  { %v1128_v24 = vpop.xlane.xlu0 %1127 }
 0xc7e   :  { %v1132_v12 = vsub.f32 %v1121_v6, %v1130_v19  ;;  %v1131_v13 = vmul.f32 0.03125, %v1128_v24  ;;  %v1189_v19 = vld [vmem:[%s10877_s8 + $0xa0] sm:$0xff] }
 0xc7f   :  { %v1197_v24 = vld [vmem:[%s10877_s8 + $0xe0] sm:$0xff] }
 0xc80   :  { %v1133_v15 = vsub.f32 %v1122_v8, %v1131_v13  ;;  %v1134_v16 = vmul.f32 %v1132_v12, %v1132_v12  ;;  %v6807_v8 = vcombine.high %v1188_v58, %v1196_v59  ;;  %v1198_v13 = vld [vmem:[%s10877_s8 + $0xe8] sm:$0xff]  ;;  %v6809_v56 = vcombine.high %v1189_v19, %v1197_v24 }
 0xc81   :  { %v6808_v20 = vcombine.low %v1189_v19, %v1197_v24  ;;  %v8195_v58 = vld [vmem:[%s10878_s10 + $0x68] sm:$0xff]   ;;  %v8207_v19 = vld [vmem:[%s10878_s10 + $0x140] sm:$0xff]  }
 0xc82   :  { %v1136_v17 = vsel %vm82_vm1, %v1134_v16, 0.0  ;;  %v1135_v11 = vmul.f32 %v1133_v15, %v1133_v15  ;;  %v6795_v16 = vcombine.high %v1174_v1, %v1182_v5  ;;  %v8196_v59 = vld [vmem:[%s10878_s10 + $0xe8] sm:$0xff]   ;;  %v8208_v24 = vld [vmem:[%s10878_s10 + $0x1c0] sm:$0xff]  }
 0xc83   :  { %1137 = vadd.xlane.f32.xlu0 %v1136_v17  ;;  %v6792_v17 = vcombine.low %v1173_v61, %v1181_v63 }
 0xc84   :  { %v1139_v3 = vsel %vm82_vm1, %v1135_v11, 0.0  ;;  %v6794_v11 = vcombine.low %v1174_v1, %v1182_v5  ;;  %v8200_v1 = vld [vmem:[%s10878_s10 + $0xf0] sm:$0xff]  }
 0xc85   :  { %1140 = vadd.xlane.f32.xlu1 %v1139_v3  ;;  %v1175_v3 = vld [vmem:[%s10877_s8 + $0x30] sm:$0xff] }
 0xc86   :  { %v6797_v27 = vcombine.high %v1175_v3, %v1183_v4  ;;  %v6796_v29 = vcombine.low %v1175_v3, %v1183_v4  ;;  %v8201_v5 = vld [vmem:[%s10878_s10 + $0x30] sm:$0xff]  }
 0xd10   :  { %v1138_v40 = vpop.xlane.xlu0 %1137 }
 0xd11   :  { %v1142_v41 = vmul.f32 0.03125, %v1138_v40  ;;  %v8180_v40 = vld [vmem:[%s10878_s10 + $0xc8] sm:$0xff]  }
 0xd12   :  { %v1141_v42 = vpop.xlane.xlu1 %1140 }
 0xd13   :  { %v1144_v43 = vadd.f32 1e-05, %v1142_v41  ;;  %v1143_v44 = vmul.f32 0.03125, %v1141_v42  ;;  %v8181_v41 = vld [vmem:[%s10878_s10 + $0x8] sm:$0xff]  }
 0xd14   :  { %v8182_v42 = vld [vmem:[%s10878_s10 + $0x88] sm:$0xff]  }
 0xd15   :  { %8469 = vrsqrt.f32 %v1144_v43  ;;  %v1145_v45 = vadd.f32 1e-05, %v1143_v44  ;;  %v8183_v43 = vld [vmem:[%s10878_s10 + $0x50] sm:$0xff]  }
 0xd16   :  { %v8184_v44 = vld [vmem:[%s10878_s10 + $0xd0] sm:$0xff]  }
 0xd17   :  { %8471 = vrsqrt.f32 %v1145_v45  ;;  %v8185_v45 = vld [vmem:[%s10878_s10 + $0x10] sm:$0xff]  }
 0xd1f   :  { %v8470_v47 = vpop.eup %8469 }
 0xd20   :  { %v1148_v48 = vmul.f32 %v8470_v47, %v1132_v12  ;;  %v1190_v12 = vld [vmem:[%s10877_s8 + $0xa8] sm:$0xff]  ;;  %v8187_v47 = vld [vmem:[%s10878_s10 + $0x58] sm:$0xff]  }
 0xd21   :  { %v8472_v49 = vpop.eup %8471  ;;  %v6811_v57 = vcombine.high %v1190_v12, %v1198_v13  ;;  %v6810_v21 = vcombine.low %v1190_v12, %v1198_v13  ;;  %v1205_v12 = vlaneseq }
 0xd22   :  { %v1157_v51 = vmul.f32 %v6782_v46, %v1148_v48  ;;  %v1149_v53 = vmul.f32 %v8472_v49, %v1133_v15  ;;  %v6793_v15 = vcombine.high %v1173_v61, %v1181_v63  ;;  %v8188_v48 = vld [vmem:[%s10878_s10 + $0xd8] sm:$0xff]   ;;  %v8198_v61 = vld [vmem:[%s10878_s10 + $0xa8] sm:$0xff]   ;;  %v8199_v63 = vld [vmem:[%s10878_s10 + $0x70] sm:$0xff]  }
 0xd23   :  { %v8189_v49 = vld [vmem:[%s10878_s10 + $0x18] sm:$0xff]   ;;  %v1206_v13 = vshrl.u32 %v1205_v12, 7 }
 0xd24   :  { %v1158_v2 = vmul.f32 %v6782_v46, %v1149_v53  ;;  %v9039_v60 = vadd.f32 %v6783_v50, %v1157_v51  ;;  %v8186_v46 = vld [vmem:[%s10878_s10 + $0x90] sm:$0xff]   ;;  %v8191_v51 = vld [vmem:[%s10878_s10 + $0x60] sm:$0xff]  }
 0xd25   :  { %v8192_v53 = vld [vmem:[%s10878_s10 + $0xe0] sm:$0xff]   ;;  %v9228_v3 = vsub.s32 3, %v1206_v13 }
 0xd26   :  { %v9041_v62 = vadd.f32 %v6783_v50, %v1158_v2  ;;  %v8190_v50 = vld [vmem:[%s10878_s10 + $0x98] sm:$0xff]   ;;  %v8197_v2 = vld [vmem:[%s10878_s10 + $0x28] sm:$0xff]  }
 0xd27   :  { %10920 = vst [vmem:[#allocation2_spill] sm:$0xff] %v9228_v3 }
 0xd28   :  { %v9057_v6 = vpack.c.bf16 %v9041_v62, %v9039_v60 }
 0xd2a   :  { %6816 = vmatmul.mubr.msk.bf16.vlgmr.msra.gmra.mrb[36].mxu0 %vm82_vm1, %v9057_v6  ;;  %6817 = vmatmul.mubr.msk.bf16.vlgmr.msra.gmra.mrb[36].mxu1 %vm82_vm1, %v9057_v6 }
 0xd2b   :  { %1535 = vmatpush1.bf16.msra.mxu0 %v6788_v37  ;;  %1578 = vmatpush1.bf16.msra.mxu1 %v6790_v38  ;;  %v8177_v37 = vld [vmem:[%s10878_s10] sm:$0xff]  }
 0xd2c   :  { %1536 = vmatprep.subr.bf16.mxu0 %v6805_v7  ;;  %1579 = vmatprep.subr.bf16.mxu1 %v6807_v8  ;;  %v8178_v38 = vld [vmem:[%s10878_s10 + $0x80] sm:$0xff]   ;;  %v8203_v7 = vld [vmem:[%s10878_s10 + $0x78] sm:$0xff]  }
 0xd2d   :  { %1566 = vmatprep.mubr.bf16.mxu0 %v10904_v34  ;;  %1609 = vmatprep.mubr.bf16.mxu1 %v10904_v34  ;;  %v8204_v8 = vld [vmem:[%s10878_s10 + $0xf8] sm:$0xff]  }
 0xd2f   :  { %1537 = vmatpush1.bf16.msra.mxu0 %v6804_v9  ;;  %1580 = vmatpush1.bf16.msra.mxu1 %v6806_v10  ;;  %v8205_v9 = vld [vmem:[%s10878_s10 + $0x38] sm:$0xff]  }
 0xd30   :  { %1620 = vmatprep.subr.bf16.mxu0 %v6793_v15  ;;  %1663 = vmatprep.subr.bf16.mxu1 %v6795_v16  ;;  %v8206_v10 = vld [vmem:[%s10878_s10 + $0xb8] sm:$0xff]   ;;  %v9219_v15 = vsub.s32 0, %v1206_v13  ;;  %v9221_v16 = vsub.s32 2, %v1206_v13 }
 0xd32   :  { %6818 = vmatmul.mubr.msk.bf16.vlgmr.msra.gmra.mrb[40].mxu0 %vm82_vm1, %v9057_v6  ;;  %6819 = vmatmul.mubr.msk.bf16.vlgmr.msra.gmra.mrb[40].mxu1 %vm82_vm1, %v9057_v6 }
 0xd33   :  { %1621 = vmatpush1.bf16.msra.mxu0 %v6792_v17  ;;  %1664 = vmatpush1.bf16.msra.mxu1 %v6794_v11  ;;  %v1201_v17 = vld [vmem:[%s10881_s9] sm:$0xff]  ;;  %v9226_v11 = vsub.s32 1, %v1206_v13 }
 0xd34   :  { %1622 = vmatprep.subr.bf16.mxu0 %v6809_v56  ;;  %1665 = vmatprep.subr.bf16.mxu1 %v6811_v57  ;;  %v1208_v4 = vrot.slane %v1201_v17, %v9219_v15  ;;  %v1216_v18 = vrot.slane %v1201_v17, %v9221_v16  ;;  %v1220_v56 = vrot.slane %v1201_v17, %v9228_v3 }
 0xd35   :  { %1652 = vmatprep.mubr.bf16.mxu0 %v10904_v34  ;;  %1695 = vmatprep.mubr.bf16.mxu1 %v10904_v34  ;;  %v1212_v52 = vrot.slane %v1201_v17, %v9226_v11 }
 0xd37   :  { %1623 = vmatpush1.bf16.msra.mxu0 %v6808_v20  ;;  %1666 = vmatpush1.bf16.msra.mxu1 %v6810_v21  ;;  %v9234_v21 = vsub.s32 4, %v1206_v13 }
 0xd38   :  { %1706 = vmatprep.subr.bf16.mxu0 %v6797_v27  ;;  %1749 = vmatprep.subr.bf16.mxu1 %v6799_v28  ;;  %v9236_v27 = vsub.s32 6, %v1206_v13 }
 0xd39   :  { %10921 = vst [vmem:[#allocation3_spill] sm:$0xff] %v9234_v21 }
 0xd3a   :  { %6820 = vmatmul.mubr.msk.bf16.vlgmr.msra.gmra.mrb[44].mxu0 %vm82_vm1, %v9057_v6  ;;  %6821 = vmatmul.mubr.msk.bf16.vlgmr.msra.gmra.mrb[44].mxu1 %vm82_vm1, %v9057_v6  ;;  %10922 = vst [vmem:[#allocation4_spill] sm:$0xff] %v9236_v27 }
 0xd3b   :  { %1707 = vmatpush1.bf16.msra.mxu0 %v6796_v29  ;;  %1750 = vmatpush1.bf16.msra.mxu1 %v6798_v30 }
 0xd3c   :  { %1708 = vmatprep.subr.bf16.mxu0 %v6813_v14  ;;  %1751 = vmatprep.subr.bf16.mxu1 %v6815_v31  ;;  %v9238_v31 = vsub.s32 5, %v1206_v13 }
 0xd3d   :  { %1738 = vmatprep.mubr.bf16.mxu0 %v10904_v34  ;;  %1781 = vmatprep.mubr.bf16.mxu1 %v10904_v34 }
 0xd3e   :  { %10923 = vst [vmem:[#allocation5_spill] sm:$0xff] %v9238_v31 }
 0xd3f   :  { %1709 = vmatpush1.bf16.msra.mxu0 %v6812_v35  ;;  %1752 = vmatpush1.bf16.msra.mxu1 %v6814_v36 }
 0xd40   :  { %7499 = vmatprep.subr.bf16.mxu0 %v8175_v32  ;;  %7521 = vmatprep.subr.bf16.mxu1 %v8176_v33  ;;  %v9240_v32 = vsub.s32 7, %v1206_v13 }
 0xd42   :  { %6822 = vmatmul.mubr.msk.bf16.vlgmr.msra.gmra.mrb[48].mxu0 %vm82_vm1, %v9057_v6  ;;  %6823 = vmatmul.mubr.msk.bf16.vlgmr.msra.gmra.mrb[48].mxu1 %vm82_vm1, %v9057_v6  ;;  %v8202_v6 = vld [vmem:[%s10878_s10 + $0xb0] sm:$0xff]   ;;  %10924 = vst [vmem:[#allocation6_spill] sm:$0xff] %v9240_v32 }
 0xd43   :  { %7500 = vmatpush3.bf16.msra.mxu0 %v8177_v37  ;;  %7522 = vmatpush3.bf16.msra.mxu1 %v8178_v38  ;;  %v1224_v38 = vrot.slane %v1201_v17, %v9234_v21 }
 0xd44   :  { %7501 = vmatprep.subr.bf16.mxu0 %v8179_v39  ;;  %7523 = vmatprep.subr.bf16.mxu1 %v8180_v40  ;;  %v1202_v39 = vld [vmem:[%s10881_s9 + $0x8] sm:$0xff] }
 0xd45   :  { %v9267_v13 = vrot.slane %v1202_v39, %v9236_v27 }
 0xd47   :  { %7502 = vmatpush3.bf16.msra.mxu0 %v8181_v41  ;;  %7524 = vmatpush3.bf16.msra.mxu1 %v8182_v42 }
 0xd48   :  { %7503 = vmatprep.subr.bf16.mxu0 %v8183_v43  ;;  %7525 = vmatprep.subr.bf16.mxu1 %v8184_v44  ;;  %v1232_v44 = vrot.slane %v1201_v17, %v9236_v27 }
 0xd4b   :  { %7504 = vmatpush3.bf16.msra.mxu0 %v8185_v45  ;;  %7526 = vmatpush3.bf16.msra.mxu1 %v8186_v46  ;;  %v1228_v46 = vrot.slane %v1201_v17, %v9238_v31 }
 0xd4c   :  { %7505 = vmatprep.subr.bf16.mxu0 %v8187_v47  ;;  %7527 = vmatprep.subr.bf16.mxu1 %v8188_v48  ;;  %v1236_v47 = vrot.slane %v1201_v17, %v9240_v32 }
 0xd4f   :  { %7506 = vmatpush3.bf16.msra.mxu0 %v8189_v49  ;;  %7528 = vmatpush3.bf16.msra.mxu1 %v8190_v50  ;;  %v9250_v50 = vrot.slane %v1202_v39, %v9219_v15 }
 0xd50   :  { %7507 = vmatprep.subr.bf16.mxu0 %v8191_v51  ;;  %7529 = vmatprep.subr.bf16.mxu1 %v8192_v53 }
 0xd53   :  { %7508 = vmatpush3.bf16.msra.mxu0 %v8193_v54  ;;  %7530 = vmatpush3.bf16.msra.mxu1 %v8194_v55  ;;  %v9253_v55 = vrot.slane %v1202_v39, %v9221_v16 }
 0xd54   :  { %7509 = vmatprep.subr.bf16.mxu0 %v8195_v58  ;;  %7531 = vmatprep.subr.bf16.mxu1 %v8196_v59 }
 0xd57   :  { %7510 = vmatpush3.bf16.msra.mxu0 %v8197_v2  ;;  %7532 = vmatpush3.bf16.msra.mxu1 %v8198_v61  ;;  %v9256_v61 = vrot.slane %v1202_v39, %v9226_v11 }
 0xd58   :  { %7511 = vmatprep.subr.bf16.mxu0 %v8199_v63  ;;  %7533 = vmatprep.subr.bf16.mxu1 %v8200_v1  ;;  %v9259_v63 = vrot.slane %v1202_v39, %v9228_v3 }
 0xd5b   :  { %7512 = vmatpush3.bf16.msra.mxu0 %v8201_v5  ;;  %7534 = vmatpush3.bf16.msra.mxu1 %v8202_v6 }
 0xd5c   :  { %7513 = vmatprep.subr.bf16.mxu0 %v8203_v7  ;;  %7535 = vmatprep.subr.bf16.mxu1 %v8204_v8  ;;  %v9262_v8 = vrot.slane %v1202_v39, %v9234_v21 }
 0xd5f   :  { %7514 = vmatpush3.bf16.msra.mxu0 %v8205_v9  ;;  %7536 = vmatpush3.bf16.msra.mxu1 %v8206_v10 }
 0xd60   :  { %7543 = vmatprep.subr.bf16.mxu0 %v8207_v19  ;;  %7565 = vmatprep.subr.bf16.mxu1 %v8208_v24 }
 0xdfd   :  { %v1482_v57 = vpop.f32.mrb[36].mxu0  ;;  %v1525_v20 = vpop.f32.mrb[36].mxu1 }
 0xdfe   :  { %v1483_v22 = vadd.f32 %v1482_v57, %v1208_v4  ;;  %v1526_v23 = vadd.f32 %v1525_v20, %v1216_v18  ;;  %v1484_v25 = vpop.f32.mrb[37].mxu0  ;;  %v1527_v26 = vpop.f32.mrb[37].mxu1 }
 0xdff   :  { %v1485_v28 = vadd.f32 %v1484_v25, %v1212_v52  ;;  %v1528_v29 = vadd.f32 %v1527_v26, %v1220_v56  ;;  %v1486_v30 = vpop.f32.mrb[38].mxu0  ;;  %v1529_v14 = vpop.f32.mrb[38].mxu1 }
 0xe00   :  { %v1824_v33 = vmul.f32 0.70710677, %v1483_v22  ;;  %v1826_v35 = vmul.f32 0.70710677, %v1526_v23  ;;  %v1487_v40 = vadd.f32 %v1486_v30, %v1208_v4  ;;  %v1530_v41 = vadd.f32 %v1529_v14, %v1216_v18  ;;  %v1488_v42 = vpop.f32.mrb[39].mxu0  ;;  %v1531_v43 = vpop.f32.mrb[39].mxu1 }
 0xe01   :  { %v1825_v36 = vmul.f32 0.70710677, %v1485_v28  ;;  %v1827_v37 = vmul.f32 0.70710677, %v1528_v29  ;;  %v1489_v45 = vadd.f32 %v1488_v42, %v1212_v52  ;;  %v1532_v49 = vadd.f32 %v1531_v43, %v1220_v56 }
 0xe02   :  { %8473 = verf.f32 %v1824_v33  ;;  %v1840_v48 = vmul.f32 0.70710677, %v1487_v40  ;;  %v1842_v51 = vmul.f32 0.70710677, %v1530_v41  ;;  %v9270_v18 = vrot.slane %v1202_v39, %v9238_v31 }
 0xe03   :  { %8475 = verf.f32 %v1826_v35  ;;  %v1841_v53 = vmul.f32 0.70710677, %v1489_v45  ;;  %v1843_v9 = vmul.f32 0.70710677, %v1532_v49  ;;  %v9273_v52 = vrot.slane %v1202_v39, %v9240_v32 }
 0xe04   :  { %8477 = verf.f32 %v1825_v36  ;;  %v1792_v56 = vmul.f32 0.5, %v1483_v22  ;;  %v1794_v57 = vmul.f32 0.5, %v1526_v23  ;;  %v9275_v33 = vmul.f32 0.5, %v1485_v28 }
 0xe05   :  { %8479 = verf.f32 %v1827_v37  ;;  %v1568_v54 = vpop.f32.mrb[40].mxu0  ;;  %v1611_v59 = vpop.f32.mrb[40].mxu1  ;;  %v9277_v35 = vmul.f32 0.5, %v1528_v29  ;;  %v1808_v39 = vmul.f32 0.5, %v1487_v40  ;;  %v9282_v29 = vmul.f32 0.5, %v1532_v49 }
 0xe06   :  { %8481 = verf.f32 %v1840_v48  ;;  %v1569_v58 = vadd.f32 %v1568_v54, %v1224_v38  ;;  %v1570_v2 = vpop.f32.mrb[41].mxu0  ;;  %v1612_v1 = vadd.f32 %v1611_v59, %v1232_v44  ;;  %v1613_v6 = vpop.f32.mrb[41].mxu1  ;;  %v9280_v54 = vmul.f32 0.5, %v1489_v45 }
 0xe07   :  { %8483 = verf.f32 %v1842_v51  ;;  %v1571_v5 = vadd.f32 %v1570_v2, %v1228_v46  ;;  %v1572_v7 = vpop.f32.mrb[42].mxu0  ;;  %v9264_v19 = vadd.f32 %v1613_v6, %v1236_v47  ;;  %v1615_v24 = vpop.f32.mrb[42].mxu1 }
 0xe08   :  { %v1828_v10 = vmul.f32 0.70710677, %v1569_v58  ;;  %v1574_v12 = vpop.f32.mrb[43].mxu0  ;;  %8485 = verf.f32 %v1841_v53  ;;  %v1830_v17 = vmul.f32 0.70710677, %v1612_v1  ;;  %v1617_v4 = vpop.f32.mrb[43].mxu1  ;;  %v1573_v25 = vadd.f32 %v1572_v7, %v1224_v38 }
 0xe09   :  { %v1829_v20 = vmul.f32 0.70710677, %v1571_v5  ;;  %v1616_v26 = vadd.f32 %v1615_v24, %v1232_v44  ;;  %v1575_v30 = vadd.f32 %v1574_v12, %v1228_v46  ;;  %v1831_v36 = vmul.f32 0.70710677, %v9264_v19 }
 0xe0a   :  { %8487 = verf.f32 %v1828_v10  ;;  %v1844_v43 = vmul.f32 0.70710677, %v1573_v25  ;;  %v1618_v22 = vadd.f32 %v1617_v4, %v1236_v47  ;;  %v1810_v38 = vmul.f32 0.5, %v1530_v41 }
 0xe0b   :  { %8489 = verf.f32 %v1830_v17  ;;  %v1846_v44 = vmul.f32 0.70710677, %v1616_v26  ;;  %v1845_v59 = vmul.f32 0.70710677, %v1575_v30  ;;  %v9284_v7 = vmul.f32 0.5, %v1569_v58 }
 0xe0c   :  { %v8474_v14 = vpop.eup %8473  ;;  %8491 = verf.f32 %v1843_v9  ;;  %v9286_v47 = vmul.f32 0.5, %v1612_v1  ;;  %v9288_v9 = vmul.f32 0.5, %v1571_v5  ;;  %v1847_v12 = vmul.f32 0.70710677, %v1618_v22 }
 0xe0d   :  { %v8476_v37 = vpop.eup %8475  ;;  %v1888_v42 = vadd.f32 1.0, %v8474_v14  ;;  %v1654_v23 = vpop.f32.mrb[44].mxu0  ;;  %8493 = verf.f32 %v1829_v20 }
 0xe0e   :  { %v1697_v48 = vpop.f32.mrb[44].mxu1  ;;  %v8478_v51 = vpop.eup %8477  ;;  %v1890_v53 = vadd.f32 1.0, %v8476_v37  ;;  %8495 = verf.f32 %v1844_v43  ;;  %v1655_v1 = vadd.f32 %v1654_v23, %v9250_v50  ;;  %v9308_v23 = vmul.f32 0.5, %v9264_v19 }
 0xe0f   :  { %v1656_v46 = vpop.f32.mrb[45].mxu0  ;;  %v8480_v28 = vpop.eup %8479  ;;  %8497 = verf.f32 %v1846_v44  ;;  %v9292_v45 = vmul.f32 %v1888_v42, %v1792_v56  ;;  %v1889_v58 = vadd.f32 1.0, %v8478_v51  ;;  %v1698_v43 = vadd.f32 %v1697_v48, %v9253_v55 }
 0xe10   :  { %v1699_v2 = vpop.f32.mrb[45].mxu1  ;;  %v1658_v6 = vpop.f32.mrb[46].mxu0  ;;  %8499 = verf.f32 %v1831_v36  ;;  %v9296_v4 = vmul.f32 %v1890_v53, %v1794_v57  ;;  %v1891_v14 = vadd.f32 1.0, %v8480_v28  ;;  %v1832_v36 = vmul.f32 0.70710677, %v1655_v1 }
 0xe11   :  { %v8482_v40 = vpop.eup %8481  ;;  %v1701_v41 = vpop.f32.mrb[46].mxu1  ;;  %8501 = verf.f32 %v1845_v59  ;;  %v1657_v44 = vadd.f32 %v1656_v46, %v9256_v61  ;;  %v1812_v53 = vmul.f32 0.5, %v1573_v25  ;;  %v1834_v25 = vmul.f32 0.70710677, %v1698_v43 }
 0xe12   :  { %v9290_v10 = vpop.f32.mrb[47].mxu0  ;;  %v8484_v24 = vpop.eup %8483  ;;  %v1904_v49 = vadd.f32 1.0, %v8482_v40  ;;  %8503 = verf.f32 %v1847_v12  ;;  %v9324_v48 = vmul.f32 %v1891_v14, %v9277_v35  ;;  %v9336_v14 = vmul.f32 0.5, %v1655_v1 }
 0xe13   :  { %v9294_v17 = vpop.f32.mrb[47].mxu1  ;;  %v1906_v20 = vadd.f32 1.0, %v8484_v24  ;;  %v8486_v5 = vpop.eup %8485  ;;  %v9312_v24 = vmul.f32 0.5, %v1575_v30  ;;  %8505 = verf.f32 %v1832_v36  ;;  %v1702_v36 = vadd.f32 %v1701_v41, %v9253_v55 }
 0xe14   :  { %v9299_v37 = vmul.f32 %v1904_v49, %v1808_v39  ;;  %v8488_v56 = vpop.eup %8487  ;;  %v1814_v39 = vmul.f32 0.5, %v1616_v26  ;;  %v9314_v49 = vmul.f32 0.5, %v1618_v22  ;;  %v1700_v22 = vadd.f32 %v1699_v2, %v9259_v63 }
 0xe15   :  { %v9302_v42 = vmul.f32 %v1906_v20, %v1810_v38  ;;  %v8490_v57 = vpop.eup %8489  ;;  %v1740_v28 = vpop.f32.mrb[48].mxu0  ;;  %v1905_v38 = vadd.f32 1.0, %v8486_v5  ;;  %v9317_v20 = vmul.f32 %v1889_v58, %v9275_v33  ;;  %v1892_v19 = vadd.f32 1.0, %v8488_v56 }
 0xe16   :  { %v1783_v59 = vpop.f32.mrb[48].mxu1  ;;  %v8492_v40 = vpop.eup %8491  ;;  %v1894_v30 = vadd.f32 1.0, %v8490_v57  ;;  %v1833_v5 = vmul.f32 0.70710677, %v1657_v44  ;;  %8507 = verf.f32 %v1834_v25  ;;  %v1659_v56 = vadd.f32 %v1658_v6, %v9250_v50 }
 0xe17   :  { %v1742_v46 = vpop.f32.mrb[49].mxu0  ;;  %v1785_v12 = vpop.f32.mrb[49].mxu1  ;;  %v1907_v58 = vadd.f32 1.0, %v8492_v40  ;;  %v9334_v27 = vmul.f32 %v1905_v38, %v9280_v54  ;;  %v9338_v57 = vmul.f32 0.5, %v1698_v43  ;;  %v9341_v21 = vmul.f32 %v1892_v19, %v9284_v7 }
 0xe18   :  { %v9319_v26 = vpop.f32.mrb[50].mxu0  ;;  %v9321_v34 = vpop.f32.mrb[50].mxu1  ;;  %v1835_v40 = vmul.f32 0.70710677, %v1700_v22  ;;  %v1848_v25 = vmul.f32 0.70710677, %v1659_v56  ;;  %v9344_v50 = vmul.f32 %v1894_v30, %v9286_v47  ;;  %8509 = verf.f32 %v1833_v5 }
 0xe19   :  { %v8494_v0 = vpop.eup %8493  ;;  %v9327_v51 = vpop.f32.mrb[51].mxu0  ;;  %v1850_v54 = vmul.f32 0.70710677, %v1702_v36  ;;  %v1661_v1 = vadd.f32 %v9290_v10, %v9256_v61  ;;  %v1704_v7 = vadd.f32 %v9294_v17, %v9259_v63  ;;  %v1939_v43 = vmul.f32 %v1907_v58, %v9282_v29 }
 0xe1a   :  { %v9329_v32 = vpop.f32.mrb[51].mxu1  ;;  %v8496_v33 = vpop.eup %8495  ;;  %8511 = verf.f32 %v1835_v40  ;;  %v1893_v38 = vadd.f32 1.0, %v8494_v0  ;;  %v9359_v30 = vmul.f32 0.5, %v1657_v44  ;;  %v9362_v63 = vadd.f32 %v1740_v28, %v9262_v8 }
 0xe1b   :  { %v8498_v31 = vpop.eup %8497  ;;  %v1908_v35 = vadd.f32 1.0, %v8496_v33  ;;  %8513 = verf.f32 %v1848_v25  ;;  %v1851_v61 = vmul.f32 0.70710677, %v1704_v7  ;;  %v9365_v0 = vadd.f32 %v1783_v59, %v9267_v13 }
 0xe1c   :  { %v8500_v2 = vpop.eup %8499  ;;  %v1910_v3 = vadd.f32 1.0, %v8498_v31  ;;  %8515 = verf.f32 %v1850_v54  ;;  %v9368_v17 = vadd.f32 %v1742_v46, %v9270_v18  ;;  %v9371_v5 = vmul.f32 %v1893_v38, %v9288_v9 }
 0xe1d   :  { %v9346_v55 = vmul.f32 %v1908_v35, %v1812_v53  ;;  %v8502_v6 = vpop.eup %8501  ;;  %v1895_v53 = vadd.f32 1.0, %v8500_v2  ;;  %v1836_v44 = vmul.f32 0.70710677, %v9362_v63  ;;  %v9375_v33 = vadd.f32 %v1785_v12, %v9273_v52 }
 0xe1e   :  { %v9348_v41 = vmul.f32 %v1910_v3, %v1814_v39  ;;  %v8504_v31 = vpop.eup %8503  ;;  %v1849_v39 = vmul.f32 0.70710677, %v1661_v1  ;;  %v1909_v19 = vadd.f32 1.0, %v8502_v6  ;;  %v9380_v35 = vmul.f32 0.5, %v1700_v22  ;;  %v8209_v22 = vld [vmem:[%s10878_s10 + $0x100] sm:$0xff]  }
 0xe1f   :  { %v1956_v47 = vpack.c.bf16 %v9346_v55, %v9341_v21  ;;  %v8506_v10 = vpop.eup %8505  ;;  %v1911_v29 = vadd.f32 1.0, %v8504_v31  ;;  %v9378_v58 = vmul.f32 %v1895_v53, %v9308_v23  ;;  %v1816_v59 = vmul.f32 0.5, %v1659_v56  ;;  %v8246_v21 = vld [vmem:[%s10878_s10 + $0x288] sm:$0xff]   ;;  %v8247_v55 = vld [vmem:[%s10878_s10 + $0x250] sm:$0xff]  }
 0xe20   :  { %v1958_v3 = vpack.c.bf16 %v9348_v41, %v9344_v50  ;;  %8517 = verf.f32 %v1849_v39  ;;  %v8508_v28 = vpop.eup %8507  ;;  %v1838_v2 = vmul.f32 0.70710677, %v9365_v0  ;;  %v9384_v46 = vmul.f32 %v1909_v19, %v9312_v24  ;;  %v8214_v19 = vld [vmem:[%s10878_s10 + $0x188] sm:$0xff]   ;;  %v8248_v50 = vld [vmem:[%s10878_s10 + $0x2d0] sm:$0xff]  }
 0xe21   :  { %8519 = verf.f32 %v1851_v61  ;;  %v1896_v9 = vadd.f32 1.0, %v8506_v10  ;;  %v1818_v40 = vmul.f32 0.5, %v1702_v36  ;;  %v1837_v25 = vmul.f32 0.70710677, %v9368_v17  ;;  %v8249_v41 = vld [vmem:[%s10878_s10 + $0x210] sm:$0xff]  }
 0xe22   :  { %v9388_v54 = vmul.f32 %v1911_v29, %v9314_v49  ;;  %v1817_v12 = vmul.f32 0.5, %v1661_v1  ;;  %v1839_v6 = vmul.f32 0.70710677, %v9375_v33  ;;  %v1953_v23 = vpack.c.bf16 %v9334_v27, %v9317_v20  ;;  %v8510_v56 = vpop.eup %8509  ;;  %v8210_v49 = vld [vmem:[%s10878_s10 + $0x180] sm:$0xff]   ;;  %v8211_v27 = vld [vmem:[%s10878_s10 + $0x148] sm:$0xff]   ;;  %v8216_v29 = vld [vmem:[%s10878_s10 + $0x1d0] sm:$0xff]  }
 0xe23   :  { %v1898_v24 = vadd.f32 1.0, %v8508_v28  ;;  %8521 = verf.f32 %v1836_v44  ;;  %v1955_v36 = vpack.c.bf16 %v1939_v43, %v9324_v48  ;;  %v9399_v31 = vadd.f32 %v9319_v26, %v9262_v8  ;;  %v8212_v48 = vld [vmem:[%s10878_s10 + $0x1c8] sm:$0xff]  }
 0xe24   :  { %v8512_v20 = vpop.eup %8511  ;;  %v1819_v1 = vmul.f32 0.5, %v1704_v7  ;;  %8523 = verf.f32 %v1838_v2  ;;  %3031 = vmatprep.mubr.bf16.mxu0 %v1953_v23  ;;  %v9409_v38 = vadd.f32 %v9321_v34, %v9267_v13  ;;  %v9413_v8 = vadd.f32 %v9327_v51, %v9270_v18  ;;  %v8217_v23 = vld [vmem:[%s10878_s10 + $0x110] sm:$0xff]  }
 0xe25   :  { %v8514_v26 = vpop.eup %8513  ;;  %v9419_v43 = vmul.f32 %v1896_v9, %v9336_v14  ;;  %8525 = verf.f32 %v1837_v25  ;;  %3072 = vmatprep.mubr.bf16.mxu1 %v1955_v36  ;;  %v1852_v7 = vmul.f32 0.70710677, %v9399_v31  ;;  %v10925_v34 = vpack.c.bf16 %v9299_v37, %v9292_v45  ;;  %v8213_v45 = vld [vmem:[%s10878_s10 + $0x108] sm:$0xff]  }
 0xe26   :  { %v9427_v13 = vadd.f32 %v9329_v32, %v9273_v52  ;;  %v8516_v18 = vpop.eup %8515  ;;  %v1897_v51 = vadd.f32 1.0, %v8510_v56  ;;  %v1912_v53 = vadd.f32 1.0, %v8514_v26  ;;  %8527 = verf.f32 %v1839_v6 }
 0xe27   :  { %3032 = vmatmul.mubr.bf16.vlgmr.msra.gmra.mrb[52].mxu0 %v10925_v34  ;;  %v1854_v39 = vmul.f32 0.70710677, %v9409_v38  ;;  %v10926_v14 = vpack.c.bf16 %v9302_v42, %v9296_v4  ;;  %v9437_v37 = vmul.f32 %v1898_v24, %v9338_v57  ;;  %v1914_v32 = vadd.f32 1.0, %v8516_v18  ;;  %v8215_v4 = vld [vmem:[%s10878_s10 + $0x150] sm:$0xff]  }
 0xe28   :  { %7544 = vmatpush3.bf16.msra.mxu0 %v8209_v22  ;;  %8529 = verf.f32 %v1852_v7  ;;  %v1853_v52 = vmul.f32 0.70710677, %v9413_v8  ;;  %v1899_v61 = vadd.f32 1.0, %v8512_v20  ;;  %v9446_v10 = vmul.f32 %v1912_v53, %v1816_v59  ;;  %v8222_v20 = vld [vmem:[%s10878_s10 + $0x198] sm:$0xff]   ;;  %v8224_v7 = vld [vmem:[%s10878_s10 + $0x1e0] sm:$0xff]  }
 0xe29   :  { %3073 = vmatmul.mubr.bf16.vlgmr.msra.gmra.mrb[52].mxu1 %v10926_v14  ;;  %7545 = vmatprep.subr.bf16.mxu0 %v8211_v27  ;;  %8531 = verf.f32 %v1854_v39  ;;  %v1855_v57 = vmul.f32 0.70710677, %v9427_v13  ;;  %v9452_v28 = vmul.f32 %v1914_v32, %v1818_v40  ;;  %v1957_v9 = vpack.c.bf16 %v9384_v46, %v9371_v5  ;;  %v8218_v46 = vld [vmem:[%s10878_s10 + $0x190] sm:$0xff]  }
 0xe2a   :  { %7566 = vmatpush3.bf16.msra.mxu1 %v8210_v49  ;;  %v8518_v42 = vpop.eup %8517  ;;  %8533 = verf.f32 %v1853_v52  ;;  %v1960_v59 = vpack.c.bf16 %v9446_v10, %v9419_v43  ;;  %v1959_v6 = vpack.c.bf16 %v9388_v54, %v9378_v58  ;;  %v9464_v40 = vmul.f32 %v1897_v51, %v9359_v30  ;;  %v8219_v58 = vld [vmem:[%s10878_s10 + $0x158] sm:$0xff]   ;;  %v8278_v43 = vld [vmem:[%s10878_s10 + $0x388] sm:$0xff]   ;;  %v8279_v10 = vld [vmem:[%s10878_s10 + $0x350] sm:$0xff]  }
 0xe2b   :  { %7567 = vmatprep.subr.bf16.mxu1 %v8212_v48  ;;  %v8520_v44 = vpop.eup %8519  ;;  %v1913_v2 = vadd.f32 1.0, %v8518_v42  ;;  %8535 = verf.f32 %v1855_v57  ;;  %v1962_v22 = vpack.c.bf16 %v9452_v28, %v9437_v37  ;;  %v9477_v54 = vmul.f32 %v1899_v61, %v9380_v35  ;;  %3113 = vmatprep.mubr.bf16.mxu0 %v1957_v9  ;;  %v8221_v35 = vld [vmem:[%s10878_s10 + $0x118] sm:$0xff]   ;;  %v8280_v37 = vld [vmem:[%s10878_s10 + $0x3d0] sm:$0xff]  }
 0xe2c   :  { %v1915_v25 = vadd.f32 1.0, %v8520_v44  ;;  %7546 = vmatpush3.bf16.msra.mxu0 %v8213_v45  ;;  %3154 = vmatprep.mubr.bf16.mxu1 %v1959_v6  ;;  %v1804_v18 = vmul.f32 0.5, %v9362_v63  ;;  %v1806_v51 = vmul.f32 0.5, %v9365_v0  ;;  %v1805_v14 = vmul.f32 0.5, %v9368_v17  ;;  %v8226_v17 = vld [vmem:[%s10878_s10 + $0x1a0] sm:$0xff]   ;;  %v8281_v28 = vld [vmem:[%s10878_s10 + $0x310] sm:$0xff]  }
 0xe2d   :  { %v9468_v5 = vmul.f32 %v1913_v2, %v1817_v12  ;;  %7547 = vmatprep.subr.bf16.mxu0 %v8215_v4  ;;  %v8220_v12 = vld [vmem:[%s10878_s10 + $0x1d8] sm:$0xff]   ;;  %v8522_v56 = vpop.eup %8521  ;;  %v1820_v32 = vmul.f32 0.5, %v9399_v31  ;;  %v1807_v42 = vmul.f32 0.5, %v9375_v33  ;;  %v1822_v63 = vmul.f32 0.5, %v9409_v38  ;;  %v8227_v31 = vld [vmem:[%s10878_s10 + $0x168] sm:$0xff]  }
 0xe2e   :  { %7568 = vmatpush3.bf16.msra.mxu1 %v8214_v19  ;;  %v9479_v30 = vmul.f32 %v1915_v25, %v1819_v1  ;;  %v8524_v36 = vpop.eup %8523  ;;  %v8223_v1 = vld [vmem:[%s10878_s10 + $0x160] sm:$0xff]   ;;  %v1900_v26 = vadd.f32 1.0, %v8522_v56  ;;  %v1821_v33 = vmul.f32 0.5, %v9413_v8  ;;  %v8228_v38 = vld [vmem:[%s10878_s10 + $0x1e8] sm:$0xff]   ;;  %v1823_v6 = vmul.f32 0.5, %v9427_v13 }
 0xe2f   :  { %7569 = vmatprep.subr.bf16.mxu1 %v8216_v29  ;;  %v1961_v24 = vpack.c.bf16 %v9468_v5, %v9464_v40  ;;  %v8526_v27 = vpop.eup %8525  ;;  %v1902_v53 = vadd.f32 1.0, %v8524_v36  ;;  %v8225_v19 = vld [vmem:[%s10878_s10 + $0x120] sm:$0xff]   ;;  %v8229_v8 = vld [vmem:[%s10878_s10 + $0x128] sm:$0xff]   ;;  %v8252_v40 = vld [vmem:[%s10878_s10 + $0x2d8] sm:$0xff]  }
 0xe30   :  { %7548 = vmatpush3.bf16.msra.mxu0 %v8217_v23  ;;  %v1963_v49 = vpack.c.bf16 %v9479_v30, %v9477_v54  ;;  %v8528_v48 = vpop.eup %8527  ;;  %v1901_v45 = vadd.f32 1.0, %v8526_v27  ;;  %v9515_v29 = vmul.f32 %v1900_v26, %v1804_v18  ;;  %v8230_v13 = vld [vmem:[%s10878_s10 + $0x1a8] sm:$0xff]   ;;  %v8231_v27 = vld [vmem:[%s10878_s10 + $0x170] sm:$0xff]   ;;  %v8236_v18 = vld [vmem:[%s10878_s10 + $0x1f8] sm:$0xff]  }
 0xe31   :  { %7549 = vmatprep.subr.bf16.mxu0 %v8219_v58  ;;  %v1903_v61 = vadd.f32 1.0, %v8528_v48  ;;  %v9523_v9 = vmul.f32 %v1902_v53, %v1806_v51  ;;  %v8233_v26 = vld [vmem:[%s10878_s10 + $0x130] sm:$0xff]   ;;  %v8237_v51 = vld [vmem:[%s10878_s10 + $0x138] sm:$0xff]   ;;  %v8255_v30 = vld [vmem:[%s10878_s10 + $0x260] sm:$0xff]  }
 0xe32   :  { %7570 = vmatpush3.bf16.msra.mxu1 %v8218_v46  ;;  %v8530_v34 = vpop.eup %8529  ;;  %v9528_v46 = vmul.f32 %v1901_v45, %v1805_v14  ;;  %v8238_v53 = vld [vmem:[%s10878_s10 + $0x1b8] sm:$0xff]   ;;  %v8240_v14 = vld [vmem:[%s10878_s10 + $0x2c0] sm:$0xff]  }
 0xe33   :  { %7571 = vmatprep.subr.bf16.mxu1 %v8220_v12  ;;  %v8532_v39 = vpop.eup %8531  ;;  %v1916_v52 = vadd.f32 1.0, %v8530_v34  ;;  %v9537_v56 = vmul.f32 %v1903_v61, %v1807_v42  ;;  %v8235_v34 = vld [vmem:[%s10878_s10 + $0x178] sm:$0xff]   ;;  %v8241_v45 = vld [vmem:[%s10878_s10 + $0x200] sm:$0xff]   ;;  %v8259_v61 = vld [vmem:[%s10878_s10 + $0x268] sm:$0xff]  }
 0xe34   :  { %7550 = vmatpush3.bf16.msra.mxu0 %v8221_v35  ;;  %v8534_v4 = vpop.eup %8533  ;;  %v1918_v0 = vadd.f32 1.0, %v8532_v39  ;;  %v8239_v39 = vld [vmem:[%s10878_s10 + $0x240] sm:$0xff]   ;;  %v8253_v5 = vld [vmem:[%s10878_s10 + $0x218] sm:$0xff]  }
 0xe35   :  { %7551 = vmatprep.subr.bf16.mxu0 %v8223_v1  ;;  %v8536_v57 = vpop.eup %8535  ;;  %v9517_v44 = vmul.f32 %v1916_v52, %v1820_v32  ;;  %v1917_v2 = vadd.f32 1.0, %v8534_v4  ;;  %v8242_v32 = vld [vmem:[%s10878_s10 + $0x280] sm:$0xff]   ;;  %v8243_v52 = vld [vmem:[%s10878_s10 + $0x248] sm:$0xff]   ;;  %v8254_v54 = vld [vmem:[%s10878_s10 + $0x298] sm:$0xff]  }
 0xe36   :  { %7572 = vmatpush3.bf16.msra.mxu1 %v8222_v20  ;;  %v9525_v25 = vmul.f32 %v1918_v0, %v1822_v63  ;;  %v1919_v23 = vadd.f32 1.0, %v8536_v57  ;;  %v8232_v20 = vld [vmem:[%s10878_s10 + $0x1f0] sm:$0xff]   ;;  %v8245_v4 = vld [vmem:[%s10878_s10 + $0x208] sm:$0xff]   ;;  %v8258_v42 = vld [vmem:[%s10878_s10 + $0x2a0] sm:$0xff]  }
 0xe37   :  { %7573 = vmatprep.subr.bf16.mxu1 %v8224_v7  ;;  %v1964_v58 = vpack.c.bf16 %v9517_v44, %v9515_v29  ;;  %v9532_v12 = vmul.f32 %v1917_v2, %v1821_v33  ;;  %v8234_v7 = vld [vmem:[%s10878_s10 + $0x1b0] sm:$0xff]   ;;  %v8260_v63 = vld [vmem:[%s10878_s10 + $0x2e8] sm:$0xff]  }
 0xe38   :  { %7552 = vmatpush3.bf16.msra.mxu0 %v8225_v19  ;;  %v1966_v36 = vpack.c.bf16 %v9525_v25, %v9523_v9  ;;  %v9541_v35 = vmul.f32 %v1919_v23, %v1823_v6  ;;  %v8244_v19 = vld [vmem:[%s10878_s10 + $0x2c8] sm:$0xff]   ;;  %v8264_v57 = vld [vmem:[%s10878_s10 + $0x2f0] sm:$0xff]   ;;  %v8268_v6 = vld [vmem:[%s10878_s10 + $0x2f8] sm:$0xff]  }
 0xe39   :  { %7553 = vmatprep.subr.bf16.mxu0 %v8227_v31  ;;  %v1965_v1 = vpack.c.bf16 %v9532_v12, %v9528_v46  ;;  %v8261_v0 = vld [vmem:[%s10878_s10 + $0x228] sm:$0xff]   ;;  %v8263_v31 = vld [vmem:[%s10878_s10 + $0x270] sm:$0xff]   ;;  %v8269_v23 = vld [vmem:[%s10878_s10 + $0x238] sm:$0xff]  }
 0xe3a   :  { %7574 = vmatpush3.bf16.msra.mxu1 %v8226_v17  ;;  %v1967_v48 = vpack.c.bf16 %v9541_v35, %v9537_v56  ;;  %v8262_v17 = vld [vmem:[%s10878_s10 + $0x2a8] sm:$0xff]   ;;  %v8265_v33 = vld [vmem:[%s10878_s10 + $0x230] sm:$0xff]   ;;  %v8284_v46 = vld [vmem:[%s10878_s10 + $0x3d8] sm:$0xff]  }
 0xe3b   :  { %7575 = vmatprep.subr.bf16.mxu1 %v8228_v38  ;;  %v8266_v2 = vld [vmem:[%s10878_s10 + $0x2b0] sm:$0xff]   ;;  %v8267_v38 = vld [vmem:[%s10878_s10 + $0x278] sm:$0xff]   ;;  %v8287_v35 = vld [vmem:[%s10878_s10 + $0x360] sm:$0xff]  }
 0xe3c   :  { %7554 = vmatpush3.bf16.msra.mxu0 %v8229_v8  ;;  %v8270_v8 = vld [vmem:[%s10878_s10 + $0x2b8] sm:$0xff]  }
 0xe3d   :  { %7555 = vmatprep.subr.bf16.mxu0 %v8231_v27  ;;  %v8272_v27 = vld [vmem:[%s10878_s10 + $0x3c0] sm:$0xff]   ;;  %v8285_v12 = vld [vmem:[%s10878_s10 + $0x318] sm:$0xff]  }
 0xe3e   :  { %7576 = vmatpush3.bf16.msra.mxu1 %v8230_v13  ;;  %v8271_v13 = vld [vmem:[%s10878_s10 + $0x340] sm:$0xff]   ;;  %v8286_v56 = vld [vmem:[%s10878_s10 + $0x398] sm:$0xff]  }
 0xe3f   :  { %7577 = vmatprep.subr.bf16.mxu1 %v8232_v20  ;;  %v8273_v20 = vld [vmem:[%s10878_s10 + $0x300] sm:$0xff]  }
 0xe40   :  { %7556 = vmatpush3.bf16.msra.mxu0 %v8233_v26  ;;  %v8274_v26 = vld [vmem:[%s10878_s10 + $0x380] sm:$0xff]  }
 0xe41   :  { %7557 = vmatprep.subr.bf16.mxu0 %v8235_v34  ;;  %v8276_v34 = vld [vmem:[%s10878_s10 + $0x3c8] sm:$0xff]  }
 0xe42   :  { %7578 = vmatpush3.bf16.msra.mxu1 %v8234_v7  ;;  %v8275_v7 = vld [vmem:[%s10878_s10 + $0x348] sm:$0xff]  }
 0xe43   :  { %7579 = vmatprep.subr.bf16.mxu1 %v8236_v18  ;;  %v8277_v18 = vld [vmem:[%s10878_s10 + $0x308] sm:$0xff]  }
 0xe44   :  { %7558 = vmatpush3.bf16.msra.mxu0 %v8237_v51  ;;  %v8290_v51 = vld [vmem:[%s10878_s10 + $0x3a0] sm:$0xff]  }
 0xe45   :  { %7587 = vmatprep.subr.bf16.mxu0 %v8239_v39  ;;  %v8292_v39 = vld [vmem:[%s10878_s10 + $0x3e8] sm:$0xff]  }
 0xe46   :  { %7580 = vmatpush3.bf16.msra.mxu1 %v8238_v53  ;;  %v8291_v53 = vld [vmem:[%s10878_s10 + $0x368] sm:$0xff]  }
 0xe47   :  { %7609 = vmatprep.subr.bf16.mxu1 %v8240_v14  ;;  %3114 = vmatmul.mubr.bf16.vlgmr.msra.gmra.mrb[56].mxu0 %v1956_v47  ;;  %v8250_v47 = vld [vmem:[%s10878_s10 + $0x290] sm:$0xff]   ;;  %v8293_v14 = vld [vmem:[%s10878_s10 + $0x328] sm:$0xff]  }
 0xe48   :  { %7588 = vmatpush3.bf16.msra.mxu0 %v8241_v45  ;;  %3195 = vmatprep.mubr.bf16.mxu0 %v1961_v24  ;;  %v8256_v24 = vld [vmem:[%s10878_s10 + $0x2e0] sm:$0xff]   ;;  %v8294_v45 = vld [vmem:[%s10878_s10 + $0x3a8] sm:$0xff]  }
 0xe49   :  { %3155 = vmatmul.mubr.bf16.vlgmr.msra.gmra.mrb[56].mxu1 %v1958_v3  ;;  %7589 = vmatprep.subr.bf16.mxu0 %v8243_v52  ;;  %v8251_v3 = vld [vmem:[%s10878_s10 + $0x258] sm:$0xff]   ;;  %v8296_v52 = vld [vmem:[%s10878_s10 + $0x3f0] sm:$0xff]  }
 0xe4a   :  { %7610 = vmatpush3.bf16.msra.mxu1 %v8242_v32  ;;  %3236 = vmatprep.mubr.bf16.mxu1 %v1963_v49  ;;  %v8257_v49 = vld [vmem:[%s10878_s10 + $0x220] sm:$0xff]   ;;  %v8295_v32 = vld [vmem:[%s10878_s10 + $0x370] sm:$0xff]  }
 0xe4b   :  { %7611 = vmatprep.subr.bf16.mxu1 %v8244_v19  ;;  %v8297_v19 = vld [vmem:[%s10878_s10 + $0x330] sm:$0xff]  }
 0xe4c   :  { %7590 = vmatpush3.bf16.msra.mxu0 %v8245_v4  ;;  %v8298_v4 = vld [vmem:[%s10878_s10 + $0x3b0] sm:$0xff]  }
 0xe4d   :  { %7591 = vmatprep.subr.bf16.mxu0 %v8247_v55  ;;  %v8300_v55 = vld [vmem:[%s10878_s10 + $0x3f8] sm:$0xff]  }
 0xe4e   :  { %7612 = vmatpush3.bf16.msra.mxu1 %v8246_v21  ;;  %v8299_v21 = vld [vmem:[%s10878_s10 + $0x378] sm:$0xff]  }
 0xe4f   :  { %7613 = vmatprep.subr.bf16.mxu1 %v8248_v50  ;;  %v8301_v50 = vld [vmem:[%s10878_s10 + $0x338] sm:$0xff]  }
 0xe50   :  { %7592 = vmatpush3.bf16.msra.mxu0 %v8249_v41  ;;  %v8302_v41 = vld [vmem:[%s10878_s10 + $0x3b8] sm:$0xff]  }
 0xe51   :  { %7593 = vmatprep.subr.bf16.mxu0 %v8251_v3 }
 0xe52   :  { %7614 = vmatpush3.bf16.msra.mxu1 %v8250_v47  ;;  %v10927_v47 = vmov 0.0  }
 0xe53   :  { %7615 = vmatprep.subr.bf16.mxu1 %v8252_v40 }
 0xe54   :  { %7594 = vmatpush3.bf16.msra.mxu0 %v8253_v5  ;;  %v6824_v5 = vld [vmem:[%s10882_s11] ss:$0 sm:$0xff] }
 0xe55   :  { %7595 = vmatprep.subr.bf16.mxu0 %v8255_v30 }
 0xe56   :  { %7616 = vmatpush3.bf16.msra.mxu1 %v8254_v54 }
 0xe57   :  { %7617 = vmatprep.subr.bf16.mxu1 %v8256_v24 }
 0xe58   :  { %7596 = vmatpush3.bf16.msra.mxu0 %v8257_v49 }
 0xe59   :  { %7597 = vmatprep.subr.bf16.mxu0 %v8259_v61 }
 0xe5a   :  { %7618 = vmatpush3.bf16.msra.mxu1 %v8258_v42 }
 0xe5b   :  { %7619 = vmatprep.subr.bf16.mxu1 %v8260_v63 }
 0xe5c   :  { %7598 = vmatpush3.bf16.msra.mxu0 %v8261_v0 }
 0xe5d   :  { %7599 = vmatprep.subr.bf16.mxu0 %v8263_v31 }
 0xe5e   :  { %7620 = vmatpush3.bf16.msra.mxu1 %v8262_v17 }
 0xe5f   :  { %7621 = vmatprep.subr.bf16.mxu1 %v8264_v57 }
 0xe60   :  { %7600 = vmatpush3.bf16.msra.mxu0 %v8265_v33 }
 0xe61   :  { %7601 = vmatprep.subr.bf16.mxu0 %v8267_v38 }
 0xe62   :  { %7622 = vmatpush3.bf16.msra.mxu1 %v8266_v2 }
 0xe63   :  { %7623 = vmatprep.subr.bf16.mxu1 %v8268_v6 }
 0xe64   :  { %7602 = vmatpush3.bf16.msra.mxu0 %v8269_v23 }
 0xe65   :  { %7631 = vmatprep.subr.bf16.mxu0 %v8271_v13 }
 0xe66   :  { %7624 = vmatpush3.bf16.msra.mxu1 %v8270_v8 }
 0xe67   :  { %7653 = vmatprep.subr.bf16.mxu1 %v8272_v27  ;;  %3196 = vmatmul.mubr.bf16.vlgmr.msra.gmra.mrb[60].mxu0 %v1960_v59  ;;  %v8282_v59 = vld [vmem:[%s10878_s10 + $0x390] sm:$0xff]  }
 0xe68   :  { %7632 = vmatpush3.bf16.msra.mxu0 %v8273_v20  ;;  %3277 = vmatprep.mubr.bf16.mxu0 %v1965_v1  ;;  %v8288_v1 = vld [vmem:[%s10878_s10 + $0x3e0] sm:$0xff]  }
 0xe69   :  { %3237 = vmatmul.mubr.bf16.vlgmr.msra.gmra.mrb[60].mxu1 %v1962_v22  ;;  %7633 = vmatprep.subr.bf16.mxu0 %v8275_v7  ;;  %v8283_v22 = vld [vmem:[%s10878_s10 + $0x358] sm:$0xff]  }
 0xe6a   :  { %7654 = vmatpush3.bf16.msra.mxu1 %v8274_v26  ;;  %3318 = vmatprep.mubr.bf16.mxu1 %v1967_v48  ;;  %v8289_v48 = vld [vmem:[%s10878_s10 + $0x320] sm:$0xff]  }
 0xe6b   :  { %7655 = vmatprep.subr.bf16.mxu1 %v8276_v34 }
 0xe6c   :  { %7634 = vmatpush3.bf16.msra.mxu0 %v8277_v18 }
 0xe6d   :  { %7635 = vmatprep.subr.bf16.mxu0 %v8279_v10 }
 0xe6e   :  { %7656 = vmatpush3.bf16.msra.mxu1 %v8278_v43 }
 0xe6f   :  { %7657 = vmatprep.subr.bf16.mxu1 %v8280_v37 }
 0xe70   :  { %7636 = vmatpush3.bf16.msra.mxu0 %v8281_v28 }
 0xe71   :  { %7637 = vmatprep.subr.bf16.mxu0 %v8283_v22 }
 0xe72   :  { %7658 = vmatpush3.bf16.msra.mxu1 %v8282_v59 }
 0xe73   :  { %7659 = vmatprep.subr.bf16.mxu1 %v8284_v46 }
 0xe74   :  { %7638 = vmatpush3.bf16.msra.mxu0 %v8285_v12 }
 0xe75   :  { %7639 = vmatprep.subr.bf16.mxu0 %v8287_v35 }
 0xe76   :  { %7660 = vmatpush3.bf16.msra.mxu1 %v8286_v56 }
 0xe77   :  { %7661 = vmatprep.subr.bf16.mxu1 %v8288_v1 }
 0xe78   :  { %7640 = vmatpush3.bf16.msra.mxu0 %v8289_v48 }
 0xe79   :  { %7641 = vmatprep.subr.bf16.mxu0 %v8291_v53 }
 0xe7a   :  { %7662 = vmatpush3.bf16.msra.mxu1 %v8290_v51 }
 0xe7b   :  { %7663 = vmatprep.subr.bf16.mxu1 %v8292_v39 }
 0xe7c   :  { %7642 = vmatpush3.bf16.msra.mxu0 %v8293_v14 }
 0xe7d   :  { %7643 = vmatprep.subr.bf16.mxu0 %v8295_v32 }
 0xe7e   :  { %7664 = vmatpush3.bf16.msra.mxu1 %v8294_v45 }
 0xe7f   :  { %7665 = vmatprep.subr.bf16.mxu1 %v8296_v52 }
 0xe80   :  { %7644 = vmatpush3.bf16.msra.mxu0 %v8297_v19 }
 0xe81   :  { %7645 = vmatprep.subr.bf16.mxu0 %v8299_v21 }
 0xe82   :  { %7666 = vmatpush3.bf16.msra.mxu1 %v8298_v4 }
 0xe83   :  { %7667 = vmatprep.subr.bf16.mxu1 %v8300_v55 }
 0xe84   :  { %7646 = vmatpush3.bf16.msra.mxu0 %v8301_v50 }
 0xe85   :  { %8004 = vmatprep.subr.bf16.mxu0 %v10927_v47 }
 0xe86   :  { %7668 = vmatpush3.bf16.msra.mxu1 %v8302_v41 }
 0xe87   :  { %8012 = vmatprep.subr.bf16.mxu1 %v10927_v47  ;;  %3278 = vmatmul.mubr.bf16.vlgmr.msra.gmra.mrb[64].mxu0 %v1964_v58 }
 0xe88   :  { %8008 = vmatprep.mubr.msk.bf16.mxu0 %vm8648_vm0, %v10927_v47 }
 0xe89   :  { %3319 = vmatmul.mubr.bf16.vlgmr.msra.gmra.mrb[64].mxu1 %v1966_v36 }
 0xe8a   :  { %8014 = vmatprep.mubr.msk.bf16.mxu1 %vm8648_vm0, %v10927_v47 }
 0xefa   :  { %v7515_v3 = vpop.f32.mrb[52].mxu0 }
 0xefb   :  { %v7516_v54 = vpop.f32.mrb[53].mxu0 }
 0xefc   :  { %v7537_v40 = vpop.f32.mrb[52].mxu1  ;;  %v7517_v30 = vadd.f32 %v7516_v54, %v7515_v3  ;;  %v7518_v44 = vpop.f32.mrb[54].mxu0 }
 0xefd   :  { %v7538_v29 = vpop.f32.mrb[53].mxu1  ;;  %v7519_v9 = vpop.f32.mrb[55].mxu0 }
 0xefe   :  { %v7539_v58 = vadd.f32 %v7538_v29, %v7537_v40  ;;  %v7540_v24 = vpop.f32.mrb[54].mxu1  ;;  %v3034_v25 = vadd.f32 %v7517_v30, %v6824_v5  ;;  %v7520_v36 = vadd.f32 %v7519_v9, %v7518_v44 }
 0xeff   :  { %v7541_v49 = vpop.f32.mrb[55].mxu1 }
 0xf00   :  { %v7542_v42 = vadd.f32 %v7541_v49, %v7540_v24  ;;  %v3075_v61 = vadd.f32 %v7539_v58, %v3034_v25  ;;  %v3037_v63 = vadd.f32 %v7520_v36, %v6824_v5 }
 0xf02   :  { %v3078_v0 = vadd.f32 %v7542_v42, %v3037_v63 }
 0xf1a   :  { %v7559_v17 = vpop.f32.mrb[56].mxu0 }
 0xf1b   :  { %v7560_v57 = vpop.f32.mrb[57].mxu0 }
 0xf1c   :  { %v7581_v31 = vpop.f32.mrb[56].mxu1  ;;  %v7561_v33 = vadd.f32 %v7560_v57, %v7559_v17  ;;  %v7562_v38 = vpop.f32.mrb[58].mxu0 }
 0xf1d   :  { %v7582_v2 = vpop.f32.mrb[57].mxu1  ;;  %v7563_v8 = vpop.f32.mrb[59].mxu0 }
 0xf1e   :  { %v7583_v6 = vadd.f32 %v7582_v2, %v7581_v31  ;;  %v7584_v23 = vpop.f32.mrb[58].mxu1  ;;  %v3116_v13 = vadd.f32 %v7561_v33, %v3075_v61  ;;  %v7564_v27 = vadd.f32 %v7563_v8, %v7562_v38  ;;  %v8304_v33 = vld [vmem:[%s10919_s23 + $0x18] sm:$0xff]  }
 0xf1f   :  { %v7585_v20 = vpop.f32.mrb[59].mxu1 }
 0xf20   :  { %v7586_v26 = vadd.f32 %v7585_v20, %v7584_v23  ;;  %v3157_v7 = vadd.f32 %v7583_v6, %v3116_v13  ;;  %v3119_v34 = vadd.f32 %v7564_v27, %v3078_v0  ;;  %v6953_v20 = vld [vmem:[%s10883_s12] ss:$0 sm:$0xff] }
 0xf22   :  { %v3160_v18 = vadd.f32 %v7586_v26, %v3119_v34 }
 0xf3a   :  { %v7603_v43 = vpop.f32.mrb[60].mxu0 }
 0xf3b   :  { %v7604_v37 = vpop.f32.mrb[61].mxu0 }
 0xf3c   :  { %v7625_v10 = vpop.f32.mrb[60].mxu1  ;;  %v7605_v28 = vadd.f32 %v7604_v37, %v7603_v43  ;;  %v7606_v22 = vpop.f32.mrb[62].mxu0  ;;  %v6954_v43 = vld [vmem:[%s10884_s13] ss:$0 sm:$0xff] }
 0xf3d   :  { %v7626_v59 = vpop.f32.mrb[61].mxu1  ;;  %v7607_v56 = vpop.f32.mrb[63].mxu0 }
 0xf3e   :  { %v7627_v46 = vadd.f32 %v7626_v59, %v7625_v10  ;;  %v7628_v12 = vpop.f32.mrb[62].mxu1  ;;  %v3198_v35 = vadd.f32 %v7605_v28, %v3157_v7  ;;  %v7608_v1 = vadd.f32 %v7607_v56, %v7606_v22  ;;  %v6960_v22 = vld [vmem:[%s10873_s3 + $0x1] ss:$0 sm:$0xff] }
 0xf3f   :  { %v7629_v48 = vpop.f32.mrb[63].mxu1 }
 0xf40   :  { %v7630_v51 = vadd.f32 %v7629_v48, %v7628_v12  ;;  %v3239_v53 = vadd.f32 %v7627_v46, %v3198_v35  ;;  %v3201_v39 = vadd.f32 %v7608_v1, %v3160_v18 }
 0xf42   :  { %v3242_v14 = vadd.f32 %v7630_v51, %v3201_v39 }
 0xf5a   :  { %v7647_v45 = vpop.f32.mrb[64].mxu0 }
 0xf5b   :  { %v7648_v52 = vpop.f32.mrb[65].mxu0 }
 0xf5c   :  { %v7669_v32 = vpop.f32.mrb[64].mxu1  ;;  %v7649_v19 = vadd.f32 %v7648_v52, %v7647_v45  ;;  %v7650_v21 = vpop.f32.mrb[66].mxu0 }
 0xf5d   :  { %v7670_v4 = vpop.f32.mrb[65].mxu1  ;;  %v7651_v41 = vpop.f32.mrb[67].mxu0 }
 0xf5e   :  { %v7671_v55 = vadd.f32 %v7670_v4, %v7669_v32  ;;  %v7672_v50 = vpop.f32.mrb[66].mxu1  ;;  %v3280_v3 = vadd.f32 %v7649_v19, %v3239_v53  ;;  %v7652_v40 = vadd.f32 %v7651_v41, %v7650_v21  ;;  %v9860_v19 = vld [vmem:[%s10874_s1] ss:$0 sm:$0xff]  ;;  %v9866_v41 = vld [vmem:[%s10874_s1 + $0x1] ss:$0 sm:$0xff]  ;;  %s10928_s1 = smov 80  }
 0xf5f   :  { %v7673_v5 = vpop.f32.mrb[67].mxu1 }
 0xf60   :  { %v7674_v54 = vadd.f32 %v7673_v5, %v7672_v50  ;;  %v3321_v30 = vadd.f32 %v7671_v55, %v3280_v3  ;;  %v3283_v29 = vadd.f32 %v7652_v40, %v3242_v14 }
 0xf62   :  { %v3324_v44 = vadd.f32 %v7674_v54, %v3283_v29  ;;  %v3327_v58 = vadd.f32 %v3321_v30, %v9039_v60 }
 0xf64   :  { %v3329_v24 = vsel %vm82_vm1, %v3327_v58, 0.0  ;;  %v3328_v9 = vadd.f32 %v3324_v44, %v9041_v62  ;;  %v8303_v62 = vld [vmem:[%s10919_s23 + $0x10] sm:$0xff]  }
 0xf65   :  { %3330 = vadd.xlane.f32.xlu0 %v3329_v24  ;;  %8005 = vmatpush3.bf16.msra.mxu0 %v8303_v62 }
 0xf66   :  { %v3332_v25 = vsel %vm82_vm1, %v3328_v9, 0.0  ;;  %8006 = vmatprep.subr.bf16.mxu0 %v10927_v47 }
 0xf67   :  { %3333 = vadd.xlane.f32.xlu1 %v3332_v25 }
 0xf69   :  { %8007 = vmatpush3.bf16.msra.mxu0 %v8304_v33 }
 0xf6a   :  { %8018 = vmatprep.subr.bf16.mxu0 %v10927_v47 }
 0xff2   :  { %v3331_v36 = vpop.xlane.xlu0 %3330 }
 0xff3   :  { %v3335_v49 = vmul.f32 0.03125, %v3331_v36 }
 0xff4   :  { %v3334_v42 = vpop.xlane.xlu1 %3333 }
 0xff5   :  { %v3337_v61 = vsub.f32 %v3327_v58, %v3335_v49  ;;  %v3336_v63 = vmul.f32 0.03125, %v3334_v42 }
 0xff7   :  { %v3338_v0 = vsub.f32 %v3328_v9, %v3336_v63  ;;  %v3339_v17 = vmul.f32 %v3337_v61, %v3337_v61 }
 0xff9   :  { %v3341_v31 = vsel %vm82_vm1, %v3339_v17, 0.0  ;;  %v3340_v57 = vmul.f32 %v3338_v0, %v3338_v0 }
 0xffa   :  { %3342 = vadd.xlane.f32.xlu0 %v3341_v31 }
 0xffb   :  { %v3344_v60 = vsel %vm82_vm1, %v3340_v57, 0.0 }
 0xffc   :  { %3345 = vadd.xlane.f32.xlu1 %v3344_v60 }
0x1087   :  { %v3343_v2 = vpop.xlane.xlu0 %3342 }
0x1088   :  { %v3347_v38 = vmul.f32 0.03125, %v3343_v2 }
0x1089   :  { %v3346_v6 = vpop.xlane.xlu1 %3345 }
0x108a   :  { %v3349_v23 = vadd.f32 1e-05, %v3347_v38  ;;  %v3348_v8 = vmul.f32 0.03125, %v3346_v6 }
0x108c   :  { %8537 = vrsqrt.f32 %v3349_v23  ;;  %v3350_v13 = vadd.f32 1e-05, %v3348_v8 }
0x108e   :  { %8539 = vrsqrt.f32 %v3350_v13 }
0x1096   :  { %v8538_v27 = vpop.eup %8537 }
0x1097   :  { %v3353_v26 = vmul.f32 %v8538_v27, %v3337_v61 }
0x1098   :  { %v8540_v7 = vpop.eup %8539 }
0x1099   :  { %v3362_v34 = vmul.f32 %v6953_v20, %v3353_v26  ;;  %v3354_v18 = vmul.f32 %v8540_v7, %v3338_v0 }
0x109b   :  { %v3363_v10 = vmul.f32 %v6953_v20, %v3354_v18  ;;  %v9825_v37 = vadd.f32 %v6954_v43, %v3362_v34 }
0x109d   :  { %v9827_v28 = vadd.f32 %v6954_v43, %v3363_v10 }
0x109f   :  { %v3373_v59 = vpack.c.bf16 %v9827_v28, %v9825_v37 }
0x10a1   :  { %8009 = vmatmul.mubr.msk.bf16.vlgmr.msra.gmra.mrb[68].mxu0 %vm82_vm1, %v3373_v59 }
0x10a2   :  { %8020 = vmatprep.mubr.msk.bf16.mxu0 %vm8648_vm0, %v10927_v47 }
0x1174   :  { %v3436_v46 = vpop.f32.mrb[68].mxu0 }
0x1175   :  { %v3437_v12 = vadd.f32 %v6960_v22, %v3436_v46  ;;  %v8010_v56 = vpop.f32.mrb[69].mxu0 }
0x1176   :  { %v3439_v35 = vpop.f32.mrb[70].mxu0 }
0x1177   :  { %v9837_v1 = vpack.c.bf16 %v3437_v12, %v3437_v12  ;;  %v3440_v48 = vadd.f32 %v6960_v22, %v3439_v35  ;;  %v8011_v51 = vpop.f32.mrb[71].mxu0 }
0x1179   :  { %v9839_v53 = vpack.c.bf16 %v3440_v48, %v3440_v48  ;;  %3446 = vrot.lane.b32.xlu0 %v9837_v1, %s8649_s0 }
0x117b   :  { %3495 = vrot.lane.b32.xlu1 %v9839_v53, %s8649_s0 }
0x11eb   :  { %v3447_v39 = vpop.permute.xlu0 %3446 }
0x11ec   :  { %v3452_v14 = vsel %vm144_vm2, %v3447_v39, 0 }
0x11ed   :  { %8013 = vmatpush3.bf16.xpose.msra.mxu1 %v3452_v14  ;;  %v3496_v45 = vpop.permute.xlu1 %3495 }
0x11ee   :  { %v3501_v32 = vsel %vm144_vm2, %v3496_v45, 0  ;;  %8024 = vmatprep.subr.bf16.mxu1 %v10927_v47 }
0x11ef   :  { %8019 = vmatpush3.bf16.xpose.msra.mxu0 %v3501_v32 }
0x11f0   :  { %8030 = vmatprep.subr.bf16.mxu0 %v10927_v47 }
0x11f4   :  { %8015 = vmatmul.mubr.msk.bf16.vlgmr.msra.gmra.mrb[68].mxu1 %vm144_vm2, %v9837_v1 }
0x11f5   :  { %8026 = vmatprep.mubr.msk.bf16.mxu1 %vm8648_vm0, %v10927_v47 }
0x11f6   :  { %8021 = vmatmul.mubr.msk.bf16.vlgmr.msra.gmra.mrb[72].mxu0 %vm144_vm2, %v9839_v53 }
0x11f7   :  { %8032 = vmatprep.mubr.msk.bf16.mxu0 %vm8648_vm0, %v10927_v47 }
0x12c7   :  { %v3488_v52 = vpop.f32.mrb[68].mxu1 }
0x12c8   :  { %v3489_v4 = vadd.f32 %v9860_v19, %v3488_v52  ;;  %v8016_v21 = vpop.f32.mrb[69].mxu1 }
0x12c9   :  { %v3491_v55 = vpop.f32.mrb[70].mxu1  ;;  %v3537_v50 = vpop.f32.mrb[72].mxu0 }
0x12ca   :  { %v3538_v3 = vadd.f32 %v9866_v41, %v3537_v50  ;;  %v8017_v40 = vpop.f32.mrb[71].mxu1  ;;  %v8022_v5 = vpop.f32.mrb[73].mxu0  ;;  %v3543_v54 = vsel %vm144_vm2, %v3489_v4, -inf }
0x12cb   :  { %3544 = vmax.xlane.f32.xlu1 %v3543_v54  ;;  %v3540_v30 = vpop.f32.mrb[74].mxu0 }
0x12cc   :  { %v8023_v29 = vpop.f32.mrb[75].mxu0  ;;  %v3546_v44 = vsel %vm144_vm2, %v3538_v3, -inf }
0x12cd   :  { %3547 = vmax.xlane.f32.xlu0 %v3546_v44 }
0x12dc   :  { %3615 = vrot.lane.b32.xlu1 %v9839_v53, %s8650_s21 }
0x12e3   :  { %3567 = vrot.lane.b32.xlu0 %v9837_v1, %s8650_s21  ;;  %s10929_s21 = smov 112  }
0x1358   :  { %v3545_v58 = vpop.xlane.xlu1 %3544 }
0x1359   :  { %v3549_v24 = vsub.f32 %v3489_v4, %v3545_v58 }
0x135a   :  { %v3548_v9 = vpop.xlane.xlu0 %3547 }
0x135b   :  { %v3551_v25 = vmul.f32 1.442695, %v3549_v24  ;;  %v3550_v36 = vsub.f32 %v3538_v3, %v3548_v9 }
0x135c   :  { %v3616_v49 = vpop.permute.xlu1 %3615 }
0x135d   :  { %8541 = vpow2.f32 %v3551_v25  ;;  %v3553_v42 = vmul.f32 1.442695, %v3550_v36  ;;  %v3621_v61 = vsel %vm269_vm3, %v3616_v49, 0 }
0x135e   :  { %8031 = vmatpush3.bf16.msra.mxu0 %v3621_v61  ;;  %v3568_v63 = vpop.permute.xlu0 %3567 }
0x135f   :  { %8543 = vpow2.f32 %v3553_v42  ;;  %v3573_v0 = vsel %vm269_vm3, %v3568_v63, 0  ;;  %8042 = vmatprep.subr.bf16.mxu0 %v10927_v47 }
0x1360   :  { %8025 = vmatpush3.bf16.msra.mxu1 %v3573_v0 }
0x1361   :  { %8036 = vmatprep.subr.bf16.mxu1 %v10927_v47 }
0x1367   :  { %v8542_v17 = vpop.eup %8541 }
0x1368   :  { %v3555_v31 = vsel %vm144_vm2, %v8542_v17, 0.0 }
0x1369   :  { %v8544_v57 = vpop.eup %8543  ;;  %3556 = vadd.xlane.f32.xlu0 %v3555_v31 }
0x136a   :  { %v3558_v60 = vsel %vm144_vm2, %v8544_v57, 0.0 }
0x136b   :  { %3559 = vadd.xlane.f32.xlu1 %v3558_v60 }
0x137c   :  { %3665 = vrot.lane.b32.xlu1 %v9837_v1, %s8651_s22 }
0x137f   :  { %3715 = vrot.lane.b32.xlu0 %v9839_v53, %s8651_s22  ;;  %s10930_s22 = smov 48  }
0x1380   :  { %3663 = vrot.lane.b32.xlu1 %v9837_v1, %s8652_s24 }
0x1383   :  { %3713 = vrot.lane.b32.xlu0 %v9839_v53, %s8652_s24  ;;  %s10931_s24 = smov 72  }
0x13f6   :  { %v3557_v62 = vpop.xlane.xlu0 %3556 }
0x13f7   :  { %8545 = vrcp.f32 %v3557_v62 }
0x13f8   :  { %v3560_v33 = vpop.xlane.xlu1 %3559 }
0x13f9   :  { %8547 = vrcp.f32 %v3560_v33 }
0x13fa   :  { %v3716_v27 = vpop.permute.xlu0 %3715 }
0x13fb   :  { %v3721_v7 = vsel %vm144_vm2, %v3716_v27, 0 }
0x13fc   :  { %v3666_v23 = vpop.permute.xlu1 %3665 }
0x13fd   :  { %v3671_v20 = vsel %vm144_vm2, %v3666_v23, 0 }
0x13fe   :  { %v3714_v18 = vpop.permute.xlu0 %3713 }
0x1400   :  { %v3664_v34 = vpop.permute.xlu1 %3663 }
0x1401   :  { %v8546_v2 = vpop.eup %8545 }
0x1402   :  { %v3562_v38 = vmul.f32 %v8546_v2, %v8542_v17 }
0x1403   :  { %v8548_v6 = vpop.eup %8547 }
0x1404   :  { %v3564_v8 = vmul.f32 %v8548_v6, %v8544_v57  ;;  %v3565_v13 = vpack.c.bf16 %v3562_v38, %v3562_v38 }
0x1406   :  { %8027 = vmatmul.mubr.msk.bf16.vlgmr.msra.gmra.mrb[72].mxu1 %vm144_vm2, %v3565_v13  ;;  %v3566_v26 = vpack.c.bf16 %v3564_v8, %v3564_v8 }
0x1407   :  { %8037 = vmatpush3.bf16.xpose.msra.mxu1 %v3671_v20  ;;  %8038 = vmatprep.mubr.msk.bf16.mxu1 %vm8648_vm0, %v10927_v47 }
0x1408   :  { %8033 = vmatmul.mubr.msk.bf16.vlgmr.msra.gmra.mrb[76].mxu0 %vm144_vm2, %v3566_v26  ;;  %8048 = vmatprep.subr.bf16.mxu1 %v10927_v47 }
0x1409   :  { %8043 = vmatpush3.bf16.xpose.msra.mxu0 %v3721_v7  ;;  %8044 = vmatprep.mubr.msk.bf16.mxu0 %vm8648_vm0, %v10927_v47 }
0x140a   :  { %8054 = vmatprep.subr.bf16.mxu0 %v10927_v47 }
0x140e   :  { %8039 = vmatmul.mubr.msk.bf16.vlgmr.msra.gmra.mrb[76].mxu1 %vm144_vm2, %v3664_v34 }
0x140f   :  { %8050 = vmatprep.mubr.msk.bf16.mxu1 %vm8648_vm0, %v10927_v47 }
0x1410   :  { %8045 = vmatmul.mubr.msk.bf16.vlgmr.msra.gmra.mrb[80].mxu0 %vm144_vm2, %v3714_v18 }
0x1411   :  { %8056 = vmatprep.mubr.msk.bf16.mxu0 %vm8648_vm0, %v10927_v47 }
0x14d9   :  { %v9905_v43 = vpop.f32.mrb[72].mxu1 }
0x14da   :  { %v8028_v10 = vpop.f32.mrb[73].mxu1 }
0x14db   :  { %v3612_v59 = vpop.f32.mrb[74].mxu1  ;;  %v9907_v22 = vpop.f32.mrb[76].mxu0 }
0x14dc   :  { %v8029_v46 = vpop.f32.mrb[75].mxu1  ;;  %v8034_v12 = vpop.f32.mrb[77].mxu0 }
0x14dd   :  { %v3660_v56 = vpop.f32.mrb[78].mxu0 }
0x14de   :  { %v8035_v35 = vpop.f32.mrb[79].mxu0 }
0x14e1   :  { %v3707_v48 = vpop.f32.mrb[76].mxu1 }
0x14e2   :  { %v3708_v51 = vadd.f32 %v9860_v19, %v3707_v48  ;;  %v8040_v39 = vpop.f32.mrb[77].mxu1 }
0x14e3   :  { %v3710_v14 = vpop.f32.mrb[78].mxu1  ;;  %v3757_v45 = vpop.f32.mrb[80].mxu0 }
0x14e4   :  { %v3758_v32 = vadd.f32 %v9866_v41, %v3757_v45  ;;  %v8041_v52 = vpop.f32.mrb[79].mxu1  ;;  %v8046_v4 = vpop.f32.mrb[81].mxu0  ;;  %v3763_v21 = vsel %vm144_vm2, %v3708_v51, -inf }
0x14e5   :  { %3764 = vmax.xlane.f32.xlu1 %v3763_v21  ;;  %v3760_v55 = vpop.f32.mrb[82].mxu0 }
0x14e6   :  { %v8047_v50 = vpop.f32.mrb[83].mxu0  ;;  %v3766_v3 = vsel %vm144_vm2, %v3758_v32, -inf }
0x14e7   :  { %3767 = vmax.xlane.f32.xlu0 %v3766_v3 }
0x14f6   :  { %3835 = vrot.lane.b32.xlu1 %v9839_v53, %s8653_s25 }
0x14fd   :  { %3787 = vrot.lane.b32.xlu0 %v9837_v1, %s8653_s25  ;;  %s10932_s25 = smov 104  }
0x1572   :  { %v3765_v40 = vpop.xlane.xlu1 %3764 }
0x1573   :  { %v3769_v5 = vsub.f32 %v3708_v51, %v3765_v40 }
0x1574   :  { %v3768_v54 = vpop.xlane.xlu0 %3767 }
0x1575   :  { %v3771_v30 = vmul.f32 1.442695, %v3769_v5  ;;  %v3770_v29 = vsub.f32 %v3758_v32, %v3768_v54 }
0x1576   :  { %v3836_v44 = vpop.permute.xlu1 %3835 }
0x1577   :  { %8549 = vpow2.f32 %v3771_v30  ;;  %v3773_v58 = vmul.f32 1.442695, %v3770_v29  ;;  %v3841_v24 = vsel %vm269_vm3, %v3836_v44, 0 }
0x1578   :  { %8055 = vmatpush3.bf16.msra.mxu0 %v3841_v24  ;;  %v3788_v9 = vpop.permute.xlu0 %3787 }
0x1579   :  { %8551 = vpow2.f32 %v3773_v58  ;;  %v3793_v25 = vsel %vm269_vm3, %v3788_v9, 0  ;;  %8066 = vmatprep.subr.bf16.mxu0 %v10927_v47 }
0x157a   :  { %8049 = vmatpush3.bf16.msra.mxu1 %v3793_v25 }
0x157b   :  { %8060 = vmatprep.subr.bf16.mxu1 %v10927_v47 }
0x1581   :  { %v8550_v36 = vpop.eup %8549 }
0x1582   :  { %v3775_v49 = vsel %vm144_vm2, %v8550_v36, 0.0 }
0x1583   :  { %v8552_v42 = vpop.eup %8551  ;;  %3776 = vadd.xlane.f32.xlu0 %v3775_v49 }
0x1584   :  { %v3778_v61 = vsel %vm144_vm2, %v8552_v42, 0.0 }
0x1585   :  { %3779 = vadd.xlane.f32.xlu1 %v3778_v61 }
0x1596   :  { %3885 = vrot.lane.b32.xlu1 %v9837_v1, %s10928_s1 }
0x1599   :  { %3935 = vrot.lane.b32.xlu0 %v9839_v53, %s10928_s1 }
0x159a   :  { %3883 = vrot.lane.b32.xlu1 %v9837_v1, %s10929_s21 }
0x159d   :  { %3933 = vrot.lane.b32.xlu0 %v9839_v53, %s10929_s21 }
0x1610   :  { %v3777_v63 = vpop.xlane.xlu0 %3776 }
0x1611   :  { %8553 = vrcp.f32 %v3777_v63 }
0x1612   :  { %v3780_v0 = vpop.xlane.xlu1 %3779 }
0x1613   :  { %8555 = vrcp.f32 %v3780_v0 }
0x1614   :  { %v3936_v2 = vpop.permute.xlu0 %3935 }
0x1615   :  { %v3941_v23 = vsel %vm144_vm2, %v3936_v2, 0 }
0x1616   :  { %v3886_v60 = vpop.permute.xlu1 %3885 }
0x1617   :  { %v3891_v38 = vsel %vm144_vm2, %v3886_v60, 0 }
0x1618   :  { %v3934_v13 = vpop.permute.xlu0 %3933 }
0x161a   :  { %v3884_v8 = vpop.permute.xlu1 %3883 }
0x161b   :  { %v8554_v17 = vpop.eup %8553 }
0x161c   :  { %v3782_v31 = vmul.f32 %v8554_v17, %v8550_v36 }
0x161d   :  { %v8556_v57 = vpop.eup %8555 }
0x161e   :  { %v3784_v62 = vmul.f32 %v8556_v57, %v8552_v42  ;;  %v3785_v33 = vpack.c.bf16 %v3782_v31, %v3782_v31 }
0x1620   :  { %8051 = vmatmul.mubr.msk.bf16.vlgmr.msra.gmra.mrb[80].mxu1 %vm144_vm2, %v3785_v33  ;;  %v3786_v6 = vpack.c.bf16 %v3784_v62, %v3784_v62 }
0x1621   :  { %8061 = vmatpush3.bf16.xpose.msra.mxu1 %v3891_v38  ;;  %8062 = vmatprep.mubr.msk.bf16.mxu1 %vm8648_vm0, %v10927_v47 }
0x1622   :  { %8057 = vmatmul.mubr.msk.bf16.vlgmr.msra.gmra.mrb[84].mxu0 %vm144_vm2, %v3786_v6  ;;  %8072 = vmatprep.subr.bf16.mxu1 %v10927_v47 }
0x1623   :  { %8067 = vmatpush3.bf16.xpose.msra.mxu0 %v3941_v23  ;;  %8068 = vmatprep.mubr.msk.bf16.mxu0 %vm8648_vm0, %v10927_v47 }
0x1624   :  { %8078 = vmatprep.subr.bf16.mxu0 %v10927_v47 }
0x1628   :  { %8063 = vmatmul.mubr.msk.bf16.vlgmr.msra.gmra.mrb[84].mxu1 %vm144_vm2, %v3884_v8 }
0x1629   :  { %8074 = vmatprep.mubr.msk.bf16.mxu1 %vm8648_vm0, %v10927_v47 }
0x162a   :  { %8069 = vmatmul.mubr.msk.bf16.vlgmr.msra.gmra.mrb[88].mxu0 %vm144_vm2, %v3934_v13 }
0x162b   :  { %8080 = vmatprep.mubr.msk.bf16.mxu0 %vm8648_vm0, %v10927_v47 }
0x16f3   :  { %v9947_v27 = vpop.f32.mrb[80].mxu1 }
0x16f4   :  { %v8052_v20 = vpop.f32.mrb[81].mxu1 }
0x16f5   :  { %v3832_v26 = vpop.f32.mrb[82].mxu1  ;;  %v9949_v7 = vpop.f32.mrb[84].mxu0 }
0x16f6   :  { %v8156_v34 = vpack.i.bf16 %v9949_v7, %v9947_v27  ;;  %v8053_v18 = vpop.f32.mrb[83].mxu1  ;;  %v8058_v10 = vpop.f32.mrb[85].mxu0 }
0x16f7   :  { %v3880_v59 = vpop.f32.mrb[86].mxu0 }
0x16f8   :  { %v8059_v46 = vpop.f32.mrb[87].mxu0 }
0x16fb   :  { %v3927_v12 = vpop.f32.mrb[84].mxu1 }
0x16fc   :  { %v3928_v56 = vadd.f32 %v9860_v19, %v3927_v12  ;;  %v8064_v35 = vpop.f32.mrb[85].mxu1 }
0x16fd   :  { %v3930_v48 = vpop.f32.mrb[86].mxu1  ;;  %v3977_v51 = vpop.f32.mrb[88].mxu0 }
0x16fe   :  { %v3978_v39 = vadd.f32 %v9866_v41, %v3977_v51  ;;  %v8065_v14 = vpop.f32.mrb[87].mxu1  ;;  %v8070_v45 = vpop.f32.mrb[89].mxu0  ;;  %v3983_v32 = vsel %vm144_vm2, %v3928_v56, -inf }
0x16ff   :  { %3984 = vmax.xlane.f32.xlu1 %v3983_v32  ;;  %v3980_v52 = vpop.f32.mrb[90].mxu0 }
0x1700   :  { %v8071_v4 = vpop.f32.mrb[91].mxu0  ;;  %v3986_v21 = vsel %vm144_vm2, %v3978_v39, -inf }
0x1701   :  { %3987 = vmax.xlane.f32.xlu0 %v3986_v21 }
0x1710   :  { %4055 = vrot.lane.b32.xlu1 %v9839_v53, %s10930_s22 }
0x1717   :  { %4007 = vrot.lane.b32.xlu0 %v9837_v1, %s10930_s22 }
0x178c   :  { %v3985_v55 = vpop.xlane.xlu1 %3984 }
0x178d   :  { %v3989_v50 = vsub.f32 %v3928_v56, %v3985_v55 }
0x178e   :  { %v3988_v3 = vpop.xlane.xlu0 %3987 }
0x178f   :  { %v3991_v40 = vmul.f32 1.442695, %v3989_v50  ;;  %v3990_v5 = vsub.f32 %v3978_v39, %v3988_v3 }
0x1790   :  { %v4056_v54 = vpop.permute.xlu1 %4055 }
0x1791   :  { %8557 = vpow2.f32 %v3991_v40  ;;  %v3993_v30 = vmul.f32 1.442695, %v3990_v5  ;;  %v4061_v29 = vsel %vm269_vm3, %v4056_v54, 0 }
0x1792   :  { %8079 = vmatpush3.bf16.msra.mxu0 %v4061_v29  ;;  %v4008_v44 = vpop.permute.xlu0 %4007 }
0x1793   :  { %8559 = vpow2.f32 %v3993_v30  ;;  %v4013_v58 = vsel %vm269_vm3, %v4008_v44, 0  ;;  %8090 = vmatprep.subr.bf16.mxu0 %v10927_v47 }
0x1794   :  { %8073 = vmatpush3.bf16.msra.mxu1 %v4013_v58 }
0x1795   :  { %8084 = vmatprep.subr.bf16.mxu1 %v10927_v47 }
0x179b   :  { %v8558_v24 = vpop.eup %8557 }
0x179c   :  { %v3995_v9 = vsel %vm144_vm2, %v8558_v24, 0.0 }
0x179d   :  { %v8560_v25 = vpop.eup %8559  ;;  %3996 = vadd.xlane.f32.xlu0 %v3995_v9 }
0x179e   :  { %v3998_v36 = vsel %vm144_vm2, %v8560_v25, 0.0 }
0x179f   :  { %3999 = vadd.xlane.f32.xlu1 %v3998_v36 }
0x17b0   :  { %4105 = vrot.lane.b32.xlu1 %v9837_v1, %s10931_s24 }
0x17b3   :  { %4155 = vrot.lane.b32.xlu0 %v9839_v53, %s10931_s24 }
0x17b4   :  { %4103 = vrot.lane.b32.xlu1 %v9837_v1, %s10932_s25 }
0x17b7   :  { %4153 = vrot.lane.b32.xlu0 %v9839_v53, %s10932_s25 }
0x182a   :  { %v3997_v49 = vpop.xlane.xlu0 %3996 }
0x182b   :  { %8561 = vrcp.f32 %v3997_v49 }
0x182c   :  { %v4000_v42 = vpop.xlane.xlu1 %3999 }
0x182d   :  { %8563 = vrcp.f32 %v4000_v42  ;;  %v10936_v42 = vmov 0  }
0x182e   :  { %v4156_v60 = vpop.permute.xlu0 %4155 }
0x182f   :  { %v4161_v2 = vsel %vm144_vm2, %v4156_v60, 0 }
0x1830   :  { %v4106_v17 = vpop.permute.xlu1 %4105 }
0x1831   :  { %v4111_v62 = vsel %vm144_vm2, %v4106_v17, 0 }
0x1832   :  { %v4154_v6 = vpop.permute.xlu0 %4153 }
0x1834   :  { %v4104_v38 = vpop.permute.xlu1 %4103 }
0x1835   :  { %v8562_v61 = vpop.eup %8561 }
0x1836   :  { %v4002_v63 = vmul.f32 %v8562_v61, %v8558_v24  ;;  %v8305_v61 = vld [vmem:[%s10875_s4 + $0x10] sm:$0xff]  }
0x1837   :  { %v8564_v0 = vpop.eup %8563 }
0x1838   :  { %v4004_v31 = vmul.f32 %v8564_v0, %v8560_v25  ;;  %v4005_v57 = vpack.c.bf16 %v4002_v63, %v4002_v63  ;;  %v8306_v63 = vld [vmem:[%s10875_s4 + $0x18] sm:$0xff]  }
0x183a   :  { %8075 = vmatmul.mubr.msk.bf16.vlgmr.msra.gmra.mrb[88].mxu1 %vm144_vm2, %v4005_v57  ;;  %v4006_v33 = vpack.c.bf16 %v4004_v31, %v4004_v31 }
0x183b   :  { %8085 = vmatpush3.bf16.xpose.msra.mxu1 %v4111_v62  ;;  %8086 = vmatprep.mubr.msk.bf16.mxu1 %vm8648_vm0, %v10927_v47 }
0x183c   :  { %8081 = vmatmul.mubr.msk.bf16.vlgmr.msra.gmra.mrb[92].mxu0 %vm144_vm2, %v4006_v33  ;;  %8096 = vmatprep.subr.bf16.mxu1 %v10927_v47 }
0x183d   :  { %8091 = vmatpush3.bf16.xpose.msra.mxu0 %v4161_v2  ;;  %8092 = vmatprep.mubr.msk.bf16.mxu0 %vm8648_vm0, %v10927_v47 }
0x183e   :  { %8102 = vmatprep.subr.bf16.mxu0 %v10927_v47 }
0x1842   :  { %8087 = vmatmul.mubr.msk.bf16.vlgmr.msra.gmra.mrb[92].mxu1 %vm144_vm2, %v4104_v38 }
0x1843   :  { %8098 = vmatprep.mubr.msk.bf16.mxu1 %vm8648_vm0, %v10927_v47 }
0x1844   :  { %8093 = vmatmul.mubr.msk.bf16.vlgmr.msra.gmra.mrb[96].mxu0 %vm144_vm2, %v4154_v6 }
0x1845   :  { %8104 = vmatprep.mubr.msk.bf16.mxu0 %vm8648_vm0, %v10927_v47 }
0x190d   :  { %v4049_v23 = vpop.f32.mrb[88].mxu1 }
0x190e   :  { %v8076_v8 = vpop.f32.mrb[89].mxu1 }
0x190f   :  { %v4052_v13 = vpop.f32.mrb[90].mxu1  ;;  %v4097_v20 = vpop.f32.mrb[92].mxu0 }
0x1910   :  { %v8161_v26 = vpack.i.bf16 %v4097_v20, %v4049_v23  ;;  %v8077_v18 = vpop.f32.mrb[91].mxu1  ;;  %v8082_v10 = vpop.f32.mrb[93].mxu0 }
0x1911   :  { %v4100_v59 = vpop.f32.mrb[94].mxu0 }
0x1912   :  { %v8083_v46 = vpop.f32.mrb[95].mxu0 }
0x1915   :  { %v4147_v12 = vpop.f32.mrb[92].mxu1 }
0x1916   :  { %v4148_v56 = vadd.f32 %v9860_v19, %v4147_v12  ;;  %v8088_v35 = vpop.f32.mrb[93].mxu1 }
0x1917   :  { %v4150_v48 = vpop.f32.mrb[94].mxu1  ;;  %v4197_v51 = vpop.f32.mrb[96].mxu0 }
0x1918   :  { %v4198_v39 = vadd.f32 %v9866_v41, %v4197_v51  ;;  %v8089_v14 = vpop.f32.mrb[95].mxu1  ;;  %v8094_v45 = vpop.f32.mrb[97].mxu0  ;;  %v4203_v32 = vsel %vm144_vm2, %v4148_v56, -inf }
0x1919   :  { %4204 = vmax.xlane.f32.xlu1 %v4203_v32  ;;  %v4200_v52 = vpop.f32.mrb[98].mxu0 }
0x191a   :  { %v8095_v4 = vpop.f32.mrb[99].mxu0  ;;  %v4206_v21 = vsel %vm144_vm2, %v4198_v39, -inf }
0x191b   :  { %4207 = vmax.xlane.f32.xlu0 %v4206_v21 }
0x19a6   :  { %v4205_v55 = vpop.xlane.xlu1 %4204 }
0x19a7   :  { %v4209_v50 = vsub.f32 %v4148_v56, %v4205_v55 }
0x19a8   :  { %v4208_v3 = vpop.xlane.xlu0 %4207 }
0x19a9   :  { %v4211_v40 = vmul.f32 1.442695, %v4209_v50  ;;  %v4210_v19 = vsub.f32 %v4198_v39, %v4208_v3 }
0x19ab   :  { %8565 = vpow2.f32 %v4211_v40  ;;  %v4213_v5 = vmul.f32 1.442695, %v4210_v19 }
0x19ad   :  { %8567 = vpow2.f32 %v4213_v5 }
0x19b5   :  { %v8566_v54 = vpop.eup %8565 }
0x19b6   :  { %v4215_v41 = vsel %vm144_vm2, %v8566_v54, 0.0 }
0x19b7   :  { %v8568_v30 = vpop.eup %8567  ;;  %4216 = vadd.xlane.f32.xlu0 %v4215_v41 }
0x19b8   :  { %v4218_v29 = vsel %vm144_vm2, %v8568_v30, 0.0 }
0x19b9   :  { %4219 = vadd.xlane.f32.xlu1 %v4218_v29 }
0x19ca   :  { %4275 = vrot.lane.b32.xlu1 %v9839_v53, %s10933_s27 }
0x19cd   :  { %4227 = vrot.lane.b32.xlu0 %v9837_v1, %s10933_s27 }
0x19ce   :  { %8157 = vrot.lane.b32.xlu1 %v8156_v34, %s10934_s29 }
0x19d1   :  { %8162 = vrot.lane.b32.xlu0 %v8161_v26, %s10935_s26 }
0x1a44   :  { %v4217_v44 = vpop.xlane.xlu0 %4216 }
0x1a45   :  { %8569 = vrcp.f32 %v4217_v44 }
0x1a46   :  { %v4220_v58 = vpop.xlane.xlu1 %4219 }
0x1a47   :  { %8571 = vrcp.f32 %v4220_v58 }
0x1a48   :  { %v4228_v24 = vpop.permute.xlu0 %4227 }
0x1a49   :  { %v4233_v9 = vsel %vm269_vm3, %v4228_v24, 0  ;;  %v7001_v24 = vld [vmem:[%s10877_s8 + $0x140] sm:$0xff] }
0x1a4a   :  { %v4276_v25 = vpop.permute.xlu1 %4275  ;;  %8097 = vmatpush3.bf16.msra.mxu1 %v4233_v9  ;;  %v6994_v9 = vld [vmem:[%s10877_s8 + $0x108] sm:$0xff] }
0x1a4b   :  { %v4281_v53 = vsel %vm269_vm3, %v4276_v25, 0  ;;  %8108 = vmatprep.subr.bf16.mxu1 %v10927_v47 }
0x1a4c   :  { %8103 = vmatpush3.bf16.msra.mxu0 %v4281_v53  ;;  %v8163_v13 = vpop.permute.xlu0 %8162  ;;  %v7002_v53 = vld [vmem:[%s10877_s8 + $0x148] sm:$0xff] }
0x1a4d   :  { %v8165_v18 = vunpack.i.h.bf16 %v8163_v13  ;;  %v8164_v10 = vunpack.i.l.bf16 %v8163_v13 }
0x1a4e   :  { %v8158_v6 = vpop.permute.xlu1 %8157 }
0x1a4f   :  { %v8570_v1 = vpop.eup %8569  ;;  %v8160_v23 = vunpack.i.h.bf16 %v8158_v6  ;;  %v8159_v8 = vunpack.i.l.bf16 %v8158_v6 }
0x1a50   :  { %v4222_v36 = vmul.f32 %v8570_v1, %v8566_v54 }
0x1a51   :  { %v8572_v27 = vpop.eup %8571  ;;  %v4348_v20 = vsel %vm144_vm2, %v9907_v22, %v8160_v23  ;;  %v4347_v26 = vsel %vm144_vm2, %v9905_v43, %v8159_v8  ;;  %v6985_v43 = vld [vmem:[%s10876_s5 + $0x1] ss:$0 sm:$0xff] }
0x1a52   :  { %v4224_v7 = vmul.f32 %v8572_v27, %v8568_v30  ;;  %v4225_v34 = vpack.c.bf16 %v4222_v36, %v4222_v36  ;;  %v4349_v56 = vsel %vm1047_vm4, %v4347_v26, %v8164_v10  ;;  %v4350_v35 = vsel %vm1047_vm4, %v4348_v20, %v8165_v18 }
0x1a53   :  { %v7029_v36 = vcombine.low %v6994_v9, %v7002_v53  ;;  %v7030_v27 = vcombine.high %v6994_v9, %v7002_v53  ;;  %v6999_v53 = vld [vmem:[%s10877_s8 + $0x130] sm:$0xff] }
0x1a54   :  { %8099 = vmatmul.mubr.msk.bf16.vlgmr.msra.gmra.mrb[96].mxu1 %vm144_vm2, %v4225_v34  ;;  %v4226_v49 = vpack.c.bf16 %v4224_v7, %v4224_v7  ;;  %v7009_v7 = vld [vmem:[%s10877_s8 + $0x180] sm:$0xff] }
0x1a55   :  { %8112 = vmatprep.mubr.msk.bf16.mxu1 %vm8648_vm0, %v10927_v47  ;;  %8109 = vmatpush3.bf16.msra.mxu1 %v8305_v61  ;;  %v7017_v34 = vld [vmem:[%s10877_s8 + $0x1c0] sm:$0xff] }
0x1a56   :  { %8105 = vmatmul.mubr.msk.bf16.vlgmr.msra.gmra.mrb[100].mxu0 %vm144_vm2, %v4226_v49  ;;  %8110 = vmatprep.subr.bf16.mxu1 %v10927_v47  ;;  %v7010_v49 = vld [vmem:[%s10877_s8 + $0x188] sm:$0xff]  ;;  %v7044_v61 = vcombine.high %v7009_v7, %v7017_v34 }
0x1a57   :  { %4785 = vmatprep.mubr.bf16.mxu0 %v10936_v42 }
0x1a59   :  { %8111 = vmatpush3.bf16.msra.mxu1 %v8306_v63  ;;  %v7018_v63 = vld [vmem:[%s10877_s8 + $0x1c8] sm:$0xff] }
0x1a5a   :  { %4796 = vmatprep.subr.bf16.mxu1 %v7030_v27  ;;  %v7008_v27 = vld [vmem:[%s10877_s8 + $0x178] sm:$0xff] }
0x1b27   :  { %v4269_v0 = vpop.f32.mrb[96].mxu1 }
0x1b28   :  { %v8100_v17 = vpop.f32.mrb[97].mxu1 }
0x1b29   :  { %v4272_v31 = vpop.f32.mrb[98].mxu1  ;;  %v4317_v57 = vpop.f32.mrb[100].mxu0  ;;  %v7045_v17 = vcombine.low %v7010_v49, %v7018_v63 }
0x1b2a   :  { %v8166_v60 = vpack.i.bf16 %v4317_v57, %v4269_v0  ;;  %v8101_v62 = vpop.f32.mrb[99].mxu1  ;;  %v8106_v33 = vpop.f32.mrb[101].mxu0  ;;  %v7043_v0 = vcombine.low %v7009_v7, %v7017_v34  ;;  %v7046_v31 = vcombine.high %v7010_v49, %v7018_v63  ;;  %v6995_v57 = vld [vmem:[%s10877_s8 + $0x110] sm:$0xff] }
0x1b2b   :  { %v4320_v2 = vpop.f32.mrb[102].mxu0  ;;  %v6996_v62 = vld [vmem:[%s10877_s8 + $0x118] sm:$0xff]  ;;  %v7015_v63 = vld [vmem:[%s10877_s8 + $0x1b0] sm:$0xff] }
0x1b2c   :  { %8167 = vrot.lane.b32.xlu1 %v8166_v60, %s10937_s18  ;;  %v8107_v38 = vpop.f32.mrb[103].mxu0  ;;  %v7003_v60 = vld [vmem:[%s10877_s8 + $0x150] sm:$0xff] }
0x1b2d   :  { %v7031_v33 = vcombine.low %v6995_v57, %v7003_v60  ;;  %v7032_v2 = vcombine.high %v6995_v57, %v7003_v60  ;;  %v7004_v38 = vld [vmem:[%s10877_s8 + $0x158] sm:$0xff] }
0x1b2e   :  { %v7033_v6 = vcombine.low %v6996_v62, %v7004_v38  ;;  %v7034_v23 = vcombine.high %v6996_v62, %v7004_v38 }
0x1b9e   :  { %v8168_v59 = vpop.permute.xlu1 %8167 }
0x1b9f   :  { %v8170_v46 = vunpack.i.h.bf16 %v8168_v59  ;;  %v8169_v12 = vunpack.i.l.bf16 %v8168_v59 }
0x1ba1   :  { %v4352_v48 = vsel %vm1050_vm5, %v4350_v35, %v8170_v46  ;;  %v4351_v51 = vsel %vm1050_vm5, %v4349_v56, %v8169_v12  ;;  %v6990_v12 = vld [vmem:[%s10879_s6 + $0x1] ss:$0 sm:$0xff] }
0x1ba2   :  { %v4353_v39 = vpack.c.bf16 %v4352_v48, %v4351_v51  ;;  %v6992_v51 = vld [vmem:[%s10880_s7 + $0x1] ss:$0 sm:$0xff] }
0x1ba4   :  { %8113 = vmatmul.mubr.msk.bf16.vlgmr.msra.gmra.mrb[100].mxu1 %vm82_vm1, %v4353_v39 }
0x1ba5   :  { %4828 = vmatprep.mubr.bf16.mxu1 %v10936_v42  ;;  %4797 = vmatpush1.bf16.msra.mxu1 %v7029_v36  ;;  %v7000_v36 = vld [vmem:[%s10877_s8 + $0x138] sm:$0xff] }
0x1ba6   :  { %4798 = vmatprep.subr.bf16.mxu1 %v7046_v31  ;;  %v7024_v31 = vld [vmem:[%s10877_s8 + $0x1f8] sm:$0xff]  ;;  %v7041_v60 = vcombine.low %v7000_v36, %v7008_v27 }
0x1ba9   :  { %4799 = vmatpush1.bf16.msra.mxu1 %v7045_v17  ;;  %v7016_v17 = vld [vmem:[%s10877_s8 + $0x1b8] sm:$0xff] }
0x1baa   :  { %4882 = vmatprep.subr.bf16.mxu1 %v7034_v23  ;;  %v7057_v38 = vcombine.low %v7016_v17, %v7024_v31  ;;  %v8308_v23 = vld [vmem:[%s10878_s10 + $0x4c0] sm:$0xff]  }
0x1c77   :  { %v4416_v22 = vpop.f32.mrb[100].mxu1 }
0x1c78   :  { %v4417_v14 = vadd.f32 %v6985_v43, %v4416_v22  ;;  %v8114_v45 = vpop.f32.mrb[101].mxu1  ;;  %v7019_v22 = vld [vmem:[%s10877_s8 + $0x1d0] sm:$0xff] }
0x1c79   :  { %v4419_v32 = vpop.f32.mrb[102].mxu1  ;;  %v7020_v45 = vld [vmem:[%s10877_s8 + $0x1d8] sm:$0xff] }
0x1c7a   :  { %v4420_v52 = vadd.f32 %v6985_v43, %v4419_v32  ;;  %v8115_v4 = vpop.f32.mrb[103].mxu1  ;;  %v4423_v21 = vadd.f32 %v4417_v14, %v9825_v37  ;;  %v7011_v43 = vld [vmem:[%s10877_s8 + $0x190] sm:$0xff]  ;;  %v7012_v14 = vld [vmem:[%s10877_s8 + $0x198] sm:$0xff] }
0x1c7c   :  { %v4424_v55 = vadd.f32 %v4420_v52, %v9827_v28  ;;  %v4425_v50 = vsel %vm82_vm1, %v4423_v21, 0.0  ;;  %v6993_v28 = vld [vmem:[%s10877_s8 + $0x100] sm:$0xff] }
0x1c7d   :  { %4426 = vadd.xlane.f32.xlu0 %v4425_v50  ;;  %v7028_v25 = vcombine.high %v6993_v28, %v7001_v24  ;;  %v7027_v1 = vcombine.low %v6993_v28, %v7001_v24  ;;  %v6997_v50 = vld [vmem:[%s10877_s8 + $0x120] sm:$0xff] }
0x1c7e   :  { %v4428_v3 = vsel %vm82_vm1, %v4424_v55, 0.0 }
0x1c7f   :  { %4429 = vadd.xlane.f32.xlu1 %v4428_v3  ;;  %4753 = vmatprep.subr.bf16.mxu0 %v7028_v25  ;;  %v7005_v3 = vld [vmem:[%s10877_s8 + $0x160] sm:$0xff] }
0x1c80   :  { %4754 = vmatpush1.bf16.msra.mxu0 %v7027_v1  ;;  %v7035_v28 = vcombine.low %v6997_v50, %v7005_v3  ;;  %v7007_v1 = vld [vmem:[%s10877_s8 + $0x170] sm:$0xff] }
0x1c81   :  { %4755 = vmatprep.subr.bf16.mxu0 %v7044_v61  ;;  %v7040_v49 = vcombine.high %v6999_v53, %v7007_v1  ;;  %v7042_v61 = vcombine.high %v7000_v36, %v7008_v27  ;;  %v7039_v57 = vcombine.low %v6999_v53, %v7007_v1 }
0x1c84   :  { %4756 = vmatpush1.bf16.msra.mxu0 %v7043_v0  ;;  %v7023_v0 = vld [vmem:[%s10877_s8 + $0x1f0] sm:$0xff] }
0x1c85   :  { %4839 = vmatprep.subr.bf16.mxu0 %v7032_v2  ;;  %v7056_v62 = vcombine.high %v7015_v63, %v7023_v0  ;;  %v7055_v2 = vcombine.low %v7015_v63, %v7023_v0 }
0x1d0a   :  { %v4427_v40 = vpop.xlane.xlu0 %4426 }
0x1d0b   :  { %v4431_v19 = vmul.f32 0.03125, %v4427_v40  ;;  %v6998_v40 = vld [vmem:[%s10877_s8 + $0x128] sm:$0xff] }
0x1d0c   :  { %v4430_v5 = vpop.xlane.xlu1 %4429 }
0x1d0d   :  { %v4433_v54 = vsub.f32 %v4423_v21, %v4431_v19  ;;  %v4432_v41 = vmul.f32 0.03125, %v4430_v5  ;;  %v7048_v21 = vcombine.high %v7011_v43, %v7019_v22  ;;  %v7006_v19 = vld [vmem:[%s10877_s8 + $0x168] sm:$0xff]  ;;  %v7047_v5 = vcombine.low %v7011_v43, %v7019_v22  ;;  %v8324_v43 = vld [vmem:[%s10878_s10 + $0x4e0] sm:$0xff]  }
0x1d0e   :  { %v7037_v24 = vcombine.low %v6998_v40, %v7006_v19  ;;  %v8325_v22 = vld [vmem:[%s10878_s10 + $0x420] sm:$0xff]  }
0x1d0f   :  { %v4434_v30 = vsub.f32 %v4424_v55, %v4432_v41  ;;  %v4435_v29 = vmul.f32 %v4433_v54, %v4433_v54  ;;  %v7050_v55 = vcombine.high %v7012_v14, %v7020_v45  ;;  %v7036_v41 = vcombine.high %v6997_v50, %v7005_v3  ;;  %v8331_v50 = vld [vmem:[%s10878_s10 + $0x470] sm:$0xff]  }
0x1d10   :  { %v8332_v3 = vld [vmem:[%s10878_s10 + $0x4f0] sm:$0xff]  }
0x1d11   :  { %v4437_v44 = vsel %vm82_vm1, %v4435_v29, 0.0  ;;  %v4436_v58 = vmul.f32 %v4434_v30, %v4434_v30  ;;  %v7013_v29 = vld [vmem:[%s10877_s8 + $0x1a0] sm:$0xff] }
0x1d12   :  { %4438 = vadd.xlane.f32.xlu0 %v4437_v44  ;;  %v7021_v44 = vld [vmem:[%s10877_s8 + $0x1e0] sm:$0xff] }
0x1d13   :  { %v4440_v37 = vsel %vm82_vm1, %v4436_v58, 0.0  ;;  %v7014_v58 = vld [vmem:[%s10877_s8 + $0x1a8] sm:$0xff]  ;;  %v7052_v9 = vcombine.high %v7013_v29, %v7021_v44  ;;  %v7051_v7 = vcombine.low %v7013_v29, %v7021_v44  ;;  %v8339_v29 = vld [vmem:[%s10878_s10 + $0x540] sm:$0xff]  }
0x1d14   :  { %v8340_v44 = vld [vmem:[%s10878_s10 + $0x5c0] sm:$0xff]  }
0x1d16   :  { %4441 = vadd.xlane.f32.xlu0 %v4440_v37  ;;  %v7022_v37 = vld [vmem:[%s10877_s8 + $0x1e8] sm:$0xff] }
0x1d17   :  { %v7054_v25 = vcombine.high %v7014_v58, %v7022_v37  ;;  %v7053_v34 = vcombine.low %v7014_v58, %v7022_v37  ;;  %v7025_v58 = vld [vmem:[%s10881_s9 + $0x10] sm:$0xff] }
0x1d18   :  { %v4513_v37 = vrot.slane %v7025_v58, %v9219_v15 }
0x1d9f   :  { %v4439_v8 = vpop.xlane.xlu0 %4438 }
0x1da0   :  { %v4443_v13 = vmul.f32 0.03125, %v4439_v8  ;;  %v8309_v8 = vld [vmem:[%s10878_s10 + $0x400] sm:$0xff]  }
0x1da2   :  { %v4445_v20 = vadd.f32 1e-05, %v4443_v13  ;;  %v8310_v13 = vld [vmem:[%s10878_s10 + $0x480] sm:$0xff]  }
0x1da3   :  { %v4442_v26 = vpop.xlane.xlu0 %4441 }
0x1da4   :  { %8573 = vrsqrt.f32 %v4445_v20  ;;  %v4444_v18 = vmul.f32 0.03125, %v4442_v26  ;;  %v8311_v20 = vld [vmem:[%s10878_s10 + $0x448] sm:$0xff]  }
0x1da5   :  { %v8313_v26 = vld [vmem:[%s10878_s10 + $0x408] sm:$0xff]  }
0x1da6   :  { %v4446_v10 = vadd.f32 1e-05, %v4444_v18  ;;  %v8314_v18 = vld [vmem:[%s10878_s10 + $0x488] sm:$0xff]  }
0x1da8   :  { %8575 = vrsqrt.f32 %v4446_v10  ;;  %v8315_v10 = vld [vmem:[%s10878_s10 + $0x450] sm:$0xff]  }
0x1dae   :  { %v8574_v59 = vpop.eup %8573 }
0x1daf   :  { %v4449_v46 = vmul.f32 %v8574_v59, %v4433_v54  ;;  %v7049_v54 = vcombine.low %v7012_v14, %v7020_v45  ;;  %v8316_v59 = vld [vmem:[%s10878_s10 + $0x4d0] sm:$0xff]   ;;  %v8326_v14 = vld [vmem:[%s10878_s10 + $0x4a0] sm:$0xff]   ;;  %v8327_v45 = vld [vmem:[%s10878_s10 + $0x468] sm:$0xff]  }
0x1db1   :  { %v4459_v35 = vmul.f32 %v6990_v12, %v4449_v46  ;;  %v8317_v46 = vld [vmem:[%s10878_s10 + $0x410] sm:$0xff]  }
0x1db2   :  { %v8576_v56 = vpop.eup %8575 }
0x1db3   :  { %v4450_v48 = vmul.f32 %v8576_v56, %v4434_v30  ;;  %v10095_v32 = vadd.f32 %v6992_v51, %v4459_v35  ;;  %v7038_v30 = vcombine.high %v6998_v40, %v7006_v19  ;;  %v8319_v56 = vld [vmem:[%s10878_s10 + $0x458] sm:$0xff]   ;;  %v8333_v40 = vld [vmem:[%s10878_s10 + $0x430] sm:$0xff]  }
0x1db4   :  { %v8320_v35 = vld [vmem:[%s10878_s10 + $0x4d8] sm:$0xff]   ;;  %v8334_v19 = vld [vmem:[%s10878_s10 + $0x4b0] sm:$0xff]  }
0x1db5   :  { %v4460_v39 = vmul.f32 %v6990_v12, %v4450_v48  ;;  %v8318_v12 = vld [vmem:[%s10878_s10 + $0x490] sm:$0xff]   ;;  %v8321_v48 = vld [vmem:[%s10878_s10 + $0x418] sm:$0xff]  }
0x1db7   :  { %v10097_v52 = vadd.f32 %v6992_v51, %v4460_v39  ;;  %v8322_v51 = vld [vmem:[%s10878_s10 + $0x498] sm:$0xff]   ;;  %v8323_v39 = vld [vmem:[%s10878_s10 + $0x460] sm:$0xff]  }
0x1db9   :  { %v10101_v4 = vpack.c.bf16 %v10097_v52, %v10095_v32 }
0x1dbb   :  { %7059 = vmatmul.mubr.msk.bf16.vlgmr.msra.gmra.mrb[104].mxu0 %vm82_vm1, %v10101_v4  ;;  %7060 = vmatmul.mubr.msk.bf16.vlgmr.msra.gmra.mrb[104].mxu1 %vm82_vm1, %v10101_v4 }
0x1dbc   :  { %4840 = vmatpush1.bf16.msra.mxu0 %v7031_v33  ;;  %4883 = vmatpush1.bf16.msra.mxu1 %v7033_v6  ;;  %v7058_v33 = vcombine.high %v7016_v17, %v7024_v31  ;;  %v8307_v6 = vld [vmem:[%s10878_s10 + $0x440] sm:$0xff]  }
0x1dbd   :  { %4841 = vmatprep.subr.bf16.mxu0 %v7048_v21  ;;  %4884 = vmatprep.subr.bf16.mxu1 %v7050_v55  ;;  %v8329_v21 = vld [vmem:[%s10878_s10 + $0x428] sm:$0xff]  }
0x1dbe   :  { %4871 = vmatprep.mubr.bf16.mxu0 %v10936_v42  ;;  %4914 = vmatprep.mubr.bf16.mxu1 %v10936_v42  ;;  %v8330_v55 = vld [vmem:[%s10878_s10 + $0x4a8] sm:$0xff]  }
0x1dc0   :  { %4842 = vmatpush1.bf16.msra.mxu0 %v7047_v5  ;;  %4885 = vmatpush1.bf16.msra.mxu1 %v7049_v54  ;;  %v8335_v5 = vld [vmem:[%s10878_s10 + $0x478] sm:$0xff]  }
0x1dc1   :  { %4925 = vmatprep.subr.bf16.mxu0 %v7036_v41  ;;  %4968 = vmatprep.subr.bf16.mxu1 %v7038_v30  ;;  %v8336_v54 = vld [vmem:[%s10878_s10 + $0x4f8] sm:$0xff]  }
0x1dc2   :  { %v8337_v41 = vld [vmem:[%s10878_s10 + $0x438] sm:$0xff]  }
0x1dc3   :  { %7061 = vmatmul.mubr.msk.bf16.vlgmr.msra.gmra.mrb[108].mxu0 %vm82_vm1, %v10101_v4  ;;  %7062 = vmatmul.mubr.msk.bf16.vlgmr.msra.gmra.mrb[108].mxu1 %vm82_vm1, %v10101_v4  ;;  %v8338_v30 = vld [vmem:[%s10878_s10 + $0x4b8] sm:$0xff]  }
0x1dc4   :  { %4926 = vmatpush1.bf16.msra.mxu0 %v7035_v28  ;;  %4969 = vmatpush1.bf16.msra.mxu1 %v7037_v24  ;;  %v4521_v28 = vrot.slane %v7025_v58, %v9221_v16  ;;  %v4517_v24 = vrot.slane %v7025_v58, %v9226_v11 }
0x1dc5   :  { %4927 = vmatprep.subr.bf16.mxu0 %v7052_v9  ;;  %4970 = vmatprep.subr.bf16.mxu1 %v7054_v25  ;;  %v10938_v9 = vld [vmem:[#allocation2_spill] sm:$0xff] }
0x1dc6   :  { %4957 = vmatprep.mubr.bf16.mxu0 %v10936_v42  ;;  %5000 = vmatprep.mubr.bf16.mxu1 %v10936_v42  ;;  %v4525_v25 = vrot.slane %v7025_v58, %v10938_v9 }
0x1dc8   :  { %4928 = vmatpush1.bf16.msra.mxu0 %v7051_v7  ;;  %4971 = vmatpush1.bf16.msra.mxu1 %v7053_v34 }
0x1dc9   :  { %5011 = vmatprep.subr.bf16.mxu0 %v7040_v49  ;;  %5054 = vmatprep.subr.bf16.mxu1 %v7042_v61 }
0x1dcb   :  { %7063 = vmatmul.mubr.msk.bf16.vlgmr.msra.gmra.mrb[112].mxu0 %vm82_vm1, %v10101_v4  ;;  %7064 = vmatmul.mubr.msk.bf16.vlgmr.msra.gmra.mrb[112].mxu1 %vm82_vm1, %v10101_v4 }
0x1dcc   :  { %5012 = vmatpush1.bf16.msra.mxu0 %v7039_v57  ;;  %5055 = vmatpush1.bf16.msra.mxu1 %v7041_v60 }
0x1dcd   :  { %5013 = vmatprep.subr.bf16.mxu0 %v7056_v62  ;;  %5056 = vmatprep.subr.bf16.mxu1 %v7058_v33  ;;  %v10939_v62 = vld [vmem:[#allocation3_spill] sm:$0xff] }
0x1dce   :  { %5043 = vmatprep.mubr.bf16.mxu0 %v10936_v42  ;;  %5086 = vmatprep.mubr.bf16.mxu1 %v10936_v42  ;;  %v8312_v42 = vld [vmem:[%s10878_s10 + $0x4c8] sm:$0xff]   ;;  %v4529_v33 = vrot.slane %v7025_v58, %v10939_v62 }
0x1dd0   :  { %5014 = vmatpush1.bf16.msra.mxu0 %v7055_v2  ;;  %5057 = vmatpush1.bf16.msra.mxu1 %v7057_v38  ;;  %v7026_v2 = vld [vmem:[%s10881_s9 + $0x18] sm:$0xff] }
0x1dd1   :  { %7713 = vmatprep.subr.bf16.mxu0 %v8307_v6  ;;  %7735 = vmatprep.subr.bf16.mxu1 %v8308_v23 }
0x1dd3   :  { %7065 = vmatmul.mubr.msk.bf16.vlgmr.msra.gmra.mrb[116].mxu0 %vm82_vm1, %v10101_v4  ;;  %7066 = vmatmul.mubr.msk.bf16.vlgmr.msra.gmra.mrb[116].mxu1 %vm82_vm1, %v10101_v4  ;;  %v8328_v4 = vld [vmem:[%s10878_s10 + $0x4e8] sm:$0xff]  }
0x1dd4   :  { %7714 = vmatpush3.bf16.msra.mxu0 %v8309_v8  ;;  %7736 = vmatpush3.bf16.msra.mxu1 %v8310_v13  ;;  %v10940_v13 = vld [vmem:[#allocation4_spill] sm:$0xff] }
0x1dd5   :  { %7715 = vmatprep.subr.bf16.mxu0 %v8311_v20  ;;  %7737 = vmatprep.subr.bf16.mxu1 %v8312_v42  ;;  %v4537_v20 = vrot.slane %v7025_v58, %v10940_v13 }
0x1dd8   :  { %7716 = vmatpush3.bf16.msra.mxu0 %v8313_v26  ;;  %7738 = vmatpush3.bf16.msra.mxu1 %v8314_v18  ;;  %v10941_v26 = vld [vmem:[#allocation5_spill] sm:$0xff] }
0x1dd9   :  { %7717 = vmatprep.subr.bf16.mxu0 %v8315_v10  ;;  %7739 = vmatprep.subr.bf16.mxu1 %v8316_v59  ;;  %v4533_v18 = vrot.slane %v7025_v58, %v10941_v26  ;;  %v10942_v10 = vld [vmem:[#allocation6_spill] sm:$0xff] }
0x1dda   :  { %v4541_v59 = vrot.slane %v7025_v58, %v10942_v10 }
0x1ddc   :  { %7718 = vmatpush3.bf16.msra.mxu0 %v8317_v46  ;;  %7740 = vmatpush3.bf16.msra.mxu1 %v8318_v12 }
0x1ddd   :  { %7719 = vmatprep.subr.bf16.mxu0 %v8319_v56  ;;  %7741 = vmatprep.subr.bf16.mxu1 %v8320_v35  ;;  %v10290_v56 = vrot.slane %v7026_v2, %v9219_v15 }
0x1de0   :  { %7720 = vmatpush3.bf16.msra.mxu0 %v8321_v48  ;;  %7742 = vmatpush3.bf16.msra.mxu1 %v8322_v51 }
0x1de1   :  { %7721 = vmatprep.subr.bf16.mxu0 %v8323_v39  ;;  %7743 = vmatprep.subr.bf16.mxu1 %v8324_v43  ;;  %v10293_v39 = vrot.slane %v7026_v2, %v9221_v16 }
0x1de4   :  { %7722 = vmatpush3.bf16.msra.mxu0 %v8325_v22  ;;  %7744 = vmatpush3.bf16.msra.mxu1 %v8326_v14 }
0x1de5   :  { %7723 = vmatprep.subr.bf16.mxu0 %v8327_v45  ;;  %7745 = vmatprep.subr.bf16.mxu1 %v8328_v4  ;;  %v10296_v45 = vrot.slane %v7026_v2, %v9226_v11  ;;  %v10299_v4 = vrot.slane %v7026_v2, %v10938_v9  ;;  %v10307_v11 = vrot.slane %v7026_v2, %v10940_v13 }
0x1de8   :  { %7724 = vmatpush3.bf16.msra.mxu0 %v8329_v21  ;;  %7746 = vmatpush3.bf16.msra.mxu1 %v8330_v55 }
0x1de9   :  { %7725 = vmatprep.subr.bf16.mxu0 %v8331_v50  ;;  %7747 = vmatprep.subr.bf16.mxu1 %v8332_v3  ;;  %v10302_v3 = vrot.slane %v7026_v2, %v10939_v62 }
0x1dec   :  { %7726 = vmatpush3.bf16.msra.mxu0 %v8333_v40  ;;  %7748 = vmatpush3.bf16.msra.mxu1 %v8334_v19 }
0x1ded   :  { %7727 = vmatprep.subr.bf16.mxu0 %v8335_v5  ;;  %7749 = vmatprep.subr.bf16.mxu1 %v8336_v54 }
0x1df0   :  { %7728 = vmatpush3.bf16.msra.mxu0 %v8337_v41  ;;  %7750 = vmatpush3.bf16.msra.mxu1 %v8338_v30 }
0x1df1   :  { %7757 = vmatprep.subr.bf16.mxu0 %v8339_v29  ;;  %7779 = vmatprep.subr.bf16.mxu1 %v8340_v44  ;;  %v10310_v29 = vrot.slane %v7026_v2, %v10941_v26  ;;  %v10313_v44 = vrot.slane %v7026_v2, %v10942_v10 }
0x1e8e   :  { %v4787_v53 = vpop.f32.mrb[104].mxu0  ;;  %v4830_v1 = vpop.f32.mrb[104].mxu1 }
0x1e8f   :  { %v4788_v36 = vadd.f32 %v4787_v53, %v4513_v37  ;;  %v4831_v27 = vadd.f32 %v4830_v1, %v4521_v28  ;;  %v4789_v7 = vpop.f32.mrb[105].mxu0  ;;  %v4832_v34 = vpop.f32.mrb[105].mxu1 }
0x1e90   :  { %v4790_v49 = vadd.f32 %v4789_v7, %v4517_v24  ;;  %v4833_v61 = vadd.f32 %v4832_v34, %v4525_v25  ;;  %v4791_v63 = vpop.f32.mrb[106].mxu0  ;;  %v4834_v0 = vpop.f32.mrb[106].mxu1 }
0x1e91   :  { %v5129_v17 = vmul.f32 0.70710677, %v4788_v36  ;;  %v5131_v31 = vmul.f32 0.70710677, %v4831_v27  ;;  %v4792_v38 = vadd.f32 %v4791_v63, %v4513_v37  ;;  %v4835_v6 = vadd.f32 %v4834_v0, %v4521_v28  ;;  %v4793_v23 = vpop.f32.mrb[107].mxu0  ;;  %v4836_v8 = vpop.f32.mrb[107].mxu1 }
0x1e92   :  { %v5130_v57 = vmul.f32 0.70710677, %v4790_v49  ;;  %v5132_v60 = vmul.f32 0.70710677, %v4833_v61  ;;  %v4794_v42 = vadd.f32 %v4793_v23, %v4517_v24  ;;  %v4837_v12 = vadd.f32 %v4836_v8, %v4525_v25 }
0x1e93   :  { %8577 = verf.f32 %v5129_v17  ;;  %v5145_v46 = vmul.f32 0.70710677, %v4792_v38  ;;  %v5147_v35 = vmul.f32 0.70710677, %v4835_v6  ;;  %v5097_v58 = vmul.f32 0.5, %v4788_v36 }
0x1e94   :  { %8579 = verf.f32 %v5131_v31  ;;  %v5146_v48 = vmul.f32 0.70710677, %v4794_v42  ;;  %v5148_v16 = vmul.f32 0.70710677, %v4837_v12  ;;  %v5099_v37 = vmul.f32 0.5, %v4831_v27 }
0x1e95   :  { %8581 = verf.f32 %v5130_v57  ;;  %v10315_v1 = vmul.f32 0.5, %v4790_v49  ;;  %v10317_v7 = vmul.f32 0.5, %v4833_v61  ;;  %v5113_v17 = vmul.f32 0.5, %v4792_v38 }
0x1e96   :  { %8583 = verf.f32 %v5132_v60  ;;  %v4873_v51 = vpop.f32.mrb[108].mxu0  ;;  %v4916_v22 = vpop.f32.mrb[108].mxu1  ;;  %v10320_v8 = vmul.f32 0.5, %v4794_v42  ;;  %v10322_v61 = vmul.f32 0.5, %v4837_v12 }
0x1e97   :  { %8585 = verf.f32 %v5145_v46  ;;  %v4874_v43 = vadd.f32 %v4873_v51, %v4529_v33  ;;  %v4875_v14 = vpop.f32.mrb[109].mxu0  ;;  %v4917_v15 = vadd.f32 %v4916_v22, %v4537_v20  ;;  %v4918_v55 = vpop.f32.mrb[109].mxu1 }
0x1e98   :  { %8587 = verf.f32 %v5147_v35  ;;  %v4876_v21 = vadd.f32 %v4875_v14, %v4533_v18  ;;  %v4877_v50 = vpop.f32.mrb[110].mxu0  ;;  %v10304_v19 = vadd.f32 %v4918_v55, %v4541_v59  ;;  %v4920_v5 = vpop.f32.mrb[110].mxu1 }
0x1e99   :  { %v5133_v40 = vmul.f32 0.70710677, %v4874_v43  ;;  %v4879_v54 = vpop.f32.mrb[111].mxu0  ;;  %8589 = verf.f32 %v5146_v48  ;;  %v5135_v41 = vmul.f32 0.70710677, %v4917_v15  ;;  %v4922_v30 = vpop.f32.mrb[111].mxu1  ;;  %v4878_v24 = vadd.f32 %v4877_v50, %v4529_v33 }
0x1e9a   :  { %v5134_v28 = vmul.f32 0.70710677, %v4876_v21  ;;  %v4921_v9 = vadd.f32 %v4920_v5, %v4537_v20  ;;  %v4880_v25 = vadd.f32 %v4879_v54, %v4533_v18  ;;  %v5136_v34 = vmul.f32 0.70710677, %v10304_v19 }
0x1e9b   :  { %8591 = verf.f32 %v5133_v40  ;;  %v5149_v31 = vmul.f32 0.70710677, %v4878_v24  ;;  %v4923_v36 = vadd.f32 %v4922_v30, %v4541_v59  ;;  %v5115_v33 = vmul.f32 0.5, %v4835_v6 }
0x1e9c   :  { %8593 = verf.f32 %v5135_v41  ;;  %v5151_v2 = vmul.f32 0.70710677, %v4921_v9  ;;  %v5150_v13 = vmul.f32 0.70710677, %v4880_v25  ;;  %v10324_v18 = vmul.f32 0.5, %v4874_v43 }
0x1e9d   :  { %v8578_v53 = vpop.eup %8577  ;;  %8595 = verf.f32 %v5148_v16  ;;  %v10326_v10 = vmul.f32 0.5, %v4917_v15  ;;  %v10328_v59 = vmul.f32 0.5, %v4876_v21  ;;  %v5152_v48 = vmul.f32 0.70710677, %v4923_v36 }
0x1e9e   :  { %v8580_v63 = vpop.eup %8579  ;;  %v5193_v0 = vadd.f32 1.0, %v8578_v53  ;;  %v4959_v27 = vpop.f32.mrb[112].mxu0  ;;  %8597 = verf.f32 %v5134_v28  ;;  %v5117_v28 = vmul.f32 0.5, %v4878_v24  ;;  %v5119_v53 = vmul.f32 0.5, %v4921_v9 }
0x1e9f   :  { %v5002_v57 = vpop.f32.mrb[112].mxu1  ;;  %v8582_v60 = vpop.eup %8581  ;;  %v5195_v62 = vadd.f32 1.0, %v8580_v63  ;;  %8599 = verf.f32 %v5149_v31  ;;  %v4960_v15 = vadd.f32 %v4959_v27, %v10290_v56  ;;  %v10352_v27 = vmul.f32 0.5, %v4880_v25 }
0x1ea0   :  { %v4961_v23 = vpop.f32.mrb[113].mxu0  ;;  %v8584_v49 = vpop.eup %8583  ;;  %8601 = verf.f32 %v5151_v2  ;;  %v10332_v42 = vmul.f32 %v5193_v0, %v5097_v58  ;;  %v5194_v43 = vadd.f32 1.0, %v8582_v60  ;;  %v5003_v16 = vadd.f32 %v5002_v57, %v10293_v39 }
0x1ea1   :  { %v5004_v20 = vpop.f32.mrb[113].mxu1  ;;  %v4963_v26 = vpop.f32.mrb[114].mxu0  ;;  %8603 = verf.f32 %v5136_v34  ;;  %v10336_v22 = vmul.f32 %v5195_v62, %v5099_v37  ;;  %v5196_v55 = vadd.f32 1.0, %v8584_v49  ;;  %v5137_v54 = vmul.f32 0.70710677, %v4960_v15 }
0x1ea2   :  { %v8586_v38 = vpop.eup %8585  ;;  %v5006_v6 = vpop.f32.mrb[114].mxu1  ;;  %8605 = verf.f32 %v5150_v13  ;;  %v4962_v41 = vadd.f32 %v4961_v23, %v10296_v45  ;;  %v10348_v37 = vmul.f32 0.5, %v10304_v19  ;;  %v10354_v57 = vmul.f32 0.5, %v4923_v36 }
0x1ea3   :  { %v10330_v46 = vpop.f32.mrb[115].mxu0  ;;  %v8588_v35 = vpop.eup %8587  ;;  %v5209_v12 = vadd.f32 1.0, %v8586_v38  ;;  %8607 = verf.f32 %v5152_v48  ;;  %v5139_v24 = vmul.f32 0.70710677, %v5003_v16  ;;  %v10364_v49 = vmul.f32 %v5196_v55, %v10317_v7 }
0x1ea4   :  { %v10334_v51 = vpop.f32.mrb[115].mxu1  ;;  %v5211_v14 = vadd.f32 1.0, %v8588_v35  ;;  %v8590_v21 = vpop.eup %8589  ;;  %8609 = verf.f32 %v5137_v54  ;;  %v5138_v13 = vmul.f32 0.70710677, %v4962_v41  ;;  %v5005_v36 = vadd.f32 %v5004_v20, %v10299_v4 }
0x1ea5   :  { %v10339_v50 = vmul.f32 %v5209_v12, %v5113_v17  ;;  %v8592_v40 = vpop.eup %8591  ;;  %v5210_v31 = vadd.f32 1.0, %v8590_v21  ;;  %8611 = verf.f32 %v5139_v24  ;;  %v4964_v48 = vadd.f32 %v4963_v26, %v10290_v56 }
0x1ea6   :  { %v10342_v5 = vmul.f32 %v5211_v14, %v5115_v33  ;;  %v8594_v30 = vpop.eup %8593  ;;  %v5045_v34 = vpop.f32.mrb[116].mxu0  ;;  %v10357_v33 = vmul.f32 %v5194_v43, %v10315_v1  ;;  %v5197_v19 = vadd.f32 1.0, %v8592_v40  ;;  %v5007_v43 = vadd.f32 %v5006_v6, %v10293_v39 }
0x1ea7   :  { %v5257_v58 = vpack.c.bf16 %v10339_v50, %v10332_v42  ;;  %v5088_v63 = vpop.f32.mrb[116].mxu1  ;;  %v8596_v0 = vpop.eup %8595  ;;  %v5199_v25 = vadd.f32 1.0, %v8594_v30  ;;  %v10374_v21 = vmul.f32 %v5210_v31, %v10320_v8  ;;  %v10376_v55 = vmul.f32 0.5, %v4960_v15  ;;  %v8345_v42 = vld [vmem:[%s10878_s10 + $0x508] sm:$0xff]  }
0x1ea8   :  { %v5259_v17 = vpack.c.bf16 %v10342_v5, %v10336_v22  ;;  %v5047_v60 = vpop.f32.mrb[117].mxu0  ;;  %v5090_v62 = vpop.f32.mrb[117].mxu1  ;;  %v5212_v12 = vadd.f32 1.0, %v8596_v0  ;;  %v10378_v40 = vmul.f32 0.5, %v5003_v16  ;;  %v10381_v54 = vmul.f32 %v5197_v19, %v10324_v18  ;;  %v8347_v22 = vld [vmem:[%s10878_s10 + $0x550] sm:$0xff]  }
0x1ea9   :  { %v10359_v9 = vpop.f32.mrb[118].mxu0  ;;  %v10361_v2 = vpop.f32.mrb[118].mxu1  ;;  %v5140_v0 = vmul.f32 0.70710677, %v5005_v36  ;;  %v5153_v24 = vmul.f32 0.70710677, %v4964_v48  ;;  %v10384_v56 = vmul.f32 %v5199_v25, %v10326_v10  ;;  %8613 = verf.f32 %v5138_v13 }
0x1eaa   :  { %v8598_v23 = vpop.eup %8597  ;;  %v10367_v38 = vpop.f32.mrb[119].mxu0  ;;  %v5155_v8 = vmul.f32 0.70710677, %v5007_v43  ;;  %v4966_v15 = vadd.f32 %v10330_v46, %v10296_v45  ;;  %v5009_v18 = vadd.f32 %v10334_v51, %v10299_v4  ;;  %v5244_v31 = vmul.f32 %v5212_v12, %v10322_v61 }
0x1eab   :  { %v10369_v35 = vpop.f32.mrb[119].mxu1  ;;  %v8600_v1 = vpop.eup %8599  ;;  %8615 = verf.f32 %v5140_v0  ;;  %v5198_v19 = vadd.f32 1.0, %v8598_v23  ;;  %v10402_v4 = vadd.f32 %v5045_v34, %v10302_v3  ;;  %v10405_v51 = vadd.f32 %v5088_v63, %v10307_v11 }
0x1eac   :  { %v8602_v14 = vpop.eup %8601  ;;  %v5213_v7 = vadd.f32 1.0, %v8600_v1  ;;  %8617 = verf.f32 %v5153_v24  ;;  %v5154_v25 = vmul.f32 0.70710677, %v4966_v15  ;;  %v10399_v1 = vmul.f32 0.5, %v4962_v41 }
0x1ead   :  { %v8604_v20 = vpop.eup %8603  ;;  %v5215_v30 = vadd.f32 1.0, %v8602_v14  ;;  %8619 = verf.f32 %v5155_v8  ;;  %v5156_v45 = vmul.f32 0.70710677, %v5009_v18  ;;  %v10408_v23 = vadd.f32 %v5047_v60, %v10310_v29 }
0x1eae   :  { %v10386_v39 = vmul.f32 %v5213_v7, %v5117_v28  ;;  %v8606_v26 = vpop.eup %8605  ;;  %v5200_v28 = vadd.f32 1.0, %v8604_v20  ;;  %8621 = verf.f32 %v5154_v25  ;;  %v10411_v12 = vmul.f32 %v5198_v19, %v10328_v59  ;;  %v8348_v25 = vld [vmem:[%s10878_s10 + $0x5d0] sm:$0xff]  }
0x1eaf   :  { %v10388_v6 = vmul.f32 %v5215_v30, %v5119_v53  ;;  %v8608_v16 = vpop.eup %8607  ;;  %v5214_v13 = vadd.f32 1.0, %v8606_v26  ;;  %8623 = verf.f32 %v5156_v45  ;;  %v5141_v41 = vmul.f32 0.70710677, %v10402_v4 }
0x1eb0   :  { %v5261_v10 = vpack.c.bf16 %v10386_v39, %v10381_v54  ;;  %v8610_v46 = vpop.eup %8609  ;;  %v5216_v61 = vadd.f32 1.0, %v8608_v16  ;;  %v10415_v14 = vadd.f32 %v5090_v62, %v10313_v44  ;;  %v10418_v7 = vmul.f32 %v5200_v28, %v10348_v37  ;;  %v8378_v54 = vld [vmem:[%s10878_s10 + $0x688] sm:$0xff]   ;;  %v8379_v39 = vld [vmem:[%s10878_s10 + $0x650] sm:$0xff]  }
0x1eb1   :  { %v5263_v53 = vpack.c.bf16 %v10388_v6, %v10384_v56  ;;  %v8612_v34 = vpop.eup %8611  ;;  %v10420_v20 = vmul.f32 0.5, %v5005_v36  ;;  %v5121_v63 = vmul.f32 0.5, %v4964_v48  ;;  %v5143_v30 = vmul.f32 0.70710677, %v10405_v51  ;;  %v8341_v36 = vld [vmem:[%s10878_s10 + $0x500] sm:$0xff]   ;;  %v8380_v56 = vld [vmem:[%s10878_s10 + $0x6d0] sm:$0xff]  }
0x1eb2   :  { %v10424_v60 = vmul.f32 %v5214_v13, %v10352_v27  ;;  %v5201_v59 = vadd.f32 1.0, %v8610_v46  ;;  %v5123_v0 = vmul.f32 0.5, %v5007_v43  ;;  %v5142_v24 = vmul.f32 0.70710677, %v10408_v23  ;;  %v8381_v6 = vld [vmem:[%s10878_s10 + $0x610] sm:$0xff]  }
0x1eb3   :  { %v10428_v8 = vmul.f32 %v5216_v61, %v10354_v57  ;;  %v5122_v62 = vmul.f32 0.5, %v4966_v15  ;;  %v5144_v26 = vmul.f32 0.70710677, %v10415_v14  ;;  %v5258_v37 = vpack.c.bf16 %v10374_v21, %v10357_v33  ;;  %v8614_v48 = vpop.eup %8613  ;;  %v8342_v57 = vld [vmem:[%s10878_s10 + $0x580] sm:$0xff]   ;;  %v8343_v33 = vld [vmem:[%s10878_s10 + $0x548] sm:$0xff]  }
0x1eb4   :  { %v5203_v27 = vadd.f32 1.0, %v8612_v34  ;;  %8625 = verf.f32 %v5141_v41  ;;  %v5260_v43 = vpack.c.bf16 %v5244_v31, %v10364_v49  ;;  %v10439_v16 = vadd.f32 %v10359_v9, %v10302_v3  ;;  %v8344_v9 = vld [vmem:[%s10878_s10 + $0x5c8] sm:$0xff]  }
0x1eb5   :  { %v8616_v21 = vpop.eup %8615  ;;  %v5124_v15 = vmul.f32 0.5, %v5009_v18  ;;  %8627 = verf.f32 %v5143_v30  ;;  %6338 = vmatprep.mubr.bf16.mxu0 %v5258_v37  ;;  %v10449_v19 = vadd.f32 %v10361_v2, %v10307_v11  ;;  %v10453_v3 = vadd.f32 %v10367_v38, %v10310_v29  ;;  %v8349_v30 = vld [vmem:[%s10878_s10 + $0x510] sm:$0xff]  }
0x1eb6   :  { %v8618_v49 = vpop.eup %8617  ;;  %v10459_v31 = vmul.f32 %v5201_v59, %v10376_v55  ;;  %8629 = verf.f32 %v5142_v24  ;;  %6379 = vmatprep.mubr.bf16.mxu1 %v5260_v43  ;;  %v5157_v18 = vmul.f32 0.70710677, %v10439_v16  ;;  %6339 = vmatmul.mubr.bf16.vlgmr.msra.gmra.mrb[120].mxu0 %v5257_v58  ;;  %v10467_v11 = vadd.f32 %v10369_v35, %v10313_v44  ;;  %v8346_v35 = vld [vmem:[%s10878_s10 + $0x588] sm:$0xff]   ;;  %v8355_v43 = vld [vmem:[%s10878_s10 + $0x560] sm:$0xff]  }
0x1eb7   :  { %v8620_v29 = vpop.eup %8619  ;;  %v5202_v2 = vadd.f32 1.0, %v8614_v48  ;;  %v5217_v38 = vadd.f32 1.0, %v8618_v49  ;;  %8631 = verf.f32 %v5144_v26  ;;  %v5159_v28 = vmul.f32 0.70710677, %v10449_v19  ;;  %6380 = vmatmul.mubr.bf16.vlgmr.msra.gmra.mrb[120].mxu1 %v5259_v17  ;;  %7758 = vmatpush3.bf16.msra.mxu0 %v8341_v36 }
0x1eb8   :  { %v10477_v50 = vmul.f32 %v5203_v27, %v10378_v40  ;;  %v5219_v44 = vadd.f32 1.0, %v8620_v29  ;;  %8633 = verf.f32 %v5157_v18  ;;  %7780 = vmatpush3.bf16.msra.mxu1 %v8342_v57  ;;  %v5158_v58 = vmul.f32 0.70710677, %v10453_v3  ;;  %7759 = vmatprep.subr.bf16.mxu0 %v8343_v33  ;;  %v8622_v5 = vpop.eup %8621  ;;  %v8354_v27 = vld [vmem:[%s10878_s10 + $0x598] sm:$0xff]  }
0x1eb9   :  { %v5204_v17 = vadd.f32 1.0, %v8616_v21  ;;  %v10486_v55 = vmul.f32 %v5217_v38, %v5121_v63  ;;  %8635 = verf.f32 %v5159_v28  ;;  %v5160_v40 = vmul.f32 0.70710677, %v10467_v11  ;;  %7781 = vmatprep.subr.bf16.mxu1 %v8344_v9  ;;  %v8624_v13 = vpop.eup %8623  ;;  %v8356_v21 = vld [vmem:[%s10878_s10 + $0x5e0] sm:$0xff]  }
0x1eba   :  { %v10492_v45 = vmul.f32 %v5219_v44, %v5123_v0  ;;  %v5218_v46 = vadd.f32 1.0, %v8622_v5  ;;  %8637 = verf.f32 %v5158_v58  ;;  %v5262_v61 = vpack.c.bf16 %v10424_v60, %v10411_v12  ;;  %v8350_v60 = vld [vmem:[%s10878_s10 + $0x590] sm:$0xff]   ;;  %v8357_v44 = vld [vmem:[%s10878_s10 + $0x520] sm:$0xff]  }
0x1ebb   :  { %v5265_v41 = vpack.c.bf16 %v10486_v55, %v10459_v31  ;;  %v5220_v34 = vadd.f32 1.0, %v8624_v13  ;;  %8639 = verf.f32 %v5160_v40  ;;  %7760 = vmatpush3.bf16.msra.mxu0 %v8345_v42  ;;  %v5264_v63 = vpack.c.bf16 %v10428_v8, %v10418_v7  ;;  %v8351_v7 = vld [vmem:[%s10878_s10 + $0x558] sm:$0xff]   ;;  %v8410_v31 = vld [vmem:[%s10878_s10 + $0x788] sm:$0xff]   ;;  %v8411_v55 = vld [vmem:[%s10878_s10 + $0x750] sm:$0xff]  }
0x1ebc   :  { %v10504_v59 = vmul.f32 %v5202_v2, %v10399_v1  ;;  %v5267_v0 = vpack.c.bf16 %v10492_v45, %v10477_v50  ;;  %v10508_v12 = vmul.f32 %v5218_v46, %v5122_v62  ;;  %7782 = vmatpush3.bf16.msra.mxu1 %v8346_v35  ;;  %7761 = vmatprep.subr.bf16.mxu0 %v8347_v22  ;;  %v8352_v8 = vld [vmem:[%s10878_s10 + $0x5d8] sm:$0xff]   ;;  %v5109_v9 = vmul.f32 0.5, %v10402_v4  ;;  %v8412_v50 = vld [vmem:[%s10878_s10 + $0x7d0] sm:$0xff]  }
0x1ebd   :  { %v10517_v24 = vmul.f32 %v5204_v17, %v10420_v20  ;;  %v10519_v1 = vmul.f32 %v5220_v34, %v5124_v15  ;;  %6420 = vmatprep.mubr.bf16.mxu0 %v5262_v61  ;;  %7783 = vmatprep.subr.bf16.mxu1 %v8348_v25  ;;  %v8353_v20 = vld [vmem:[%s10878_s10 + $0x518] sm:$0xff]   ;;  %v5111_v49 = vmul.f32 0.5, %v10405_v51  ;;  %v5110_v2 = vmul.f32 0.5, %v10408_v23  ;;  %v8358_v23 = vld [vmem:[%s10878_s10 + $0x5a0] sm:$0xff]   ;;  %v8413_v45 = vld [vmem:[%s10878_s10 + $0x710] sm:$0xff]  }
0x1ebe   :  { %v8626_v62 = vpop.eup %8625  ;;  %6461 = vmatprep.mubr.bf16.mxu1 %v5264_v63  ;;  %v5266_v26 = vpack.c.bf16 %v10508_v12, %v10504_v59  ;;  %v5125_v28 = vmul.f32 0.5, %v10439_v16  ;;  %v5112_v35 = vmul.f32 0.5, %v10415_v14  ;;  %v5127_v4 = vmul.f32 0.5, %v10449_v19  ;;  %v8359_v16 = vld [vmem:[%s10878_s10 + $0x568] sm:$0xff]   ;;  %v8384_v59 = vld [vmem:[%s10878_s10 + $0x6d8] sm:$0xff]  }
0x1ebf   :  { %v8628_v37 = vpop.eup %8627  ;;  %7762 = vmatpush3.bf16.msra.mxu0 %v8349_v30  ;;  %v5268_v36 = vpack.c.bf16 %v10519_v1, %v10517_v24  ;;  %v5205_v33 = vadd.f32 1.0, %v8626_v62  ;;  %v5126_v14 = vmul.f32 0.5, %v10453_v3  ;;  %v8360_v19 = vld [vmem:[%s10878_s10 + $0x5e8] sm:$0xff]   ;;  %v5128_v61 = vmul.f32 0.5, %v10467_v11  ;;  %v8385_v12 = vld [vmem:[%s10878_s10 + $0x618] sm:$0xff]   ;;  %v8387_v1 = vld [vmem:[%s10878_s10 + $0x660] sm:$0xff]  }
0x1ec0   :  { %v8630_v48 = vpop.eup %8629  ;;  %7784 = vmatpush3.bf16.msra.mxu1 %v8350_v60  ;;  %7763 = vmatprep.subr.bf16.mxu0 %v8351_v7  ;;  %v5207_v18 = vadd.f32 1.0, %v8628_v37  ;;  %v8361_v3 = vld [vmem:[%s10878_s10 + $0x528] sm:$0xff]   ;;  %v8363_v37 = vld [vmem:[%s10878_s10 + $0x570] sm:$0xff]   ;;  %v8386_v24 = vld [vmem:[%s10878_s10 + $0x698] sm:$0xff]  }
0x1ec1   :  { %v8632_v57 = vpop.eup %8631  ;;  %7785 = vmatprep.subr.bf16.mxu1 %v8352_v8  ;;  %v5206_v38 = vadd.f32 1.0, %v8630_v48  ;;  %v10555_v17 = vmul.f32 %v5205_v33, %v5109_v9  ;;  %v8362_v11 = vld [vmem:[%s10878_s10 + $0x5a8] sm:$0xff]   ;;  %v8367_v33 = vld [vmem:[%s10878_s10 + $0x578] sm:$0xff]  }
0x1ec2   :  { %v8634_v15 = vpop.eup %8633  ;;  %v5208_v22 = vadd.f32 1.0, %v8632_v57  ;;  %v10563_v13 = vmul.f32 %v5207_v18, %v5111_v49  ;;  %v8366_v57 = vld [vmem:[%s10878_s10 + $0x5b0] sm:$0xff]   ;;  %v8370_v9 = vld [vmem:[%s10878_s10 + $0x5b8] sm:$0xff]   ;;  %v8371_v49 = vld [vmem:[%s10878_s10 + $0x640] sm:$0xff]  }
0x1ec3   :  { %v8636_v29 = vpop.eup %8635  ;;  %v5221_v42 = vadd.f32 1.0, %v8634_v15  ;;  %7764 = vmatpush3.bf16.msra.mxu0 %v8353_v20  ;;  %v10568_v63 = vmul.f32 %v5206_v38, %v5110_v2  ;;  %v8364_v20 = vld [vmem:[%s10878_s10 + $0x5f0] sm:$0xff]   ;;  %v8369_v15 = vld [vmem:[%s10878_s10 + $0x538] sm:$0xff]   ;;  %v8372_v18 = vld [vmem:[%s10878_s10 + $0x6c0] sm:$0xff]  }
0x1ec4   :  { %v8638_v58 = vpop.eup %8637  ;;  %v5223_v51 = vadd.f32 1.0, %v8636_v29  ;;  %7786 = vmatpush3.bf16.msra.mxu1 %v8354_v27  ;;  %7765 = vmatprep.subr.bf16.mxu0 %v8355_v43  ;;  %v10577_v7 = vmul.f32 %v5208_v22, %v5112_v35  ;;  %v8365_v43 = vld [vmem:[%s10878_s10 + $0x530] sm:$0xff]   ;;  %v8373_v29 = vld [vmem:[%s10878_s10 + $0x600] sm:$0xff]   ;;  %v8375_v38 = vld [vmem:[%s10878_s10 + $0x648] sm:$0xff]  }
0x1ec5   :  { %v8640_v5 = vpop.eup %8639  ;;  %v10557_v40 = vmul.f32 %v5221_v42, %v5125_v28  ;;  %v5222_v25 = vadd.f32 1.0, %v8638_v58  ;;  %7787 = vmatprep.subr.bf16.mxu1 %v8356_v21  ;;  %v8368_v21 = vld [vmem:[%s10878_s10 + $0x5f8] sm:$0xff]   ;;  %v8374_v2 = vld [vmem:[%s10878_s10 + $0x680] sm:$0xff]   ;;  %v8376_v28 = vld [vmem:[%s10878_s10 + $0x6c8] sm:$0xff]  }
0x1ec6   :  { %v10565_v46 = vmul.f32 %v5223_v51, %v5127_v4  ;;  %v5224_v34 = vadd.f32 1.0, %v8640_v5  ;;  %v8377_v42 = vld [vmem:[%s10878_s10 + $0x608] sm:$0xff]   ;;  %v8395_v51 = vld [vmem:[%s10878_s10 + $0x670] sm:$0xff]  }
0x1ec7   :  { %v5269_v30 = vpack.c.bf16 %v10557_v40, %v10555_v17  ;;  %v10572_v60 = vmul.f32 %v5222_v25, %v5126_v14  ;;  %7766 = vmatpush3.bf16.msra.mxu0 %v8357_v44  ;;  %v8390_v44 = vld [vmem:[%s10878_s10 + $0x6a0] sm:$0xff]   ;;  %v8391_v58 = vld [vmem:[%s10878_s10 + $0x668] sm:$0xff]   ;;  %v8398_v5 = vld [vmem:[%s10878_s10 + $0x6b0] sm:$0xff]  }
0x1ec8   :  { %v5271_v8 = vpack.c.bf16 %v10565_v46, %v10563_v13  ;;  %v10581_v62 = vmul.f32 %v5224_v34, %v5128_v61  ;;  %7788 = vmatpush3.bf16.msra.mxu1 %v8358_v23  ;;  %7767 = vmatprep.subr.bf16.mxu0 %v8359_v16  ;;  %v8392_v35 = vld [vmem:[%s10878_s10 + $0x6e8] sm:$0xff]   ;;  %v8396_v23 = vld [vmem:[%s10878_s10 + $0x6f0] sm:$0xff]   ;;  %v8399_v14 = vld [vmem:[%s10878_s10 + $0x678] sm:$0xff]  }
0x1ec9   :  { %7789 = vmatprep.subr.bf16.mxu1 %v8360_v19  ;;  %v5270_v48 = vpack.c.bf16 %v10572_v60, %v10568_v63  ;;  %v8393_v22 = vld [vmem:[%s10878_s10 + $0x628] sm:$0xff]   ;;  %v8397_v16 = vld [vmem:[%s10878_s10 + $0x630] sm:$0xff]   ;;  %v8400_v25 = vld [vmem:[%s10878_s10 + $0x6f8] sm:$0xff]  }
0x1eca   :  { %v5272_v27 = vpack.c.bf16 %v10581_v62, %v10577_v7  ;;  %v8394_v4 = vld [vmem:[%s10878_s10 + $0x6a8] sm:$0xff]   ;;  %v8401_v19 = vld [vmem:[%s10878_s10 + $0x638] sm:$0xff]   ;;  %v8403_v34 = vld [vmem:[%s10878_s10 + $0x740] sm:$0xff]  }
0x1ecb   :  { %7768 = vmatpush3.bf16.msra.mxu0 %v8361_v3  ;;  %v8402_v61 = vld [vmem:[%s10878_s10 + $0x6b8] sm:$0xff]   ;;  %v8404_v3 = vld [vmem:[%s10878_s10 + $0x7c0] sm:$0xff]  }
0x1ecc   :  { %7790 = vmatpush3.bf16.msra.mxu1 %v8362_v11  ;;  %7769 = vmatprep.subr.bf16.mxu0 %v8363_v37  ;;  %v8405_v11 = vld [vmem:[%s10878_s10 + $0x700] sm:$0xff]   ;;  %v8416_v63 = vld [vmem:[%s10878_s10 + $0x7d8] sm:$0xff]  }
0x1ecd   :  { %7791 = vmatprep.subr.bf16.mxu1 %v8364_v20  ;;  %v8406_v37 = vld [vmem:[%s10878_s10 + $0x780] sm:$0xff]   ;;  %v8407_v20 = vld [vmem:[%s10878_s10 + $0x748] sm:$0xff]   ;;  %v8417_v60 = vld [vmem:[%s10878_s10 + $0x718] sm:$0xff]  }
0x1ece   :  { %v8418_v7 = vld [vmem:[%s10878_s10 + $0x798] sm:$0xff]   ;;  %v8419_v62 = vld [vmem:[%s10878_s10 + $0x760] sm:$0xff]  }
0x1ecf   :  { %7770 = vmatpush3.bf16.msra.mxu0 %v8365_v43  ;;  %v8408_v43 = vld [vmem:[%s10878_s10 + $0x7c8] sm:$0xff]  }
0x1ed0   :  { %7792 = vmatpush3.bf16.msra.mxu1 %v8366_v57  ;;  %7771 = vmatprep.subr.bf16.mxu0 %v8367_v33  ;;  %v8409_v57 = vld [vmem:[%s10878_s10 + $0x708] sm:$0xff]   ;;  %v8422_v33 = vld [vmem:[%s10878_s10 + $0x7a0] sm:$0xff]  }
0x1ed1   :  { %7793 = vmatprep.subr.bf16.mxu1 %v8368_v21  ;;  %v8423_v21 = vld [vmem:[%s10878_s10 + $0x768] sm:$0xff]  }
0x1ed3   :  { %7772 = vmatpush3.bf16.msra.mxu0 %v8369_v15  ;;  %v8424_v15 = vld [vmem:[%s10878_s10 + $0x7e8] sm:$0xff]  }
0x1ed4   :  { %7794 = vmatpush3.bf16.msra.mxu1 %v8370_v9  ;;  %7801 = vmatprep.subr.bf16.mxu0 %v8371_v49  ;;  %v8425_v9 = vld [vmem:[%s10878_s10 + $0x728] sm:$0xff]  }
0x1ed5   :  { %7823 = vmatprep.subr.bf16.mxu1 %v8372_v18  ;;  %v8426_v49 = vld [vmem:[%s10878_s10 + $0x7a8] sm:$0xff]   ;;  %v8427_v18 = vld [vmem:[%s10878_s10 + $0x770] sm:$0xff]  }
0x1ed6   :  { %6421 = vmatmul.mubr.bf16.vlgmr.msra.gmra.mrb[124].mxu0 %v5261_v10  ;;  %v8382_v10 = vld [vmem:[%s10878_s10 + $0x690] sm:$0xff]  }
0x1ed7   :  { %6462 = vmatmul.mubr.bf16.vlgmr.msra.gmra.mrb[124].mxu1 %v5263_v53  ;;  %7802 = vmatpush3.bf16.msra.mxu0 %v8373_v29  ;;  %v8383_v53 = vld [vmem:[%s10878_s10 + $0x658] sm:$0xff]   ;;  %v8428_v29 = vld [vmem:[%s10878_s10 + $0x7f0] sm:$0xff]  }
0x1ed8   :  { %6502 = vmatprep.mubr.bf16.mxu0 %v5266_v26  ;;  %7824 = vmatpush3.bf16.msra.mxu1 %v8374_v2  ;;  %v8388_v26 = vld [vmem:[%s10878_s10 + $0x6e0] sm:$0xff]   ;;  %v8429_v2 = vld [vmem:[%s10878_s10 + $0x730] sm:$0xff]  }
0x1ed9   :  { %6543 = vmatprep.mubr.bf16.mxu1 %v5268_v36  ;;  %7803 = vmatprep.subr.bf16.mxu0 %v8375_v38  ;;  %v8389_v36 = vld [vmem:[%s10878_s10 + $0x620] sm:$0xff]   ;;  %v8430_v38 = vld [vmem:[%s10878_s10 + $0x7b0] sm:$0xff]  }
0x1eda   :  { %7825 = vmatprep.subr.bf16.mxu1 %v8376_v28  ;;  %v8431_v28 = vld [vmem:[%s10878_s10 + $0x778] sm:$0xff]  }
0x1edb   :  { %7804 = vmatpush3.bf16.msra.mxu0 %v8377_v42  ;;  %v8432_v42 = vld [vmem:[%s10878_s10 + $0x7f8] sm:$0xff]  }
0x1edc   :  { %7826 = vmatpush3.bf16.msra.mxu1 %v8378_v54  ;;  %7805 = vmatprep.subr.bf16.mxu0 %v8379_v39  ;;  %v8433_v54 = vld [vmem:[%s10878_s10 + $0x738] sm:$0xff]  }
0x1edd   :  { %7827 = vmatprep.subr.bf16.mxu1 %v8380_v56  ;;  %v8434_v39 = vld [vmem:[%s10878_s10 + $0x7b8] sm:$0xff]  }
0x1edf   :  { %7806 = vmatpush3.bf16.msra.mxu0 %v8381_v6 }
0x1ee0   :  { %7828 = vmatpush3.bf16.msra.mxu1 %v8382_v10  ;;  %7807 = vmatprep.subr.bf16.mxu0 %v8383_v53  ;;  %v7324_v10 = vld [vmem:[%s10882_s11 + $0x1] ss:$0 sm:$0xff] }
0x1ee1   :  { %7829 = vmatprep.subr.bf16.mxu1 %v8384_v59 }
0x1ee3   :  { %7808 = vmatpush3.bf16.msra.mxu0 %v8385_v12 }
0x1ee4   :  { %7830 = vmatpush3.bf16.msra.mxu1 %v8386_v24  ;;  %7809 = vmatprep.subr.bf16.mxu0 %v8387_v1 }
0x1ee5   :  { %7831 = vmatprep.subr.bf16.mxu1 %v8388_v26 }
0x1ee7   :  { %7810 = vmatpush3.bf16.msra.mxu0 %v8389_v36 }
0x1ee8   :  { %7832 = vmatpush3.bf16.msra.mxu1 %v8390_v44  ;;  %7811 = vmatprep.subr.bf16.mxu0 %v8391_v58 }
0x1ee9   :  { %7833 = vmatprep.subr.bf16.mxu1 %v8392_v35 }
0x1eeb   :  { %7812 = vmatpush3.bf16.msra.mxu0 %v8393_v22 }
0x1eec   :  { %7834 = vmatpush3.bf16.msra.mxu1 %v8394_v4  ;;  %7813 = vmatprep.subr.bf16.mxu0 %v8395_v51 }
0x1eed   :  { %7835 = vmatprep.subr.bf16.mxu1 %v8396_v23 }
0x1eef   :  { %7814 = vmatpush3.bf16.msra.mxu0 %v8397_v16 }
0x1ef0   :  { %7836 = vmatpush3.bf16.msra.mxu1 %v8398_v5  ;;  %7815 = vmatprep.subr.bf16.mxu0 %v8399_v14 }
0x1ef1   :  { %7837 = vmatprep.subr.bf16.mxu1 %v8400_v25 }
0x1ef3   :  { %7816 = vmatpush3.bf16.msra.mxu0 %v8401_v19 }
0x1ef4   :  { %7838 = vmatpush3.bf16.msra.mxu1 %v8402_v61  ;;  %7845 = vmatprep.subr.bf16.mxu0 %v8403_v34 }
0x1ef5   :  { %7867 = vmatprep.subr.bf16.mxu1 %v8404_v3 }
0x1ef6   :  { %6503 = vmatmul.mubr.bf16.vlgmr.msra.gmra.mrb[128].mxu0 %v5265_v41  ;;  %v8414_v41 = vld [vmem:[%s10878_s10 + $0x790] sm:$0xff]  }
0x1ef7   :  { %6544 = vmatmul.mubr.bf16.vlgmr.msra.gmra.mrb[128].mxu1 %v5267_v0  ;;  %7846 = vmatpush3.bf16.msra.mxu0 %v8405_v11  ;;  %v8415_v0 = vld [vmem:[%s10878_s10 + $0x758] sm:$0xff]  }
0x1ef8   :  { %6584 = vmatprep.mubr.bf16.mxu0 %v5270_v48  ;;  %7868 = vmatpush3.bf16.msra.mxu1 %v8406_v37  ;;  %v8420_v48 = vld [vmem:[%s10878_s10 + $0x7e0] sm:$0xff]  }
0x1ef9   :  { %6625 = vmatprep.mubr.bf16.mxu1 %v5272_v27  ;;  %7847 = vmatprep.subr.bf16.mxu0 %v8407_v20  ;;  %v8421_v27 = vld [vmem:[%s10878_s10 + $0x720] sm:$0xff]  }
0x1efa   :  { %7869 = vmatprep.subr.bf16.mxu1 %v8408_v43 }
0x1efb   :  { %7848 = vmatpush3.bf16.msra.mxu0 %v8409_v57 }
0x1efc   :  { %7870 = vmatpush3.bf16.msra.mxu1 %v8410_v31  ;;  %7849 = vmatprep.subr.bf16.mxu0 %v8411_v55 }
0x1efd   :  { %7871 = vmatprep.subr.bf16.mxu1 %v8412_v50 }
0x1eff   :  { %7850 = vmatpush3.bf16.msra.mxu0 %v8413_v45 }
0x1f00   :  { %7872 = vmatpush3.bf16.msra.mxu1 %v8414_v41  ;;  %7851 = vmatprep.subr.bf16.mxu0 %v8415_v0 }
0x1f01   :  { %7873 = vmatprep.subr.bf16.mxu1 %v8416_v63 }
0x1f03   :  { %7852 = vmatpush3.bf16.msra.mxu0 %v8417_v60 }
0x1f04   :  { %7874 = vmatpush3.bf16.msra.mxu1 %v8418_v7  ;;  %7853 = vmatprep.subr.bf16.mxu0 %v8419_v62 }
0x1f05   :  { %7875 = vmatprep.subr.bf16.mxu1 %v8420_v48 }
0x1f07   :  { %7854 = vmatpush3.bf16.msra.mxu0 %v8421_v27 }
0x1f08   :  { %7876 = vmatpush3.bf16.msra.mxu1 %v8422_v33  ;;  %7855 = vmatprep.subr.bf16.mxu0 %v8423_v21 }
0x1f09   :  { %7877 = vmatprep.subr.bf16.mxu1 %v8424_v15 }
0x1f0b   :  { %7856 = vmatpush3.bf16.msra.mxu0 %v8425_v9 }
0x1f0c   :  { %7878 = vmatpush3.bf16.msra.mxu1 %v8426_v49  ;;  %7857 = vmatprep.subr.bf16.mxu0 %v8427_v18 }
0x1f0d   :  { %7879 = vmatprep.subr.bf16.mxu1 %v8428_v29 }
0x1f0f   :  { %7858 = vmatpush3.bf16.msra.mxu0 %v8429_v2 }
0x1f10   :  { %7880 = vmatpush3.bf16.msra.mxu1 %v8430_v38  ;;  %7859 = vmatprep.subr.bf16.mxu0 %v8431_v28 }
0x1f11   :  { %7881 = vmatprep.subr.bf16.mxu1 %v8432_v42 }
0x1f13   :  { %7860 = vmatpush3.bf16.msra.mxu0 %v8433_v54 }
0x1f14   :  { %7882 = vmatpush3.bf16.msra.mxu1 %v8434_v39  ;;  %8116 = vmatprep.subr.bf16.mxu0 %v10927_v47 }
0x1f16   :  { %6585 = vmatmul.mubr.bf16.vlgmr.msra.gmra.mrb[132].mxu0 %v5269_v30 }
0x1f17   :  { %6626 = vmatmul.mubr.bf16.vlgmr.msra.gmra.mrb[132].mxu1 %v5271_v8  ;;  %8120 = vmatprep.mubr.msk.bf16.mxu0 %vm8648_vm0, %v10927_v47 }
0x1f89   :  { %v7729_v56 = vpop.f32.mrb[120].mxu0 }
0x1f8a   :  { %v7751_v6 = vpop.f32.mrb[120].mxu1  ;;  %v7730_v53 = vpop.f32.mrb[121].mxu0 }
0x1f8b   :  { %v7731_v59 = vadd.f32 %v7730_v53, %v7729_v56  ;;  %v7752_v12 = vpop.f32.mrb[121].mxu1  ;;  %v7732_v24 = vpop.f32.mrb[122].mxu0 }
0x1f8c   :  { %v7753_v1 = vadd.f32 %v7752_v12, %v7751_v6  ;;  %v7754_v17 = vpop.f32.mrb[122].mxu1  ;;  %v7733_v40 = vpop.f32.mrb[123].mxu0 }
0x1f8d   :  { %v6341_v30 = vadd.f32 %v7731_v59, %v7324_v10  ;;  %v7734_v26 = vadd.f32 %v7733_v40, %v7732_v24  ;;  %v7755_v13 = vpop.f32.mrb[123].mxu1 }
0x1f8e   :  { %v7756_v46 = vadd.f32 %v7755_v13, %v7754_v17 }
0x1f8f   :  { %v6382_v8 = vadd.f32 %v7753_v1, %v6341_v30  ;;  %v6344_v36 = vadd.f32 %v7734_v26, %v7324_v10 }
0x1f91   :  { %v6385_v44 = vadd.f32 %v7756_v46, %v6344_v36 }
0x1fa9   :  { %v7773_v58 = vpop.f32.mrb[124].mxu0 }
0x1faa   :  { %v7795_v35 = vpop.f32.mrb[124].mxu1  ;;  %v7774_v22 = vpop.f32.mrb[125].mxu0 }
0x1fab   :  { %v7775_v4 = vadd.f32 %v7774_v22, %v7773_v58  ;;  %v7796_v51 = vpop.f32.mrb[125].mxu1  ;;  %v7776_v23 = vpop.f32.mrb[126].mxu0  ;;  %v8436_v58 = vld [vmem:[%s10885_s14 + $0x8] sm:$0xff]  }
0x1fac   :  { %v7797_v16 = vadd.f32 %v7796_v51, %v7795_v35  ;;  %v7798_v5 = vpop.f32.mrb[126].mxu1  ;;  %v7777_v14 = vpop.f32.mrb[127].mxu0 }
0x1fad   :  { %v6423_v25 = vadd.f32 %v7775_v4, %v6382_v8  ;;  %v7778_v19 = vadd.f32 %v7777_v14, %v7776_v23  ;;  %v7799_v61 = vpop.f32.mrb[127].mxu1  ;;  %v7454_v14 = vld [vmem:[%s10883_s12 + $0x1] ss:$0 sm:$0xff] }
0x1fae   :  { %v7800_v34 = vadd.f32 %v7799_v61, %v7798_v5 }
0x1faf   :  { %v6464_v3 = vadd.f32 %v7797_v16, %v6423_v25  ;;  %v6426_v11 = vadd.f32 %v7778_v19, %v6385_v44 }
0x1fb1   :  { %v6467_v37 = vadd.f32 %v7800_v34, %v6426_v11 }
0x1fc9   :  { %v7817_v20 = vpop.f32.mrb[128].mxu0 }
0x1fca   :  { %v7839_v43 = vpop.f32.mrb[128].mxu1  ;;  %v7818_v57 = vpop.f32.mrb[129].mxu0 }
0x1fcb   :  { %v7819_v31 = vadd.f32 %v7818_v57, %v7817_v20  ;;  %v7840_v55 = vpop.f32.mrb[129].mxu1  ;;  %v7820_v50 = vpop.f32.mrb[130].mxu0 }
0x1fcc   :  { %v7841_v45 = vadd.f32 %v7840_v55, %v7839_v43  ;;  %v7842_v41 = vpop.f32.mrb[130].mxu1  ;;  %v7821_v0 = vpop.f32.mrb[131].mxu0  ;;  %v7457_v43 = vld [vmem:[%s10886_s15] ss:$0 sm:$0xff] }
0x1fcd   :  { %v6505_v63 = vadd.f32 %v7819_v31, %v6464_v3  ;;  %v7822_v60 = vadd.f32 %v7821_v0, %v7820_v50  ;;  %v7843_v7 = vpop.f32.mrb[131].mxu1 }
0x1fce   :  { %v7844_v62 = vadd.f32 %v7843_v7, %v7842_v41 }
0x1fcf   :  { %v6546_v48 = vadd.f32 %v7841_v45, %v6505_v63  ;;  %v6508_v27 = vadd.f32 %v7822_v60, %v6467_v37 }
0x1fd1   :  { %v6549_v33 = vadd.f32 %v7844_v62, %v6508_v27 }
0x1fe9   :  { %v7861_v21 = vpop.f32.mrb[132].mxu0 }
0x1fea   :  { %v7883_v15 = vpop.f32.mrb[132].mxu1  ;;  %v7862_v9 = vpop.f32.mrb[133].mxu0 }
0x1feb   :  { %v7863_v49 = vadd.f32 %v7862_v9, %v7861_v21  ;;  %v7884_v18 = vpop.f32.mrb[133].mxu1  ;;  %v7864_v29 = vpop.f32.mrb[134].mxu0 }
0x1fec   :  { %v7885_v2 = vadd.f32 %v7884_v18, %v7883_v15  ;;  %v7886_v38 = vpop.f32.mrb[134].mxu1  ;;  %v7865_v28 = vpop.f32.mrb[135].mxu0 }
0x1fed   :  { %v6587_v42 = vadd.f32 %v7863_v49, %v6546_v48  ;;  %v7866_v54 = vadd.f32 %v7865_v28, %v7864_v29  ;;  %v7887_v39 = vpop.f32.mrb[135].mxu1 }
0x1fee   :  { %v7888_v56 = vadd.f32 %v7887_v39, %v7886_v38 }
0x1fef   :  { %v6628_v6 = vadd.f32 %v7885_v2, %v6587_v42  ;;  %v6590_v10 = vadd.f32 %v7866_v54, %v6549_v33 }
0x1ff1   :  { %v6631_v53 = vadd.f32 %v7888_v56, %v6590_v10  ;;  %v6634_v59 = vadd.f32 %v6628_v6, %v10095_v32 }
0x1ff3   :  { %v6636_v12 = vsel %vm82_vm1, %v6634_v59, 0.0  ;;  %v6635_v24 = vadd.f32 %v6631_v53, %v10097_v52  ;;  %v8435_v52 = vld [vmem:[%s10885_s14] sm:$0xff]  }
0x1ff4   :  { %6637 = vadd.xlane.f32.xlu1 %v6636_v12  ;;  %8117 = vmatpush3.bf16.msra.mxu0 %v8435_v52 }
0x1ff5   :  { %v6639_v1 = vsel %vm82_vm1, %v6635_v24, 0.0  ;;  %8118 = vmatprep.subr.bf16.mxu0 %v10927_v47  ;;  %v7456_v47 = vld [vmem:[%s10884_s13 + $0x1] ss:$0 sm:$0xff] }
0x1ff6   :  { %6640 = vadd.xlane.f32.xlu0 %v6639_v1 }
0x1ff8   :  { %8119 = vmatpush3.bf16.msra.mxu0 %v8436_v58 }
0x2081   :  { %v6638_v17 = vpop.xlane.xlu1 %6637 }
0x2082   :  { %v6642_v40 = vmul.f32 0.03125, %v6638_v17 }
0x2083   :  { %v6641_v30 = vpop.xlane.xlu0 %6640 }
0x2084   :  { %v6644_v26 = vsub.f32 %v6634_v59, %v6642_v40  ;;  %v6643_v13 = vmul.f32 0.03125, %v6641_v30 }
0x2086   :  { %v6645_v46 = vsub.f32 %v6635_v24, %v6643_v13  ;;  %v6646_v8 = vmul.f32 %v6644_v26, %v6644_v26 }
0x2088   :  { %v6648_v36 = vsel %vm82_vm1, %v6646_v8, 0.0  ;;  %v6647_v44 = vmul.f32 %v6645_v46, %v6645_v46 }
0x2089   :  { %6649 = vadd.xlane.f32.xlu1 %v6648_v36 }
0x208a   :  { %v6651_v32 = vsel %vm82_vm1, %v6647_v44, 0.0 }
0x208b   :  { %6652 = vadd.xlane.f32.xlu0 %v6651_v32 }
0x2116   :  { %v6650_v35 = vpop.xlane.xlu1 %6649 }
0x2117   :  { %v6654_v22 = vmul.f32 0.03125, %v6650_v35 }
0x2118   :  { %v6653_v4 = vpop.xlane.xlu0 %6652 }
0x2119   :  { %v6656_v51 = vadd.f32 1e-05, %v6654_v22  ;;  %v6655_v23 = vmul.f32 0.03125, %v6653_v4 }
0x211b   :  { %8641 = vrsqrt.f32 %v6656_v51  ;;  %v6657_v16 = vadd.f32 1e-05, %v6655_v23 }
0x211d   :  { %8643 = vrsqrt.f32 %v6657_v16 }
0x2125   :  { %v8642_v5 = vpop.eup %8641 }
0x2126   :  { %v6660_v25 = vmul.f32 %v8642_v5, %v6644_v26 }
0x2127   :  { %v8644_v19 = vpop.eup %8643 }
0x2128   :  { %v6670_v61 = vmul.f32 %v7454_v14, %v6660_v25  ;;  %v6661_v34 = vmul.f32 %v8644_v19, %v6645_v46 }
0x212a   :  { %v6671_v3 = vmul.f32 %v7454_v14, %v6661_v34  ;;  %v6680_v11 = vadd.f32 %v7456_v47, %v6670_v61 }
0x212c   :  { %v6681_v37 = vadd.f32 %v7456_v47, %v6671_v3 }
0x212e   :  { %v6682_v20 = vpack.c.bf16 %v6681_v37, %v6680_v11 }
0x2130   :  { %8121 = vmatmul.mubr.msk.bf16.vlgmr.msra.gmra.mrb[136].mxu0 %vm82_vm1, %v6682_v20 }
0x2203   :  { %v6743_v57 = vpop.f32.mrb[136].mxu0 }
0x2204   :  { %v6744_v31 = vadd.f32 %v7457_v43, %v6743_v57  ;;  %v8122_v55 = vpop.f32.mrb[137].mxu0 }
0x2205   :  { %v6746_v50 = vpop.f32.mrb[138].mxu0 }
0x2206   :  { %6750 = vst [vmem:[%s10887_s16] sm:$0xff] %v6744_v31  ;;  %v6747_v45 = vadd.f32 %v7457_v43, %v6746_v50  ;;  %v8123_v41 = vpop.f32.mrb[139].mxu0 }
0x2208   :  { %6751 = vst [vmem:[%s10887_s16 + $0x8] sm:$0xff] %v6747_v45 }

</bundles_post_ra>
